<compile_context>
chip_gen: v7x
topology: tpu7x:2x2x1
jax: 0.10.0
libtpu: 0.0.40
codegen_flags: <defaults>
</compile_context>

<pallas_src>
import jax
import jax.numpy as jnp
from jax.experimental import pallas as pl
from jax.experimental.pallas import tpu as pltpu


# ----------------------------------------------------------------------------
# Parameter preparation (host side): fold BN / residuals / pair-softmax / SE.
# ----------------------------------------------------------------------------
def init_raw_params(key, C):
    Cs, Cq, Cr = 2 * C, (2 * C) // 4, C // 16
    ks = iter(jax.random.split(key, 64))

    def w(shape, scale=0.05):
        return scale * jax.random.normal(next(ks), shape, jnp.float32)

    def bn(ch):
        return (1.0 + 0.25 * jax.random.normal(next(ks), (ch,), jnp.float32),  # gamma
                0.1 * jax.random.normal(next(ks), (ch,), jnp.float32),         # beta
                0.1 * jax.random.normal(next(ks), (ch,), jnp.float32),         # running_mean
                0.5 + jax.random.uniform(next(ks), (ch,), jnp.float32))        # running_var

    return dict(
        conv1_w=w((Cq, Cs, 3, 3)), bn1=bn(Cq),
        down1_w=w((Cq, Cs)), bn_d1=bn(Cq),
        conv2_w=w((Cq, Cq, 3, 3)), bn2=bn(Cq),
        conv3_w=w((Cs, Cq)), conv3_b=w((Cs,)),
        convd_w=w((C, Cs, 3, 3)), bnd=bn(C),
        downd_w=w((C, Cs)), bn_dd=bn(C),
        wa1=w((Cr, C)), ba1=w((Cr,)), wb1=w((C, Cr)), bb1=w((C,)),
        wa2=w((Cr, C)), ba2=w((Cr,)), wb2=w((C, Cr)), bb2=w((C,)),
    )


def prepare_params(p, C):
    Cs, Cq, Cr = 2 * C, (2 * C) // 4, C // 16
    eps = 1e-5

    def fold_bn(w, bnp):
        gamma, beta, mean, var = bnp
        s = gamma / jnp.sqrt(var + eps)
        wf = w * s.reshape((-1,) + (1,) * (w.ndim - 1))
        bf = beta - mean * s
        return wf, bf

    def to9(w):  # (Cout, Cin, 3, 3) -> (Cout, 9*Cin), columns ordered (kh, kw, cin)
        cout, cin = w.shape[0], w.shape[1]
        return jnp.transpose(w, (0, 2, 3, 1)).reshape(cout, 9 * cin)

    # non_linear BasicBlock 1: conv3x3+BN, 1x1-downsample+BN folded into centre tap
    wc1, bc1 = fold_bn(p['conv1_w'], p['bn1'])
    wd1, bd1 = fold_bn(p['down1_w'], p['bn_d1'])
    w9_1 = to9(wc1).at[:, 4 * Cs:5 * Cs].add(wd1)
    b1 = (bc1 + bd1).reshape(Cq, 1)

    # non_linear BasicBlock 2: identity residual folded into centre tap
    wc2, bc2 = fold_bn(p['conv2_w'], p['bn2'])
    w9_2 = to9(wc2).at[:, 4 * Cq:5 * Cq].add(jnp.eye(Cq, dtype=jnp.float32))
    b2 = bc2.reshape(Cq, 1)

    # final 1x1 conv, with softmax-over-pairs -> sigmoid(diff) fold: D = I - pair_swap
    idx = jnp.arange(Cs)
    P = jnp.zeros((Cs, Cs), jnp.float32).at[idx, idx ^ 1].set(1.0)
    D = jnp.eye(Cs, dtype=jnp.float32) - P
    w3 = D @ p['conv3_w']
    b3 = (D @ p['conv3_b']).reshape(Cs, 1)

    # dimensionality_reduction BasicBlock: downsample folded into centre tap
    wdc, bdc = fold_bn(p['convd_w'], p['bnd'])
    wdd, bdd = fold_bn(p['downd_w'], p['bn_dd'])
    w9_d = to9(wdc).at[:, 4 * Cs:5 * Cs].add(wdd)
    bd = (bdc + bdd).reshape(C, 1)

    # both SE squeeze paths batched into single matmuls
    wa = jnp.concatenate([p['wa1'], p['wa2']], axis=0)                    # (2Cr, C)
    ba = jnp.concatenate([p['ba1'], p['ba2']], axis=0).reshape(2 * Cr, 1)
    wb = jnp.zeros((2 * C, 2 * Cr), jnp.float32)
    wb = wb.at[:C, :Cr].set(p['wb1']).at[C:, Cr:].set(p['wb2'])           # block-diag
    bb = jnp.concatenate([p['bb1'], p['bb2']], axis=0).reshape(2 * C, 1)

    bf16 = jnp.bfloat16
    return (w9_1.astype(bf16), b1, w9_2.astype(bf16), b2, w3.astype(bf16), b3,
            w9_d.astype(bf16), bd, wa, ba, wb, bb)


# ----------------------------------------------------------------------------
# Pallas forward
# ----------------------------------------------------------------------------
def forward(x1, x2, params):
    B, C, H, W = x1.shape
    HW = H * W
    x1f = x1.reshape(B, C, HW)
    x2f = x2.reshape(B, C, HW)

    def kernel(x1_ref, x2_ref, w1_ref, b1_ref, w2_ref, b2_ref, w3_ref, b3_ref,
               wd_ref, bd_ref, wa_ref, ba_ref, wb_ref, bb_ref, o_ref):
        f32 = jnp.float32
        x1v = x1_ref[...]                                    # (C, HW) f32
        x2v = x2_ref[...]
        cc = jnp.concatenate([x1v, x2v], axis=0)             # (2C, HW)

        # lane-position masks for the 3x3 conv border handling (depend only on W)
        w_id = jax.lax.broadcasted_iota(jnp.int32, (1, HW), 1) % W
        not_first_col = w_id != 0            # valid source for dx = -1
        not_last_col = w_id != (W - 1)       # valid source for dx = +1

        def im2col(x):
            """(Cin, HW) f32 -> (9*Cin, HW) bf16 stack of shifted/masked copies."""
            xb = x.astype(jnp.bfloat16)
            cin = xb.shape[0]
            zpad = jnp.zeros((cin, W + 1), jnp.bfloat16)
            padded = jnp.concatenate([zpad, xb, zpad], axis=1)     # (Cin, HW + 2W + 2)
            zero = jnp.zeros((), jnp.bfloat16)
            cols = []
            for dy in (-1, 0, 1):
                for dx in (-1, 0, 1):
                    o = dy * W + dx
                    s = padded[:, W + 1 + o: W + 1 + o + HW]
                    if dx == 1:
                        s = jnp.where(not_last_col, s, zero)
                    elif dx == -1:
                        s = jnp.where(not_first_col, s, zero)
                    cols.append(s)
            return jnp.concatenate(cols, axis=0)                   # (9*Cin, HW)

        def leaky(v):
            return jnp.where(v > 0, v, 0.01 * v)

        def basic_block(x, w_ref, b_ref):
            # fused conv3x3 + BN + downsample/identity residual as one bf16 matmul
            y = jnp.dot(w_ref[...], im2col(x), preferred_element_type=f32) + b_ref[...]
            return leaky(y)

        # --- non_linear ---
        u1 = basic_block(cc, w1_ref, b1_ref)                  # (Cq, HW)
        u2 = basic_block(u1, w2_ref, b2_ref)                  # (Cq, HW)
        logit = jnp.dot(w3_ref[...], u2.astype(jnp.bfloat16),
                        preferred_element_type=f32) + b3_ref[...]   # (2C, HW)
        # softmax over channel pairs == sigmoid of pair difference (folded into w3)
        shared = jax.nn.sigmoid(logit) * cc                   # (2C, HW)

        # --- dimensionality reduction ---
        dr = basic_block(shared, wd_ref, bd_ref)              # (C, HW)

        # --- both SE blocks, batched ---
        m = jnp.sum(dr, axis=-1, keepdims=True) * (1.0 / HW)  # (C, 1)
        t = jnp.maximum(
            jnp.dot(wa_ref[...], m, preferred_element_type=f32) + ba_ref[...], 0.0)
        gate = jax.nn.sigmoid(
            jnp.dot(wb_ref[...], t, preferred_element_type=f32) + bb_ref[...])  # (2C, 1)

        o_ref[0] = dr * gate[:C] + x1v
        o_ref[1] = dr * gate[C:] + x2v

    def full_spec(shape):
        nd = len(shape)
        return pl.BlockSpec(shape, lambda b, _nd=nd: (0,) * _nd)

    (w9_1, b1, w9_2, b2, w3, b3, w9_d, bd, wa, ba, wb, bb) = params

    in_specs = [
        pl.BlockSpec((None, C, HW), lambda b: (b, 0, 0)),     # x_s1
        pl.BlockSpec((None, C, HW), lambda b: (b, 0, 0)),     # x_s2
        full_spec(w9_1.shape), full_spec(b1.shape),
        full_spec(w9_2.shape), full_spec(b2.shape),
        full_spec(w3.shape), full_spec(b3.shape),
        full_spec(w9_d.shape), full_spec(bd.shape),
        full_spec(wa.shape), full_spec(ba.shape),
        full_spec(wb.shape), full_spec(bb.shape),
    ]
    # single output slab (2, B, C, HW): the torch.cat([out_s1, out_s2], 0) is a
    # free reshape in the wrapper, no extra HBM copy.
    out_spec = pl.BlockSpec((2, None, C, HW), lambda b: (0, b, 0, 0))

    out = pl.pallas_call(
        kernel,
        out_shape=jax.ShapeDtypeStruct((2, B, C, HW), jnp.float32),
        grid_spec=pltpu.PrefetchScalarGridSpec(
            num_scalar_prefetch=0,
            grid=(B,),
            in_specs=in_specs,
            out_specs=out_spec,
        ),
        compiler_params=pltpu.CompilerParams(
            dimension_semantics=("parallel",)),       # batch iterations independent
    )(x1f, x2f, *params)

    return out.reshape(2 * B, C, H, W)


# ----------------------------------------------------------------------------
# Pure-JAX reference (unfused, f32) mirroring the PyTorch module structure.
# ----------------------------------------------------------------------------
def reference(x1, x2, p):
    eps = 1e-5

    def bn(x, bnp):
        gamma, beta, mean, var = bnp
        s = gamma / jnp.sqrt(var + eps)
        return x * s[None, :, None, None] + (beta - mean * s)[None, :, None, None]

    def conv3(x, w):
        return jax.lax.conv_general_dilated(
            x, w, window_strides=(1, 1), padding=((1, 1), (1, 1)),
            dimension_numbers=('NCHW', 'OIHW', 'NCHW'))

    def conv1(x, w):
        return jnp.einsum('oc,bchw->bohw', w, x)

    def leaky(v):
        return jnp.where(v > 0, v, 0.01 * v)

    def basic_block(x, conv_w, bnp, down=None):
        out = bn(conv3(x, conv_w), bnp)
        identity = x if down is None else bn(conv1(x, down[0]), down[1])
        return leaky(out + identity)

    def se(x, wa, ba, wb, bb):
        m = jnp.mean(x, axis=(2, 3))
        t = jax.nn.relu(m @ wa.T + ba)
        s = jax.nn.sigmoid(t @ wb.T + bb)
        return x * s[:, :, None, None]

    cc = jnp.concatenate([x1, x2], axis=1)
    B, Cs, H, W = cc.shape
    u1 = basic_block(cc, p['conv1_w'], p['bn1'], (p['down1_w'], p['bn_d1']))
    u2 = basic_block(u1, p['conv2_w'], p['bn2'])
    nl = conv1(u2, p['conv3_w']) + p['conv3_b'][None, :, None, None]
    mask = jax.nn.softmax(nl.reshape(B, Cs // 2, 2, H, W), axis=2)
    shared = (mask * cc.reshape(B, Cs // 2, 2, H, W)).reshape(B, Cs, H, W)
    dr = basic_block(shared, p['convd_w'], p['bnd'], (p['downd_w'], p['bn_dd']))
    o1 = se(dr, p['wa1'], p['ba1'], p['wb1'], p['bb1']) + x1
    o2 = se(dr, p['wa2'], p['ba2'], p['wb2'], p['bb2']) + x2
    return jnp.concatenate([o1, o2], axis=0)


if __name__ == "__main__":
    key = jax.random.PRNGKey(0)
    B, C, H, W = 2, 32, 16, 16          # per-source batch, INPUT_CONV_CHANNEL, spatial
    k1, k2, kp = jax.random.split(key, 3)
    x_s1 = jax.random.normal(k1, (B, C, H, W), jnp.float32)
    x_s2 = jax.random.normal(k2, (B, C, H, W), jnp.float32)

    raw = init_raw_params(kp, C)
    params = prepare_params(raw, C)

    out = jax.jit(forward)(x_s1, x_s2, params)
    out = jax.block_until_ready(out)

    ref = reference(x_s1, x_s2, raw)
    assert out.shape == (2 * B, C, H, W), out.shape
    # tolerance covers bf16 MXU operands (f32 accumulation) vs the f32 reference
    if not jnp.allclose(out, ref, atol=3e-2, rtol=3e-2):
        err = float(jnp.max(jnp.abs(out - ref)))
        raise AssertionError(f"Pallas output mismatches reference (max abs err {err})")
    print("KERNEL_OK")
</pallas_src>

<mosaic_0001>
module attributes {stable_mosaic.version = 11 : i64} {
  func.func @kernel(%arg0: i32, %arg1: memref<1x32x256xf32, #tpu.memory_space<vmem>>, %arg2: memref<1x32x256xf32, #tpu.memory_space<vmem>>, %arg3: memref<16x576xbf16, #tpu.memory_space<vmem>>, %arg4: memref<16x1xf32, #tpu.memory_space<vmem>>, %arg5: memref<16x144xbf16, #tpu.memory_space<vmem>>, %arg6: memref<16x1xf32, #tpu.memory_space<vmem>>, %arg7: memref<64x16xbf16, #tpu.memory_space<vmem>>, %arg8: memref<64x1xf32, #tpu.memory_space<vmem>>, %arg9: memref<32x576xbf16, #tpu.memory_space<vmem>>, %arg10: memref<32x1xf32, #tpu.memory_space<vmem>>, %arg11: memref<4x32xf32, #tpu.memory_space<vmem>>, %arg12: memref<4x1xf32, #tpu.memory_space<vmem>>, %arg13: memref<64x4xf32, #tpu.memory_space<vmem>>, %arg14: memref<64x1xf32, #tpu.memory_space<vmem>>, %arg15: memref<2x1x32x256xf32, #tpu.memory_space<vmem>>) attributes {dimension_semantics = [#tpu.dimension_semantics<parallel>], iteration_bounds = array<i64: 2>, scalar_prefetch = 0 : i64, scratch_operands = 0 : i64, tpu.core_type = #tpu.core_type<tc>, window_params = [{transform_indices = @transform_0, window_bounds = array<i64: 1, 32, 256>}, {transform_indices = @transform_1, window_bounds = array<i64: 1, 32, 256>}, {pipeline_mode = #tpu.pipeline_mode<synchronous>, transform_indices = @transform_2, window_bounds = array<i64: 16, 576>}, {pipeline_mode = #tpu.pipeline_mode<synchronous>, transform_indices = @transform_3, window_bounds = array<i64: 16, 1>}, {pipeline_mode = #tpu.pipeline_mode<synchronous>, transform_indices = @transform_4, window_bounds = array<i64: 16, 144>}, {pipeline_mode = #tpu.pipeline_mode<synchronous>, transform_indices = @transform_5, window_bounds = array<i64: 16, 1>}, {pipeline_mode = #tpu.pipeline_mode<synchronous>, transform_indices = @transform_6, window_bounds = array<i64: 64, 16>}, {pipeline_mode = #tpu.pipeline_mode<synchronous>, transform_indices = @transform_7, window_bounds = array<i64: 64, 1>}, {pipeline_mode = #tpu.pipeline_mode<synchronous>, transform_indices = @transform_8, window_bounds = array<i64: 32, 576>}, {pipeline_mode = #tpu.pipeline_mode<synchronous>, transform_indices = @transform_9, window_bounds = array<i64: 32, 1>}, {pipeline_mode = #tpu.pipeline_mode<synchronous>, transform_indices = @transform_10, window_bounds = array<i64: 4, 32>}, {pipeline_mode = #tpu.pipeline_mode<synchronous>, transform_indices = @transform_11, window_bounds = array<i64: 4, 1>}, {pipeline_mode = #tpu.pipeline_mode<synchronous>, transform_indices = @transform_12, window_bounds = array<i64: 64, 4>}, {pipeline_mode = #tpu.pipeline_mode<synchronous>, transform_indices = @transform_13, window_bounds = array<i64: 64, 1>}, {transform_indices = @transform_14, window_bounds = array<i64: 2, 1, 32, 256>}]} {
    %c0 = arith.constant 0 : index
    %c0_0 = arith.constant 0 : index
    %c0_1 = arith.constant 0 : index
    %0 = vector.load %arg1[%c0, %c0_0, %c0_1] : memref<1x32x256xf32, #tpu.memory_space<vmem>>, vector<1x32x256xf32>
    %1 = vector.shape_cast %0 : vector<1x32x256xf32> to vector<32x256xf32>
    %c0_2 = arith.constant 0 : index
    %c0_3 = arith.constant 0 : index
    %c0_4 = arith.constant 0 : index
    %2 = vector.load %arg2[%c0_2, %c0_3, %c0_4] : memref<1x32x256xf32, #tpu.memory_space<vmem>>, vector<1x32x256xf32>
    %3 = vector.shape_cast %2 : vector<1x32x256xf32> to vector<32x256xf32>
    %4 = tpu.concatenate %1, %3 in 0 : vector<32x256xf32>, vector<32x256xf32> -> vector<64x256xf32>
    %5 = tpu.iota {dimensions = array<i32: 1>} : vector<1x256xi32>
    %c16_i32 = arith.constant 16 : i32
    %c0_i32 = arith.constant 0 : i32
    %6 = arith.cmpi eq, %c16_i32, %c0_i32 : i32
    %c1_i32 = arith.constant 1 : i32
    %7 = arith.select %6, %c1_i32, %c16_i32 : i32
    %8 = vector.broadcast %7 : i32 to vector<1x256xi32>
    %9 = arith.remsi %5, %8 : vector<1x256xi32>
    %c0_i32_5 = arith.constant 0 : i32
    %10 = vector.broadcast %c0_i32_5 : i32 to vector<1x256xi32>
    %11 = arith.cmpi ne, %9, %10 : vector<1x256xi32>
    %c0_i32_6 = arith.constant 0 : i32
    %12 = vector.broadcast %c0_i32_6 : i32 to vector<1x256xi32>
    %13 = arith.cmpi slt, %9, %12 : vector<1x256xi32>
    %c0_i32_7 = arith.constant 0 : i32
    %14 = arith.cmpi slt, %7, %c0_i32_7 : i32
    %15 = vector.broadcast %14 : i1 to vector<1x256xi1>
    %16 = vector.broadcast %15 : vector<1x256xi1> to vector<1x256xi1>
    %17 = arith.xori %13, %16 : vector<1x256xi1>
    %18 = arith.andi %17, %11 : vector<1x256xi1>
    %19 = vector.broadcast %7 : i32 to vector<1x256xi32>
    %20 = arith.addi %9, %19 : vector<1x256xi32>
    %21 = arith.select %18, %20, %9 : vector<1x256xi1>, vector<1x256xi32>
    %c0_i32_8 = arith.constant 0 : i32
    %22 = vector.broadcast %c0_i32_8 : i32 to vector<1x256xi32>
    %23 = arith.cmpi ne, %21, %22 : vector<1x256xi32>
    %c15_i32 = arith.constant 15 : i32
    %24 = vector.broadcast %c15_i32 : i32 to vector<1x256xi32>
    %25 = arith.cmpi ne, %21, %24 : vector<1x256xi32>
    %c0_9 = arith.constant 0 : index
    %c0_10 = arith.constant 0 : index
    %26 = vector.load %arg3[%c0_9, %c0_10] : memref<16x576xbf16, #tpu.memory_space<vmem>>, vector<16x576xbf16>
    %27 = arith.truncf %4 : vector<64x256xf32> to vector<64x256xbf16>
    %cst = arith.constant 0.000000e+00 : bf16
    %28 = vector.broadcast %cst : bf16 to vector<64x17xbf16>
    %29 = tpu.concatenate %28, %27, %28 in 1 : vector<64x17xbf16>, vector<64x256xbf16>, vector<64x17xbf16> -> vector<64x290xbf16>
    %30 = vector.extract_strided_slice %29 {offsets = [0, 0], sizes = [64, 256], strides = [1, 1]} : vector<64x290xbf16> to vector<64x256xbf16>
    %cst_11 = arith.constant 0.000000e+00 : bf16
    %31 = vector.shape_cast %23 : vector<1x256xi1> to vector<1x256xi1>
    %32 = vector.broadcast %31 : vector<1x256xi1> to vector<64x256xi1>
    %33 = vector.broadcast %cst_11 : bf16 to vector<64x256xbf16>
    %34 = arith.select %32, %30, %33 : vector<64x256xi1>, vector<64x256xbf16>
    %35 = vector.extract_strided_slice %29 {offsets = [0, 1], sizes = [64, 256], strides = [1, 1]} : vector<64x290xbf16> to vector<64x256xbf16>
    %36 = vector.extract_strided_slice %29 {offsets = [0, 2], sizes = [64, 256], strides = [1, 1]} : vector<64x290xbf16> to vector<64x256xbf16>
    %cst_12 = arith.constant 0.000000e+00 : bf16
    %37 = vector.shape_cast %25 : vector<1x256xi1> to vector<1x256xi1>
    %38 = vector.broadcast %37 : vector<1x256xi1> to vector<64x256xi1>
    %39 = vector.broadcast %cst_12 : bf16 to vector<64x256xbf16>
    %40 = arith.select %38, %36, %39 : vector<64x256xi1>, vector<64x256xbf16>
    %41 = vector.extract_strided_slice %29 {offsets = [0, 16], sizes = [64, 256], strides = [1, 1]} : vector<64x290xbf16> to vector<64x256xbf16>
    %cst_13 = arith.constant 0.000000e+00 : bf16
    %42 = vector.shape_cast %23 : vector<1x256xi1> to vector<1x256xi1>
    %43 = vector.broadcast %42 : vector<1x256xi1> to vector<64x256xi1>
    %44 = vector.broadcast %cst_13 : bf16 to vector<64x256xbf16>
    %45 = arith.select %43, %41, %44 : vector<64x256xi1>, vector<64x256xbf16>
    %46 = vector.extract_strided_slice %29 {offsets = [0, 17], sizes = [64, 256], strides = [1, 1]} : vector<64x290xbf16> to vector<64x256xbf16>
    %47 = vector.extract_strided_slice %29 {offsets = [0, 18], sizes = [64, 256], strides = [1, 1]} : vector<64x290xbf16> to vector<64x256xbf16>
    %cst_14 = arith.constant 0.000000e+00 : bf16
    %48 = vector.shape_cast %25 : vector<1x256xi1> to vector<1x256xi1>
    %49 = vector.broadcast %48 : vector<1x256xi1> to vector<64x256xi1>
    %50 = vector.broadcast %cst_14 : bf16 to vector<64x256xbf16>
    %51 = arith.select %49, %47, %50 : vector<64x256xi1>, vector<64x256xbf16>
    %52 = vector.extract_strided_slice %29 {offsets = [0, 32], sizes = [64, 256], strides = [1, 1]} : vector<64x290xbf16> to vector<64x256xbf16>
    %cst_15 = arith.constant 0.000000e+00 : bf16
    %53 = vector.shape_cast %23 : vector<1x256xi1> to vector<1x256xi1>
    %54 = vector.broadcast %53 : vector<1x256xi1> to vector<64x256xi1>
    %55 = vector.broadcast %cst_15 : bf16 to vector<64x256xbf16>
    %56 = arith.select %54, %52, %55 : vector<64x256xi1>, vector<64x256xbf16>
    %57 = vector.extract_strided_slice %29 {offsets = [0, 33], sizes = [64, 256], strides = [1, 1]} : vector<64x290xbf16> to vector<64x256xbf16>
    %58 = vector.extract_strided_slice %29 {offsets = [0, 34], sizes = [64, 256], strides = [1, 1]} : vector<64x290xbf16> to vector<64x256xbf16>
    %cst_16 = arith.constant 0.000000e+00 : bf16
    %59 = vector.shape_cast %25 : vector<1x256xi1> to vector<1x256xi1>
    %60 = vector.broadcast %59 : vector<1x256xi1> to vector<64x256xi1>
    %61 = vector.broadcast %cst_16 : bf16 to vector<64x256xbf16>
    %62 = arith.select %60, %58, %61 : vector<64x256xi1>, vector<64x256xbf16>
    %63 = tpu.concatenate %34, %35, %40, %45, %46, %51, %56, %57, %62 in 0 : vector<64x256xbf16>, vector<64x256xbf16>, vector<64x256xbf16>, vector<64x256xbf16>, vector<64x256xbf16>, vector<64x256xbf16>, vector<64x256xbf16>, vector<64x256xbf16>, vector<64x256xbf16> -> vector<576x256xbf16>
    %cst_17 = arith.constant dense<0.000000e+00> : vector<16x256xf32>
    %64 = tpu.matmul %26, %63, %cst_17 {dimension_numbers = #tpu.dot_dimension_numbers<[1], [0], [0], [1], [0, 0, 1, 1], [], []>} : vector<16x576xbf16>, vector<576x256xbf16>, vector<16x256xf32> -> vector<16x256xf32>
    %c0_18 = arith.constant 0 : index
    %c0_19 = arith.constant 0 : index
    %65 = vector.load %arg4[%c0_18, %c0_19] : memref<16x1xf32, #tpu.memory_space<vmem>>, vector<16x1xf32>
    %66 = vector.broadcast %65 : vector<16x1xf32> to vector<16x256xf32>
    %67 = arith.addf %64, %66 : vector<16x256xf32>
    %cst_20 = arith.constant 0.000000e+00 : f32
    %68 = vector.broadcast %cst_20 : f32 to vector<16x256xf32>
    %69 = arith.cmpf ogt, %67, %68 : vector<16x256xf32>
    %cst_21 = arith.constant 0.00999999977 : f32
    %70 = vector.broadcast %cst_21 : f32 to vector<16x256xf32>
    %71 = arith.mulf %70, %67 : vector<16x256xf32>
    %72 = arith.select %69, %67, %71 : vector<16x256xi1>, vector<16x256xf32>
    %c0_22 = arith.constant 0 : index
    %c0_23 = arith.constant 0 : index
    %73 = vector.load %arg5[%c0_22, %c0_23] : memref<16x144xbf16, #tpu.memory_space<vmem>>, vector<16x144xbf16>
    %74 = arith.truncf %72 : vector<16x256xf32> to vector<16x256xbf16>
    %cst_24 = arith.constant 0.000000e+00 : bf16
    %75 = vector.broadcast %cst_24 : bf16 to vector<16x17xbf16>
    %76 = tpu.concatenate %75, %74, %75 in 1 : vector<16x17xbf16>, vector<16x256xbf16>, vector<16x17xbf16> -> vector<16x290xbf16>
    %77 = vector.extract_strided_slice %76 {offsets = [0, 0], sizes = [16, 256], strides = [1, 1]} : vector<16x290xbf16> to vector<16x256xbf16>
    %cst_25 = arith.constant 0.000000e+00 : bf16
    %78 = vector.shape_cast %23 : vector<1x256xi1> to vector<1x256xi1>
    %79 = vector.broadcast %78 : vector<1x256xi1> to vector<16x256xi1>
    %80 = vector.broadcast %cst_25 : bf16 to vector<16x256xbf16>
    %81 = arith.select %79, %77, %80 : vector<16x256xi1>, vector<16x256xbf16>
    %82 = vector.extract_strided_slice %76 {offsets = [0, 1], sizes = [16, 256], strides = [1, 1]} : vector<16x290xbf16> to vector<16x256xbf16>
    %83 = vector.extract_strided_slice %76 {offsets = [0, 2], sizes = [16, 256], strides = [1, 1]} : vector<16x290xbf16> to vector<16x256xbf16>
    %cst_26 = arith.constant 0.000000e+00 : bf16
    %84 = vector.shape_cast %25 : vector<1x256xi1> to vector<1x256xi1>
    %85 = vector.broadcast %84 : vector<1x256xi1> to vector<16x256xi1>
    %86 = vector.broadcast %cst_26 : bf16 to vector<16x256xbf16>
    %87 = arith.select %85, %83, %86 : vector<16x256xi1>, vector<16x256xbf16>
    %88 = vector.extract_strided_slice %76 {offsets = [0, 16], sizes = [16, 256], strides = [1, 1]} : vector<16x290xbf16> to vector<16x256xbf16>
    %cst_27 = arith.constant 0.000000e+00 : bf16
    %89 = vector.shape_cast %23 : vector<1x256xi1> to vector<1x256xi1>
    %90 = vector.broadcast %89 : vector<1x256xi1> to vector<16x256xi1>
    %91 = vector.broadcast %cst_27 : bf16 to vector<16x256xbf16>
    %92 = arith.select %90, %88, %91 : vector<16x256xi1>, vector<16x256xbf16>
    %93 = vector.extract_strided_slice %76 {offsets = [0, 17], sizes = [16, 256], strides = [1, 1]} : vector<16x290xbf16> to vector<16x256xbf16>
    %94 = vector.extract_strided_slice %76 {offsets = [0, 18], sizes = [16, 256], strides = [1, 1]} : vector<16x290xbf16> to vector<16x256xbf16>
    %cst_28 = arith.constant 0.000000e+00 : bf16
    %95 = vector.shape_cast %25 : vector<1x256xi1> to vector<1x256xi1>
    %96 = vector.broadcast %95 : vector<1x256xi1> to vector<16x256xi1>
    %97 = vector.broadcast %cst_28 : bf16 to vector<16x256xbf16>
    %98 = arith.select %96, %94, %97 : vector<16x256xi1>, vector<16x256xbf16>
    %99 = vector.extract_strided_slice %76 {offsets = [0, 32], sizes = [16, 256], strides = [1, 1]} : vector<16x290xbf16> to vector<16x256xbf16>
    %cst_29 = arith.constant 0.000000e+00 : bf16
    %100 = vector.shape_cast %23 : vector<1x256xi1> to vector<1x256xi1>
    %101 = vector.broadcast %100 : vector<1x256xi1> to vector<16x256xi1>
    %102 = vector.broadcast %cst_29 : bf16 to vector<16x256xbf16>
    %103 = arith.select %101, %99, %102 : vector<16x256xi1>, vector<16x256xbf16>
    %104 = vector.extract_strided_slice %76 {offsets = [0, 33], sizes = [16, 256], strides = [1, 1]} : vector<16x290xbf16> to vector<16x256xbf16>
    %105 = vector.extract_strided_slice %76 {offsets = [0, 34], sizes = [16, 256], strides = [1, 1]} : vector<16x290xbf16> to vector<16x256xbf16>
    %cst_30 = arith.constant 0.000000e+00 : bf16
    %106 = vector.shape_cast %25 : vector<1x256xi1> to vector<1x256xi1>
    %107 = vector.broadcast %106 : vector<1x256xi1> to vector<16x256xi1>
    %108 = vector.broadcast %cst_30 : bf16 to vector<16x256xbf16>
    %109 = arith.select %107, %105, %108 : vector<16x256xi1>, vector<16x256xbf16>
    %110 = tpu.concatenate %81, %82, %87, %92, %93, %98, %103, %104, %109 in 0 : vector<16x256xbf16>, vector<16x256xbf16>, vector<16x256xbf16>, vector<16x256xbf16>, vector<16x256xbf16>, vector<16x256xbf16>, vector<16x256xbf16>, vector<16x256xbf16>, vector<16x256xbf16> -> vector<144x256xbf16>
    %cst_31 = arith.constant dense<0.000000e+00> : vector<16x256xf32>
    %111 = tpu.matmul %73, %110, %cst_31 {dimension_numbers = #tpu.dot_dimension_numbers<[1], [0], [0], [1], [0, 0, 1, 1], [], []>} : vector<16x144xbf16>, vector<144x256xbf16>, vector<16x256xf32> -> vector<16x256xf32>
    %c0_32 = arith.constant 0 : index
    %c0_33 = arith.constant 0 : index
    %112 = vector.load %arg6[%c0_32, %c0_33] : memref<16x1xf32, #tpu.memory_space<vmem>>, vector<16x1xf32>
    %113 = vector.broadcast %112 : vector<16x1xf32> to vector<16x256xf32>
    %114 = arith.addf %111, %113 : vector<16x256xf32>
    %cst_34 = arith.constant 0.000000e+00 : f32
    %115 = vector.broadcast %cst_34 : f32 to vector<16x256xf32>
    %116 = arith.cmpf ogt, %114, %115 : vector<16x256xf32>
    %cst_35 = arith.constant 0.00999999977 : f32
    %117 = vector.broadcast %cst_35 : f32 to vector<16x256xf32>
    %118 = arith.mulf %117, %114 : vector<16x256xf32>
    %119 = arith.select %116, %114, %118 : vector<16x256xi1>, vector<16x256xf32>
    %c0_36 = arith.constant 0 : index
    %c0_37 = arith.constant 0 : index
    %120 = vector.load %arg7[%c0_36, %c0_37] : memref<64x16xbf16, #tpu.memory_space<vmem>>, vector<64x16xbf16>
    %121 = arith.truncf %119 : vector<16x256xf32> to vector<16x256xbf16>
    %cst_38 = arith.constant dense<0.000000e+00> : vector<64x256xf32>
    %122 = tpu.matmul %120, %121, %cst_38 {dimension_numbers = #tpu.dot_dimension_numbers<[1], [0], [0], [1], [0, 0, 1, 1], [], []>} : vector<64x16xbf16>, vector<16x256xbf16>, vector<64x256xf32> -> vector<64x256xf32>
    %c0_39 = arith.constant 0 : index
    %c0_40 = arith.constant 0 : index
    %123 = vector.load %arg8[%c0_39, %c0_40] : memref<64x1xf32, #tpu.memory_space<vmem>>, vector<64x1xf32>
    %124 = vector.broadcast %123 : vector<64x1xf32> to vector<64x256xf32>
    %125 = arith.addf %122, %124 : vector<64x256xf32>
    %126 = arith.negf %125 : vector<64x256xf32>
    %127 = math.exp %126 : vector<64x256xf32>
    %cst_41 = arith.constant 1.000000e+00 : f32
    %128 = vector.broadcast %cst_41 : f32 to vector<64x256xf32>
    %129 = arith.addf %128, %127 : vector<64x256xf32>
    %130 = arith.divf %128, %129 : vector<64x256xf32>
    %131 = arith.mulf %130, %4 : vector<64x256xf32>
    %c0_42 = arith.constant 0 : index
    %c0_43 = arith.constant 0 : index
    %132 = vector.load %arg9[%c0_42, %c0_43] : memref<32x576xbf16, #tpu.memory_space<vmem>>, vector<32x576xbf16>
    %133 = arith.truncf %131 : vector<64x256xf32> to vector<64x256xbf16>
    %cst_44 = arith.constant 0.000000e+00 : bf16
    %134 = vector.broadcast %cst_44 : bf16 to vector<64x17xbf16>
    %135 = tpu.concatenate %134, %133, %134 in 1 : vector<64x17xbf16>, vector<64x256xbf16>, vector<64x17xbf16> -> vector<64x290xbf16>
    %136 = vector.extract_strided_slice %135 {offsets = [0, 0], sizes = [64, 256], strides = [1, 1]} : vector<64x290xbf16> to vector<64x256xbf16>
    %cst_45 = arith.constant 0.000000e+00 : bf16
    %137 = vector.shape_cast %23 : vector<1x256xi1> to vector<1x256xi1>
    %138 = vector.broadcast %137 : vector<1x256xi1> to vector<64x256xi1>
    %139 = vector.broadcast %cst_45 : bf16 to vector<64x256xbf16>
    %140 = arith.select %138, %136, %139 : vector<64x256xi1>, vector<64x256xbf16>
    %141 = vector.extract_strided_slice %135 {offsets = [0, 1], sizes = [64, 256], strides = [1, 1]} : vector<64x290xbf16> to vector<64x256xbf16>
    %142 = vector.extract_strided_slice %135 {offsets = [0, 2], sizes = [64, 256], strides = [1, 1]} : vector<64x290xbf16> to vector<64x256xbf16>
    %cst_46 = arith.constant 0.000000e+00 : bf16
    %143 = vector.shape_cast %25 : vector<1x256xi1> to vector<1x256xi1>
    %144 = vector.broadcast %143 : vector<1x256xi1> to vector<64x256xi1>
    %145 = vector.broadcast %cst_46 : bf16 to vector<64x256xbf16>
    %146 = arith.select %144, %142, %145 : vector<64x256xi1>, vector<64x256xbf16>
    %147 = vector.extract_strided_slice %135 {offsets = [0, 16], sizes = [64, 256], strides = [1, 1]} : vector<64x290xbf16> to vector<64x256xbf16>
    %cst_47 = arith.constant 0.000000e+00 : bf16
    %148 = vector.shape_cast %23 : vector<1x256xi1> to vector<1x256xi1>
    %149 = vector.broadcast %148 : vector<1x256xi1> to vector<64x256xi1>
    %150 = vector.broadcast %cst_47 : bf16 to vector<64x256xbf16>
    %151 = arith.select %149, %147, %150 : vector<64x256xi1>, vector<64x256xbf16>
    %152 = vector.extract_strided_slice %135 {offsets = [0, 17], sizes = [64, 256], strides = [1, 1]} : vector<64x290xbf16> to vector<64x256xbf16>
    %153 = vector.extract_strided_slice %135 {offsets = [0, 18], sizes = [64, 256], strides = [1, 1]} : vector<64x290xbf16> to vector<64x256xbf16>
    %cst_48 = arith.constant 0.000000e+00 : bf16
    %154 = vector.shape_cast %25 : vector<1x256xi1> to vector<1x256xi1>
    %155 = vector.broadcast %154 : vector<1x256xi1> to vector<64x256xi1>
    %156 = vector.broadcast %cst_48 : bf16 to vector<64x256xbf16>
    %157 = arith.select %155, %153, %156 : vector<64x256xi1>, vector<64x256xbf16>
    %158 = vector.extract_strided_slice %135 {offsets = [0, 32], sizes = [64, 256], strides = [1, 1]} : vector<64x290xbf16> to vector<64x256xbf16>
    %cst_49 = arith.constant 0.000000e+00 : bf16
    %159 = vector.shape_cast %23 : vector<1x256xi1> to vector<1x256xi1>
    %160 = vector.broadcast %159 : vector<1x256xi1> to vector<64x256xi1>
    %161 = vector.broadcast %cst_49 : bf16 to vector<64x256xbf16>
    %162 = arith.select %160, %158, %161 : vector<64x256xi1>, vector<64x256xbf16>
    %163 = vector.extract_strided_slice %135 {offsets = [0, 33], sizes = [64, 256], strides = [1, 1]} : vector<64x290xbf16> to vector<64x256xbf16>
    %164 = vector.extract_strided_slice %135 {offsets = [0, 34], sizes = [64, 256], strides = [1, 1]} : vector<64x290xbf16> to vector<64x256xbf16>
    %cst_50 = arith.constant 0.000000e+00 : bf16
    %165 = vector.shape_cast %25 : vector<1x256xi1> to vector<1x256xi1>
    %166 = vector.broadcast %165 : vector<1x256xi1> to vector<64x256xi1>
    %167 = vector.broadcast %cst_50 : bf16 to vector<64x256xbf16>
    %168 = arith.select %166, %164, %167 : vector<64x256xi1>, vector<64x256xbf16>
    %169 = tpu.concatenate %140, %141, %146, %151, %152, %157, %162, %163, %168 in 0 : vector<64x256xbf16>, vector<64x256xbf16>, vector<64x256xbf16>, vector<64x256xbf16>, vector<64x256xbf16>, vector<64x256xbf16>, vector<64x256xbf16>, vector<64x256xbf16>, vector<64x256xbf16> -> vector<576x256xbf16>
    %cst_51 = arith.constant dense<0.000000e+00> : vector<32x256xf32>
    %170 = tpu.matmul %132, %169, %cst_51 {dimension_numbers = #tpu.dot_dimension_numbers<[1], [0], [0], [1], [0, 0, 1, 1], [], []>} : vector<32x576xbf16>, vector<576x256xbf16>, vector<32x256xf32> -> vector<32x256xf32>
    %c0_52 = arith.constant 0 : index
    %c0_53 = arith.constant 0 : index
    %171 = vector.load %arg10[%c0_52, %c0_53] : memref<32x1xf32, #tpu.memory_space<vmem>>, vector<32x1xf32>
    %172 = vector.broadcast %171 : vector<32x1xf32> to vector<32x256xf32>
    %173 = arith.addf %170, %172 : vector<32x256xf32>
    %cst_54 = arith.constant 0.000000e+00 : f32
    %174 = vector.broadcast %cst_54 : f32 to vector<32x256xf32>
    %175 = arith.cmpf ogt, %173, %174 : vector<32x256xf32>
    %cst_55 = arith.constant 0.00999999977 : f32
    %176 = vector.broadcast %cst_55 : f32 to vector<32x256xf32>
    %177 = arith.mulf %176, %173 : vector<32x256xf32>
    %178 = arith.select %175, %173, %177 : vector<32x256xi1>, vector<32x256xf32>
    %cst_56 = arith.constant dense<0.000000e+00> : vector<32xf32>
    %179 = vector.multi_reduction <add>, %178, %cst_56 [1] : vector<32x256xf32> to vector<32xf32>
    %180 = vector.shape_cast %179 : vector<32xf32> to vector<32x1xf32>
    %cst_57 = arith.constant 3.906250e-03 : f32
    %181 = vector.broadcast %cst_57 : f32 to vector<32x1xf32>
    %182 = arith.mulf %180, %181 : vector<32x1xf32>
    %c0_58 = arith.constant 0 : index
    %c0_59 = arith.constant 0 : index
    %183 = vector.load %arg11[%c0_58, %c0_59] : memref<4x32xf32, #tpu.memory_space<vmem>>, vector<4x32xf32>
    %cst_60 = arith.constant dense<0.000000e+00> : vector<4x1xf32>
    %184 = tpu.matmul %183, %182, %cst_60 {dimension_numbers = #tpu.dot_dimension_numbers<[1], [0], [0], [1], [0, 0, 1, 1], [], []>} : vector<4x32xf32>, vector<32x1xf32>, vector<4x1xf32> -> vector<4x1xf32>
    %c0_61 = arith.constant 0 : index
    %c0_62 = arith.constant 0 : index
    %185 = vector.load %arg12[%c0_61, %c0_62] : memref<4x1xf32, #tpu.memory_space<vmem>>, vector<4x1xf32>
    %186 = arith.addf %184, %185 : vector<4x1xf32>
    %cst_63 = arith.constant 0.000000e+00 : f32
    %187 = vector.broadcast %cst_63 : f32 to vector<4x1xf32>
    %188 = arith.maximumf %186, %187 : vector<4x1xf32>
    %c0_64 = arith.constant 0 : index
    %c0_65 = arith.constant 0 : index
    %189 = vector.load %arg13[%c0_64, %c0_65] : memref<64x4xf32, #tpu.memory_space<vmem>>, vector<64x4xf32>
    %cst_66 = arith.constant dense<0.000000e+00> : vector<64x1xf32>
    %190 = tpu.matmul %189, %188, %cst_66 {dimension_numbers = #tpu.dot_dimension_numbers<[1], [0], [0], [1], [0, 0, 1, 1], [], []>} : vector<64x4xf32>, vector<4x1xf32>, vector<64x1xf32> -> vector<64x1xf32>
    %c0_67 = arith.constant 0 : index
    %c0_68 = arith.constant 0 : index
    %191 = vector.load %arg14[%c0_67, %c0_68] : memref<64x1xf32, #tpu.memory_space<vmem>>, vector<64x1xf32>
    %192 = arith.addf %190, %191 : vector<64x1xf32>
    %193 = arith.negf %192 : vector<64x1xf32>
    %194 = math.exp %193 : vector<64x1xf32>
    %cst_69 = arith.constant 1.000000e+00 : f32
    %195 = vector.broadcast %cst_69 : f32 to vector<64x1xf32>
    %196 = arith.addf %195, %194 : vector<64x1xf32>
    %197 = arith.divf %195, %196 : vector<64x1xf32>
    %198 = vector.extract_strided_slice %197 {offsets = [0, 0], sizes = [32, 1], strides = [1, 1]} : vector<64x1xf32> to vector<32x1xf32>
    %199 = vector.broadcast %198 : vector<32x1xf32> to vector<32x256xf32>
    %200 = arith.mulf %178, %199 : vector<32x256xf32>
    %201 = arith.addf %200, %1 : vector<32x256xf32>
    %c0_70 = arith.constant 0 : index
    %c0_71 = arith.constant 0 : index
    %c0_72 = arith.constant 0 : index
    %c0_73 = arith.constant 0 : index
    %202 = vector.load %arg15[%c0_70, %c0_71, %c0_72, %c0_73] : memref<2x1x32x256xf32, #tpu.memory_space<vmem>>, vector<1x1x32x256xf32>
    %203 = vector.shape_cast %202 : vector<1x1x32x256xf32> to vector<32x256xf32>
    %204 = vector.shape_cast %201 : vector<32x256xf32> to vector<1x1x32x256xf32>
    tpu.vector_store %arg15[%c0_70, %c0_71, %c0_72, %c0_73], %204 {strides = array<i32>} : memref<2x1x32x256xf32, #tpu.memory_space<vmem>>, vector<1x1x32x256xf32>,
    %205 = vector.extract_strided_slice %197 {offsets = [32, 0], sizes = [32, 1], strides = [1, 1]} : vector<64x1xf32> to vector<32x1xf32>
    %206 = vector.broadcast %205 : vector<32x1xf32> to vector<32x256xf32>
    %207 = arith.mulf %178, %206 : vector<32x256xf32>
    %208 = arith.addf %207, %3 : vector<32x256xf32>
    %c1 = arith.constant 1 : index
    %c0_74 = arith.constant 0 : index
    %c0_75 = arith.constant 0 : index
    %c0_76 = arith.constant 0 : index
    %209 = vector.load %arg15[%c1, %c0_74, %c0_75, %c0_76] : memref<2x1x32x256xf32, #tpu.memory_space<vmem>>, vector<1x1x32x256xf32>
    %210 = vector.shape_cast %209 : vector<1x1x32x256xf32> to vector<32x256xf32>
    %211 = vector.shape_cast %208 : vector<32x256xf32> to vector<1x1x32x256xf32>
    tpu.vector_store %arg15[%c1, %c0_74, %c0_75, %c0_76], %211 {strides = array<i32>} : memref<2x1x32x256xf32, #tpu.memory_space<vmem>>, vector<1x1x32x256xf32>,
    return
  }
  func.func @transform_0(%arg0: i32) -> (i32, i32, i32) {
    %c0_i32 = arith.constant 0 : i32
    %c0_i32_0 = arith.constant 0 : i32
    %c0_i32_1 = arith.constant 0 : i32
    return %arg0, %c0_i32, %c0_i32_0 : i32, i32, i32
  }
  func.func @transform_1(%arg0: i32) -> (i32, i32, i32) {
    %c0_i32 = arith.constant 0 : i32
    %c0_i32_0 = arith.constant 0 : i32
    %c0_i32_1 = arith.constant 0 : i32
    return %arg0, %c0_i32, %c0_i32_0 : i32, i32, i32
  }
  func.func @transform_2(%arg0: i32) -> (i32, i32) {
    %c0_i32 = arith.constant 0 : i32
    %c0_i32_0 = arith.constant 0 : i32
    %c0_i32_1 = arith.constant 0 : i32
    return %c0_i32, %c0_i32_0 : i32, i32
  }
  func.func @transform_3(%arg0: i32) -> (i32, i32) {
    %c0_i32 = arith.constant 0 : i32
    %c0_i32_0 = arith.constant 0 : i32
    %c0_i32_1 = arith.constant 0 : i32
    return %c0_i32, %c0_i32_0 : i32, i32
  }
  func.func @transform_4(%arg0: i32) -> (i32, i32) {
    %c0_i32 = arith.constant 0 : i32
    %c0_i32_0 = arith.constant 0 : i32
    %c0_i32_1 = arith.constant 0 : i32
    return %c0_i32, %c0_i32_0 : i32, i32
  }
  func.func @transform_5(%arg0: i32) -> (i32, i32) {
    %c0_i32 = arith.constant 0 : i32
    %c0_i32_0 = arith.constant 0 : i32
    %c0_i32_1 = arith.constant 0 : i32
    return %c0_i32, %c0_i32_0 : i32, i32
  }
  func.func @transform_6(%arg0: i32) -> (i32, i32) {
    %c0_i32 = arith.constant 0 : i32
    %c0_i32_0 = arith.constant 0 : i32
    %c0_i32_1 = arith.constant 0 : i32
    return %c0_i32, %c0_i32_0 : i32, i32
  }
  func.func @transform_7(%arg0: i32) -> (i32, i32) {
    %c0_i32 = arith.constant 0 : i32
    %c0_i32_0 = arith.constant 0 : i32
    %c0_i32_1 = arith.constant 0 : i32
    return %c0_i32, %c0_i32_0 : i32, i32
  }
  func.func @transform_8(%arg0: i32) -> (i32, i32) {
    %c0_i32 = arith.constant 0 : i32
    %c0_i32_0 = arith.constant 0 : i32
    %c0_i32_1 = arith.constant 0 : i32
    return %c0_i32, %c0_i32_0 : i32, i32
  }
  func.func @transform_9(%arg0: i32) -> (i32, i32) {
    %c0_i32 = arith.constant 0 : i32
    %c0_i32_0 = arith.constant 0 : i32
    %c0_i32_1 = arith.constant 0 : i32
    return %c0_i32, %c0_i32_0 : i32, i32
  }
  func.func @transform_10(%arg0: i32) -> (i32, i32) {
    %c0_i32 = arith.constant 0 : i32
    %c0_i32_0 = arith.constant 0 : i32
    %c0_i32_1 = arith.constant 0 : i32
    return %c0_i32, %c0_i32_0 : i32, i32
  }
  func.func @transform_11(%arg0: i32) -> (i32, i32) {
    %c0_i32 = arith.constant 0 : i32
    %c0_i32_0 = arith.constant 0 : i32
    %c0_i32_1 = arith.constant 0 : i32
    return %c0_i32, %c0_i32_0 : i32, i32
  }
  func.func @transform_12(%arg0: i32) -> (i32, i32) {
    %c0_i32 = arith.constant 0 : i32
    %c0_i32_0 = arith.constant 0 : i32
    %c0_i32_1 = arith.constant 0 : i32
    return %c0_i32, %c0_i32_0 : i32, i32
  }
  func.func @transform_13(%arg0: i32) -> (i32, i32) {
    %c0_i32 = arith.constant 0 : i32
    %c0_i32_0 = arith.constant 0 : i32
    %c0_i32_1 = arith.constant 0 : i32
    return %c0_i32, %c0_i32_0 : i32, i32
  }
  func.func @transform_14(%arg0: i32) -> (i32, i32, i32, i32) {
    %c0_i32 = arith.constant 0 : i32
    %c0_i32_0 = arith.constant 0 : i32
    %c0_i32_1 = arith.constant 0 : i32
    %c0_i32_2 = arith.constant 0 : i32
    return %c0_i32, %arg0, %c0_i32_0, %c0_i32_1 : i32, i32, i32, i32
  }
}

</mosaic_0001>

<bundles_post_ra>
// kernel: forward.1
= control target key start
LH: loop header
LB: loop body
LE: loop exit
PB: predicated region body
PF: predicated region fallthrough
CT: control target
= control target key end

     0   :  { %s5211_s0 = inlined_call_operand.vmem [shape: f32[2,32,256], index: 0, kind: input, shape index: {}]   ;;  %s5212_s1 = inlined_call_operand.vmem [shape: f32[2,32,256], index: 1, kind: input, shape index: {}]   ;;  %s5213_s2 = inlined_call_operand.vmem [shape: bf16[16,576], index: 2, kind: input, shape index: {}]   ;;  %s5214_s3 = inlined_call_operand.vmem [shape: f32[16,1], index: 3, kind: input, shape index: {}]   ;;  %s5215_s4 = inlined_call_operand.vmem [shape: bf16[16,144], index: 4, kind: input, shape index: {}]   ;;  %s5216_s5 = inlined_call_operand.vmem [shape: f32[16,1], index: 5, kind: input, shape index: {}]   ;;  %s5217_s6 = inlined_call_operand.vmem [shape: bf16[64,16], index: 6, kind: input, shape index: {}]   ;;  %s5218_s7 = inlined_call_operand.vmem [shape: f32[64,1], index: 7, kind: input, shape index: {}]   ;;  %s5219_s8 = inlined_call_operand.vmem [shape: bf16[32,576], index: 8, kind: input, shape index: {}]   ;;  %s5220_s9 = inlined_call_operand.vmem [shape: f32[32,1], index: 9, kind: input, shape index: {}]   ;;  %s5221_s10 = inlined_call_operand.vmem [shape: f32[4,32], index: 10, kind: input, shape index: {}]   ;;  %s5222_s11 = inlined_call_operand.vmem [shape: f32[4,1], index: 11, kind: input, shape index: {}]   ;;  %s5223_s12 = inlined_call_operand.vmem [shape: f32[64,4], index: 12, kind: input, shape index: {}]   ;;  %s5224_s13 = inlined_call_operand.vmem [shape: f32[64,1], index: 13, kind: input, shape index: {}]   ;;  %s5225_s14 = inlined_call_operand.vmem [shape: f32[2,2,32,256], index: 14, kind: output, shape index: {}]  }
   0x1   :  { %5266 = sst [smem:[#allocation6_spill]] %s5211_s0 }
   0x2   :  { %5267 = sst [smem:[#allocation7_spill]] %s5212_s1 }
   0x3   :  { %5268 = sst [smem:[#allocation8_spill]] %s5213_s2 }
   0x4   :  { %5269 = sst [smem:[#allocation9_spill]] %s5214_s3 }
   0x5   :  { %s3603_s29 = smov 0   ;;  %s3605_s30 = smov 0  }
   0x6   :  { %s3607_s15 = smov 0  }
   0x7 LB: > { %5270 = sst [smem:[#allocation3_spill]] %s3504_s30  ;;  %s3616_s16 = sadd.s32 4294967295, %s3508_s15   ;;  %s3508_s15 = sphi %s3607_s15, %s5417_s15   ;;  %s3504_s30 = sphi %s3605_s30, %s5419_s30   ;;  %s3500_s29 = sphi %s3603_s29, %s5418_s29  }
   0x8   : > { %s3618_s17 = sadd.s32 1, %s3508_s15   ;;  %s335_s19 = sadd.s32 1, %s3504_s30 }
   0x9   : > { %5271 = sst [smem:[#allocation4_spill]] %s3618_s17  ;;  %s332_s18 = ssub.s32 %s3508_s15, %s3618_s17 }
   0xa   : > { %p333_p0 = scmp.eq.s32.totalorder %s332_s18, 0  ;;  %p345_p1 = scmp.ne.s32.totalorder %s3504_s30, %s3500_s29 }
   0xb   : > { %p346_p2 = scmp.eq.s32.totalorder %s3616_s16, 1  ;;  %p3111_p3 = scmp.ge.s32.totalorder %s3508_s15, 1 }
   0xc   : > { %s3626_s20 = scalar_select %p333_p0, %s3504_s30, %s335_s19  }
   0xd   : > { %p3628_p4 = por %p346_p2, %p345_p1  ;;  %p422_p5 = scmp.lt.s32.totalorder %s3508_s15, 3 }
   0xe   : > { %5272 = sst [smem:[#allocation5_spill]] %s3626_s20 }
   0xf   : > { %p423_p6 = pnand %p3111_p3, %p422_p5 }
  0x10   : > { %p472_p7 = scmp.lt.s32.totalorder (!%p423_p6), %s3616_s16, 1  ;;  %v501_v0 = vlaneseq (!%p423_p6)  ;;  %v3510_v1 = vmov (!%p423_p6), 0   ;;  %s5274_s0 = sld [smem:[#allocation6_spill]] (!%p423_p6)  ;;  %vm570_vm6 = vcmask (!%p423_p6), 138240   ;;  %vm647_vm13 = vcmask (!%p423_p6), 15360  }
  0x11   : > { %426 = sbr.rel (%p423_p6) target bundleno = 2850 (0xb22), region = 76  ;;  %3328 = vset.pattern.permute.xlu0 (!%p423_p6), %v3510_v1  ;;  %3329 = vset.pattern.permute.xlu1 (!%p423_p6), %v3510_v1  ;;  %s5275_s1 = sld [smem:[#allocation7_spill]] (!%p423_p6)  ;;  %vm5226_vm15 = vcmask (!%p423_p6), 130048  }
  0x12   : > { %v502_v2 = vand.u32 (!%p423_p6), 127, %v501_v0  ;;  %s5257_s18 = smov (!%p423_p6), 17   ;;  %v612_v29 = vshrl.u32 (!%p423_p6), %v501_v0, 7  ;;  %s3512_s19 = smov (!%p423_p6), 2  }
  0x13   : > { %s3515_s24 = smov (!%p423_p6), 32   ;;  %s3516_s25 = smov (!%p423_p6), 34  }
  0x14   : > { %v503_v3 = vadd.s32 (!%p423_p6), 128, %v502_v2  ;;  %v508_v4 = vand.u32 (!%p423_p6), 15, %v502_v2  ;;  %v617_v32 = vsub.s32 (!%p423_p6), 4, %v612_v29  ;;  %v613_v35 = vsub.s32 (!%p423_p6), 0, %v612_v29  ;;  %s5255_s27 = smov (!%p423_p6), 127   ;;  %s5253_s28 = smov (!%p423_p6), 111  }
  0x15   : > { %s5280_s2 = sld [smem:[#allocation8_spill]] (!%p423_p6)  ;;  %s5281_s3 = sld [smem:[#allocation9_spill]] (!%p423_p6) }
  0x16   : > { %v515_v8 = vand.u32 (!%p423_p6), 15, %v503_v3  ;;  %vm3655_vm0 = vcmp.ne.s32.totalorder (!%p423_p6), %v508_v4, 15  ;;  %vm528_vm3 = vcmp.ne.s32.totalorder (!%p423_p6), %v508_v4, 0 }
  0x18   : > { %s473_s22 = scalar_select %p472_p7, %s3616_s16, 1  ;;  %vm3659_vm1 = vcmp.ne.s32.totalorder %v515_v8, 15  ;;  %vm529_vm4 = vcmp.ne.s32.totalorder %v515_v8, 0 }
  0x19   : > { %vm633_vm2 = vmpackc.low %vm3659_vm1, %vm3655_vm0  ;;  %vm689_vm1 = vcmask 146432  }
  0x1a   : > { %s3202_s23 = sshll.u32 %s473_s22, 6  ;;  %v634_v34 = vsel %vm633_vm2, 65537, %v3510_v1  ;;  %vm609_vm5 = vmpackc.low %vm529_vm4, %vm528_vm3  ;;  %s3513_s22 = smov 16  }
  0x1b   : > { %s3639_s26 = scalar_lea.vmem %s5274_s0, %s3202_s23  ;;  %s3647_s15 = scalar_lea.vmem %s5275_s1, %s3202_s23  ;;  %v642_v36 = vrot.slane %v634_v34, %v617_v32  ;;  %v638_v37 = vrot.slane %v634_v34, %v613_v35  ;;  %v610_v38 = vsel %vm609_vm5, 65537, %v3510_v1  ;;  %vm5227_vm5 = vcmask 261120  }
  0x1c   : > { %v489_v5 = vld [vmem:[%s3639_s26 + $0x20] sm:$0xff]  ;;  %v491_v6 = vld [vmem:[%s3639_s26 + $0x30] sm:$0xff]  ;;  %v490_v11 = vld [vmem:[%s3639_s26 + $0x28] sm:$0xff]  ;;  %v3684_v39 = vrot.slane %v610_v38, %v617_v32  ;;  %v3686_v40 = vrot.slane %v610_v38, %v613_v35  ;;  %s3514_s23 = smov 18   ;;  %s5317_s0 = smov 111  }
  0x1d   : > { %v485_v7 = vld [vmem:[%s3639_s26] sm:$0xff]  ;;  %v540_v9 = vpack.c.bf16 %v491_v6, %v489_v5  ;;  %v487_v10 = vld [vmem:[%s3639_s26 + $0x10] sm:$0xff]  ;;  %v492_v12 = vld [vmem:[%s3639_s26 + $0x38] sm:$0xff] }
  0x1e   : > { %v538_v13 = vpack.c.bf16 %v487_v10, %v485_v7  ;;  %v486_v14 = vld [vmem:[%s3639_s26 + $0x8] sm:$0xff]  ;;  %v488_v15 = vld [vmem:[%s3639_s26 + $0x18] sm:$0xff]  ;;  %v541_v16 = vpack.c.bf16 %v492_v12, %v490_v11  ;;  %v493_v22 = vld [vmem:[%s3647_s15] sm:$0xff]  ;;  %vm620_vm7 = vcmp.ne.s16.totalorder %v3684_v39, 0  ;;  %vm619_vm8 = vcmp.ne.s16.totalorder %v3686_v40, 0 }
  0x1f   : > { %558 = vrot.lane.b32.xlu1 %v540_v9, %s5257_s18  ;;  %v539_v19 = vpack.c.bf16 %v488_v15, %v486_v14  ;;  %v494_v20 = vld [vmem:[%s3647_s15 + $0x8] sm:$0xff]  ;;  %v496_v21 = vld [vmem:[%s3647_s15 + $0x18] sm:$0xff]  ;;  %v495_v23 = vld [vmem:[%s3647_s15 + $0x10] sm:$0xff] }
  0x20   : > { %554 = vrot.lane.b32.xlu0 %v538_v13, %s5257_s18  ;;  %v498_v24 = vld [vmem:[%s3647_s15 + $0x28] sm:$0xff]  ;;  %v500_v25 = vld [vmem:[%s3647_s15 + $0x38] sm:$0xff]  ;;  %v543_v26 = vpack.c.bf16 %v496_v21, %v494_v20  ;;  %v497_v27 = vld [vmem:[%s3647_s15 + $0x20] sm:$0xff]  ;;  %v542_v30 = vpack.c.bf16 %v495_v23, %v493_v22 }
  0x21   : > { %v499_v28 = vld [vmem:[%s3647_s15 + $0x30] sm:$0xff]  ;;  %v545_v31 = vpack.c.bf16 %v500_v25, %v498_v24 }
  0x22   : > { %v544_v33 = vpack.c.bf16 %v499_v28, %v497_v27 }
  0x23   : > { %560 = vrot.lane.b32.xlu1 %v541_v16, %s5257_s18 }
  0x24   : > { %556 = vrot.lane.b32.xlu0 %v539_v19, %s5257_s18 }
  0x27   : > { %564 = vrot.lane.b32.xlu1 %v543_v26, %s5257_s18 }
  0x28   : > { %562 = vrot.lane.b32.xlu0 %v542_v30, %s5257_s18 }
  0x2b   : > { %568 = vrot.lane.b32.xlu1 %v545_v31, %s5257_s18 }
  0x2c   : > { %566 = vrot.lane.b32.xlu0 %v544_v33, %s5257_s18 }
  0x2f   : > { %645 = vrot.lane.b32.xlu1 %v642_v36, %s3512_s19 }
  0x30   : > { %643 = vrot.lane.b32.xlu0 %v638_v37, %s3512_s19  ;;  %s5239_s19 = smov 126  }
  0x33   : > { %666 = vrot.lane.b32.xlu1 %v3684_v39, %s3513_s22 }
  0x34   : > { %664 = vrot.lane.b32.xlu0 %v3686_v40, %s3513_s22  ;;  %s5237_s22 = smov 112  }
  0x37   : > { %685 = vrot.lane.b32.xlu1 %v638_v37, %s3514_s23 }
  0x38   : > { %687 = vrot.lane.b32.xlu0 %v642_v36, %s3514_s23  ;;  %s5235_s23 = smov 110  }
  0x3b   : > { %706 = vrot.lane.b32.xlu1 %v3686_v40, %s3515_s24 }
  0x3c   : > { %708 = vrot.lane.b32.xlu0 %v3684_v39, %s3515_s24  ;;  %s5231_s24 = smov 96  }
  0x3f   : > { %727 = vrot.lane.b32.xlu1 %v638_v37, %s3516_s25 }
  0x40   : > { %729 = vrot.lane.b32.xlu0 %v642_v36, %s3516_s25  ;;  %s5233_s25 = smov 95  }
  0x91   : > { %v559_v41 = vpop.permute.xlu1 %558 }
  0x92   : > { %v555_v42 = vpop.permute.xlu0 %554  ;;  %v3717_v51 = vsel %vm570_vm6, 0, %v559_v41 }
  0x93   : > { %v3695_v44 = vsel %vm570_vm6, 0, %v555_v42  ;;  %v623_v55 = vsel %vm619_vm8, %v3717_v51, 0 }
  0x94   : > { %v621_v49 = vsel %vm619_vm8, %v3695_v44, 0 }
  0x95   : > { %v561_v43 = vpop.permute.xlu1 %560 }
  0x96   : > { %v557_v45 = vpop.permute.xlu0 %556  ;;  %v3704_v48 = vsel %vm570_vm6, %v559_v41, %v561_v43  ;;  %v3736_v56 = vsel %vm570_vm6, %v561_v43, 0  ;;  %v3332_v41 = vld [vmem:[%s5280_s2 + $0x4] ss:$20 sps:$4 sm:$0xff]  }
  0x97   : > { %v3698_v46 = vsel %vm570_vm6, %v555_v42, %v557_v45  ;;  %v3701_v47 = vsel %vm570_vm6, %v557_v45, 0  ;;  %1217 = vmatprep.mubr.bf16.mxu0 %v3332_v41 }
  0x98   : > { %760 = vrot.lane.b32.xlu1 %v3701_v47, %s5255_s27  ;;  %758 = vrot.lane.b32.xlu0 %v3698_v46, %s5255_s27 }
  0x99   : > { %3122 = vmatprep.subr.msk.bf16.mxu0 %vm620_vm7, %v3698_v46  ;;  %v565_v50 = vpop.permute.xlu1 %564 }
  0x9a   : > { %1186 = vmatpush1.bf16.msra.mxu0 %v621_v49  ;;  %v563_v52 = vpop.permute.xlu0 %562  ;;  %v3755_v62 = vsel %vm570_vm6, %v565_v50, 0 }
  0x9b   : > { %3123 = vmatprep.subr.msk.bf16.mxu0 %vm620_vm7, %v3704_v48  ;;  %v3723_v53 = vsel %vm570_vm6, %v563_v52, %v565_v50  ;;  %v3726_v54 = vsel %vm570_vm6, 0, %v563_v52 }
  0x9c   : > { %764 = vrot.lane.b32.xlu1 %v3704_v48, %s5255_s27  ;;  %756 = vrot.lane.b32.xlu0 %v3695_v44, %s5255_s27  ;;  %v625_v59 = vsel %vm619_vm8, %v3726_v54, 0 }
  0x9d   : > { %v569_v57 = vpop.permute.xlu1 %568 }
  0x9e   : > { %1188 = vmatpush1.bf16.msra.mxu0 %v623_v55  ;;  %v567_v58 = vpop.permute.xlu0 %566  ;;  %v3772_v0 = vsel %vm570_vm6, %v569_v57, 0 }
  0x9f   : > { %3124 = vmatprep.subr.msk.bf16.mxu0 %vm620_vm7, %v3723_v53  ;;  %v3745_v60 = vsel %vm570_vm6, %v567_v58, %v569_v57  ;;  %v3748_v61 = vsel %vm570_vm6, 0, %v567_v58 }
  0xa0   : > { %762 = vrot.lane.b32.xlu1 %v3717_v51, %s5255_s27  ;;  %766 = vrot.lane.b32.xlu0 %v3736_v56, %s5255_s27  ;;  %v627_v63 = vsel %vm619_vm8, %v3748_v61, 0 }
  0xa1   : > { %v3798_v2 = vpop.permute.xlu1 %645 }
  0xa2   : > { %1190 = vmatpush1.bf16.msra.mxu0 %v625_v59  ;;  %v3800_v3 = vpop.permute.xlu0 %643  ;;  %vm651_vm9 = vcmp.ne.s16.totalorder %v3798_v2, 0 }
  0xa3   : > { %3125 = vmatprep.subr.msk.bf16.mxu0 %vm620_vm7, %v3745_v60  ;;  %vm649_vm10 = vcmp.ne.s16.totalorder %v3800_v3, 0  ;;  %v654_v4 = vsel %vm651_vm9, %v3701_v47, 0  ;;  %v657_v7 = vsel %vm651_vm9, %v3736_v56, 0  ;;  %v660_v8 = vsel %vm651_vm9, %v3755_v62, 0 }
  0xa4   : > { %772 = vrot.lane.b32.xlu1 %v3755_v62, %s5255_s27  ;;  %770 = vrot.lane.b32.xlu0 %v3723_v53, %s5255_s27  ;;  %v652_v5 = vsel %vm649_vm10, %v3695_v44, 0  ;;  %v655_v6 = vsel %vm649_vm10, %v3717_v51, 0  ;;  %v658_v9 = vsel %vm649_vm10, %v3726_v54, 0  ;;  %v661_v12 = vsel %vm649_vm10, %v3748_v61, 0 }
  0xa5   : > { %v3832_v10 = vpop.permute.xlu1 %666  ;;  %v663_v13 = vsel %vm651_vm9, %v3772_v0, 0  ;;  %v3872_v20 = vsel %vm647_vm13, %v3800_v3, %v3798_v2  ;;  %vm5228_vm13 = vcmask 1039360  }
  0xa6   : > { %1192 = vmatpush1.bf16.msra.mxu0 %v627_v63  ;;  %v3834_v11 = vpop.permute.xlu0 %664  ;;  %vm672_vm11 = vcmp.ne.s16.totalorder %v3832_v10, 0  ;;  %vm650_vm14 = vcmp.ne.s16.totalorder %v3872_v20, 0 }
  0xa7   : > { %vm670_vm12 = vcmp.ne.s16.totalorder %v3834_v11, 0  ;;  %v675_v14 = vsel %vm672_vm11, %v3701_v47, 0  ;;  %v678_v17 = vsel %vm672_vm11, %v3736_v56, 0  ;;  %v681_v18 = vsel %vm672_vm11, %v3755_v62, 0 }
  0xa8   : > { %768 = vrot.lane.b32.xlu0 %v3726_v54, %s5255_s27  ;;  %776 = vrot.lane.b32.xlu1 %v3745_v60, %s5255_s27  ;;  %v673_v15 = vsel %vm670_vm12, %v3695_v44, 0  ;;  %v676_v16 = vsel %vm670_vm12, %v3717_v51, 0  ;;  %v679_v19 = vsel %vm670_vm12, %v3726_v54, 0  ;;  %v682_v21 = vsel %vm670_vm12, %v3748_v61, 0 }
  0xa9   : > { %v684_v22 = vsel %vm672_vm11, %v3772_v0, 0  ;;  %v656_v23 = vsel %vm650_vm14, %v3704_v48, 0  ;;  %v653_v24 = vsel %vm650_vm14, %v3698_v46, 0  ;;  %v3894_v25 = vsel %vm5226_vm15, %v3834_v11, %v3832_v10  ;;  %v3905_v28 = vpop.permute.xlu1 %685 }
  0xaa   : > { %v662_v26 = vsel %vm650_vm14, %v3745_v60, 0  ;;  %v659_v27 = vsel %vm650_vm14, %v3723_v53, 0  ;;  %vm671_vm0 = vcmp.ne.s16.totalorder %v3894_v25, 0  ;;  %v3907_v29 = vpop.permute.xlu0 %687  ;;  %vm691_vm4 = vcmp.ne.s16.totalorder %v3905_v28, 0 }
  0xab   : > { %v677_v30 = vsel %vm671_vm0, %v3704_v48, 0  ;;  %v674_v31 = vsel %vm671_vm0, %v3698_v46, 0  ;;  %v3919_v32 = vsel %vm689_vm1, %v3905_v28, %v3907_v29  ;;  %v683_v33 = vsel %vm671_vm0, %v3745_v60, 0 }
  0xac   : > { %778 = vrot.lane.b32.xlu0 %v3772_v0, %s5255_s27  ;;  %774 = vrot.lane.b32.xlu1 %v3748_v61, %s5255_s27  ;;  %v680_v34 = vsel %vm671_vm0, %v3723_v53, 0  ;;  %vm5251_vm2 = vcmp.ne.s16.totalorder %v3919_v32, 0  ;;  %vm5252_vm3 = vcmp.ne.s16.totalorder %v3907_v29, 0  ;;  %v694_v38 = vsel %vm691_vm4, %v3695_v44, 0 }
  0xad   : > { %v696_v35 = vsel %vm5252_vm3, %v3701_v47, 0  ;;  %v695_v36 = vsel %vm5251_vm2, %v3698_v46, 0  ;;  %v698_v37 = vsel %vm5251_vm2, %v3704_v48, 0  ;;  %v697_v42 = vsel %vm691_vm4, %v3717_v51, 0  ;;  %v3957_v45 = vpop.permute.xlu1 %706 }
  0xae   : > { %v699_v43 = vsel %vm5252_vm3, %v3736_v56, 0  ;;  %v3959_v49 = vpop.permute.xlu0 %708  ;;  %v702_v50 = vsel %vm5252_vm3, %v3755_v62, 0  ;;  %v701_v52 = vsel %vm5251_vm2, %v3723_v53, 0  ;;  %v704_v58 = vsel %vm5251_vm2, %v3745_v60, 0 }
  0xaf   : > { %v700_v59 = vsel %vm691_vm4, %v3726_v54, 0  ;;  %v3986_v63 = vsel %vm5227_vm5, %v3957_v45, %v3959_v49  ;;  %vm5229_vm15 = vcmp.ne.s16.totalorder %v3959_v49, 0  ;;  %vm5265_vm5 = vcmp.ne.s16.totalorder %v3957_v45, 0 }
  0xb0   : > { %905 = vrot.lane.b32.xlu0 %v3698_v46, %s5253_s28  ;;  %907 = vrot.lane.b32.xlu1 %v3701_v47, %s5253_s28  ;;  %vm5230_vm1 = vcmp.ne.s16.totalorder %v3986_v63, 0 }
  0xb1   : > { %v3971_v55 = vpop.permute.xlu1 %727  ;;  %v725_v41 = vsel %vm5230_vm1, %v3745_v60, 0 }
  0xb2   : > { %v3973_v57 = vpop.permute.xlu0 %729 }
  0xb4   : > { %903 = vrot.lane.b32.xlu0 %v3695_v44, %s5253_s28  ;;  %911 = vrot.lane.b32.xlu1 %v3704_v48, %s5253_s28 }
  0xb8   : > { %913 = vrot.lane.b32.xlu0 %v3736_v56, %s5253_s28  ;;  %909 = vrot.lane.b32.xlu1 %v3717_v51, %s5253_s28 }
  0xbc   : > { %917 = vrot.lane.b32.xlu0 %v3723_v53, %s5253_s28  ;;  %919 = vrot.lane.b32.xlu1 %v3755_v62, %s5253_s28 }
  0xc0   : > { %915 = vrot.lane.b32.xlu0 %v3726_v54, %s5253_s28  ;;  %923 = vrot.lane.b32.xlu1 %v3745_v60, %s5253_s28 }
  0xc4   : > { %925 = vrot.lane.b32.xlu0 %v3772_v0, %s5253_s28  ;;  %921 = vrot.lane.b32.xlu1 %v3748_v61, %s5253_s28 }
  0xc8   : > { %813 = vrot.lane.b32.xlu1 %v654_v4, %s5239_s19  ;;  %809 = vrot.lane.b32.xlu0 %v652_v5, %s5239_s19 }
  0xcc   : > { %815 = vrot.lane.b32.xlu1 %v655_v6, %s5239_s19  ;;  %819 = vrot.lane.b32.xlu0 %v657_v7, %s5239_s19  ;;  %v703_v6 = vsel %vm691_vm4, %v3748_v61, 0  ;;  %v705_v7 = vsel %vm5252_vm3, %v3772_v0, 0 }
  0xd0   : > { %825 = vrot.lane.b32.xlu1 %v660_v8, %s5239_s19  ;;  %821 = vrot.lane.b32.xlu0 %v658_v9, %s5239_s19 }
  0xd4   : > { %827 = vrot.lane.b32.xlu1 %v661_v12, %s5239_s19  ;;  %831 = vrot.lane.b32.xlu0 %v663_v13, %s5239_s19  ;;  %v717_v13 = vsel %vm5229_vm15, %v3701_v47, 0 }
  0xd8   : > { %866 = vrot.lane.b32.xlu1 %v675_v14, %s5237_s22  ;;  %862 = vrot.lane.b32.xlu0 %v673_v15, %s5237_s22  ;;  %v716_v14 = vsel %vm5230_vm1, %v3698_v46, 0 }
  0xdc   : > { %868 = vrot.lane.b32.xlu1 %v676_v16, %s5237_s22  ;;  %872 = vrot.lane.b32.xlu0 %v678_v17, %s5237_s22 }
  0xe0   : > { %878 = vrot.lane.b32.xlu1 %v681_v18, %s5237_s22  ;;  %874 = vrot.lane.b32.xlu0 %v679_v19, %s5237_s22  ;;  %v719_v18 = vsel %vm5230_vm1, %v3704_v48, 0  ;;  %v715_v19 = vsel %vm5265_vm5, %v3695_v44, 0 }
  0xe4   : > { %880 = vrot.lane.b32.xlu1 %v682_v21, %s5237_s22  ;;  %884 = vrot.lane.b32.xlu0 %v684_v22, %s5237_s22 }
  0xe8   : > { %817 = vrot.lane.b32.xlu1 %v656_v23, %s5239_s19  ;;  %811 = vrot.lane.b32.xlu0 %v653_v24, %s5239_s19 }
  0xec   : > { %829 = vrot.lane.b32.xlu1 %v662_v26, %s5239_s19  ;;  %823 = vrot.lane.b32.xlu0 %v659_v27, %s5239_s19  ;;  %v718_v26 = vsel %vm5265_vm5, %v3717_v51, 0  ;;  %v720_v27 = vsel %vm5229_vm15, %v3736_v56, 0  ;;  %s5282_s19 = smov 126  }
  0xf0   : > { %870 = vrot.lane.b32.xlu1 %v677_v30, %s5237_s22  ;;  %864 = vrot.lane.b32.xlu0 %v674_v31, %s5237_s22 }
  0xf4   : > { %882 = vrot.lane.b32.xlu1 %v683_v33, %s5237_s22  ;;  %876 = vrot.lane.b32.xlu0 %v680_v34, %s5237_s22  ;;  %v723_v34 = vsel %vm5229_vm15, %v3755_v62, 0  ;;  %s5283_s22 = smov 112  }
  0xf8   : > { %960 = vrot.lane.b32.xlu1 %v696_v35, %s5235_s23  ;;  %958 = vrot.lane.b32.xlu0 %v695_v36, %s5235_s23  ;;  %v722_v35 = vsel %vm5230_vm1, %v3723_v53, 0  ;;  %vm5250_vm1 = vcmp.ne.s16.totalorder %v3973_v57, 0 }
  0xfc   : > { %964 = vrot.lane.b32.xlu1 %v698_v37, %s5235_s23  ;;  %956 = vrot.lane.b32.xlu0 %v694_v38, %s5235_s23 }
 0x100   : > { %962 = vrot.lane.b32.xlu1 %v697_v42, %s5235_s23  ;;  %966 = vrot.lane.b32.xlu0 %v699_v43, %s5235_s23  ;;  %v721_v42 = vsel %vm5265_vm5, %v3726_v54, 0 }
 0x104   : > { %972 = vrot.lane.b32.xlu1 %v702_v50, %s5235_s23  ;;  %970 = vrot.lane.b32.xlu0 %v701_v52, %s5235_s23 }
 0x108   : > { %976 = vrot.lane.b32.xlu1 %v704_v58, %s5235_s23  ;;  %968 = vrot.lane.b32.xlu0 %v700_v59, %s5235_s23  ;;  %v724_v59 = vsel %vm5265_vm5, %v3748_v61, 0 }
 0x10a   : > { %v761_v4 = vpop.permute.xlu1 %760  ;;  %v759_v5 = vpop.permute.xlu0 %758 }
 0x10b   : > { %v782_v8 = vsel %vm5228_vm13, %v759_v5, %v761_v4  ;;  %v726_v4 = vsel %vm5229_vm15, %v3772_v0, 0 }
 0x10c   : > { %974 = vrot.lane.b32.xlu1 %v703_v6, %s5235_s23  ;;  %978 = vrot.lane.b32.xlu0 %v705_v7, %s5235_s23  ;;  %s5284_s23 = smov 110  }
 0x10d   : > { %1193 = vmatprep.subr.bf16.mxu0 %v782_v8 }
 0x10e   : > { %v765_v9 = vpop.permute.xlu1 %764  ;;  %v757_v12 = vpop.permute.xlu0 %756 }
 0x10f   : > { %v781_v15 = vsel %vm5228_vm13, %v757_v12, %v759_v5 }
 0x110   : > { %1013 = vrot.lane.b32.xlu1 %v717_v13, %s5231_s24  ;;  %1011 = vrot.lane.b32.xlu0 %v716_v14, %s5231_s24 }
 0x111   : > { %1194 = vmatpush1.bf16.msra.mxu0 %v781_v15 }
 0x112   : > { %v763_v16 = vpop.permute.xlu1 %762  ;;  %v767_v17 = vpop.permute.xlu0 %766 }
 0x113   : > { %v784_v21 = vsel %vm5228_vm13, %v765_v9, %v767_v17  ;;  %v783_v22 = vsel %vm5228_vm13, %v763_v16, %v765_v9 }
 0x114   : > { %1017 = vrot.lane.b32.xlu1 %v719_v18, %s5231_s24  ;;  %1009 = vrot.lane.b32.xlu0 %v715_v19, %s5231_s24 }
 0x115   : > { %1195 = vmatprep.subr.bf16.mxu0 %v784_v21 }
 0x116   : > { %1196 = vmatpush1.bf16.msra.mxu0 %v783_v22  ;;  %v773_v23 = vpop.permute.xlu1 %772  ;;  %v771_v24 = vpop.permute.xlu0 %770 }
 0x117   : > { %v786_v30 = vsel %vm5228_vm13, %v771_v24, %v773_v23  ;;  %v738_v23 = vsel %vm5250_vm1, %v3701_v47, 0 }
 0x118   : > { %1015 = vrot.lane.b32.xlu1 %v718_v26, %s5231_s24  ;;  %1019 = vrot.lane.b32.xlu0 %v720_v27, %s5231_s24 }
 0x119   : > { %1197 = vmatprep.subr.bf16.mxu0 %v786_v30 }
 0x11a   : > { %v777_v31 = vpop.permute.xlu1 %776  ;;  %v769_v33 = vpop.permute.xlu0 %768 }
 0x11b   : > { %v785_v36 = vsel %vm5228_vm13, %v769_v33, %v771_v24 }
 0x11c   : > { %1025 = vrot.lane.b32.xlu1 %v723_v34, %s5231_s24  ;;  %1023 = vrot.lane.b32.xlu0 %v722_v35, %s5231_s24  ;;  %v741_v34 = vsel %vm5250_vm1, %v3736_v56, 0  ;;  %v744_v35 = vsel %vm5250_vm1, %v3755_v62, 0 }
 0x11d   : > { %1198 = vmatpush1.bf16.msra.mxu0 %v785_v36 }
 0x11e   : > { %v775_v37 = vpop.permute.xlu1 %774  ;;  %v779_v38 = vpop.permute.xlu0 %778 }
 0x11f   : > { %v788_v43 = vsel %vm5228_vm13, %v777_v31, %v779_v38  ;;  %v787_v50 = vsel %vm5228_vm13, %v775_v37, %v777_v31  ;;  %vm731_vm13 = vcmask 277504  }
 0x120   : > { %1029 = vrot.lane.b32.xlu1 %v725_v41, %s5231_s24  ;;  %1021 = vrot.lane.b32.xlu0 %v721_v42, %s5231_s24  ;;  %v4101_v17 = vsel %vm731_vm13, %v3971_v55, %v3973_v57  ;;  %vm5242_vm13 = vcmp.ne.s16.totalorder %v3971_v55, 0  ;;  %v747_v42 = vsel %vm5250_vm1, %v3772_v0, 0 }
 0x121   : > { %1199 = vmatprep.subr.bf16.mxu0 %v788_v43  ;;  %vm5241_vm15 = vcmp.ne.s16.totalorder %v4101_v17, 0  ;;  %v739_v33 = vsel %vm5242_vm13, %v3717_v51, 0  ;;  %v742_v38 = vsel %vm5242_vm13, %v3726_v54, 0  ;;  %v745_v41 = vsel %vm5242_vm13, %v3748_v61, 0 }
 0x122   : > { %1200 = vmatpush1.bf16.msra.mxu0 %v787_v50  ;;  %v4047_v52 = vpop.permute.xlu1 %907  ;;  %v4049_v58 = vpop.permute.xlu0 %905  ;;  %v737_v24 = vsel %vm5241_vm15, %v3698_v46, 0  ;;  %v740_v30 = vsel %vm5241_vm15, %v3704_v48, 0  ;;  %v743_v36 = vsel %vm5241_vm15, %v3723_v53, 0  ;;  %v746_v37 = vsel %vm5241_vm15, %v3745_v60, 0 }
 0x123   : > { %vm5243_vm15 = vcmask 1031168  }
 0x124   : > { %1027 = vrot.lane.b32.xlu1 %v724_v59, %s5231_s24  ;;  %1031 = vrot.lane.b32.xlu0 %v726_v4, %s5231_s24  ;;  %s5261_s24 = smov 94  }
 0x126   : > { %v4059_v5 = vpop.permute.xlu1 %911  ;;  %v4061_v6 = vpop.permute.xlu0 %903 }
 0x128   : > { %1054 = vrot.lane.b32.xlu1 %v3701_v47, %s5233_s25  ;;  %1052 = vrot.lane.b32.xlu0 %v3698_v46, %s5233_s25  ;;  %v736_v47 = vsel %vm5242_vm13, %v3695_v44, 0  ;;  %vm5244_vm13 = vcmask 916480  }
 0x12a   : > { %v4067_v7 = vpop.permute.xlu1 %909  ;;  %v4069_v8 = vpop.permute.xlu0 %913 }
 0x12c   : > { %1058 = vrot.lane.b32.xlu1 %v3704_v48, %s5233_s25  ;;  %1050 = vrot.lane.b32.xlu0 %v3695_v44, %s5233_s25 }
 0x12e   : > { %v4075_v9 = vpop.permute.xlu1 %919  ;;  %v4077_v12 = vpop.permute.xlu0 %917 }
 0x130   : > { %1056 = vrot.lane.b32.xlu1 %v3717_v51, %s5233_s25  ;;  %1060 = vrot.lane.b32.xlu0 %v3736_v56, %s5233_s25 }
 0x132   : > { %v4083_v13 = vpop.permute.xlu1 %923  ;;  %v4085_v14 = vpop.permute.xlu0 %915 }
 0x134   : > { %1066 = vrot.lane.b32.xlu1 %v3755_v62, %s5233_s25  ;;  %1064 = vrot.lane.b32.xlu0 %v3723_v53, %s5233_s25 }
 0x136   : > { %v4091_v15 = vpop.permute.xlu1 %921  ;;  %v4093_v16 = vpop.permute.xlu0 %925 }
 0x138   : > { %1070 = vrot.lane.b32.xlu1 %v3745_v60, %s5233_s25  ;;  %1062 = vrot.lane.b32.xlu0 %v3726_v54, %s5233_s25  ;;  %v1144_v54 = vld [vmem:[%s5281_s3] sm:$0xff]  ;;  %v1145_v60 = vld [vmem:[%s5281_s3 + $0x8] sm:$0xff] }
 0x13a   : > { %v814_v18 = vpop.permute.xlu1 %813  ;;  %v810_v19 = vpop.permute.xlu0 %809 }
 0x13c   : > { %1068 = vrot.lane.b32.xlu1 %v3748_v61, %s5233_s25  ;;  %1072 = vrot.lane.b32.xlu0 %v3772_v0, %s5233_s25  ;;  %s5285_s25 = smov 96  }
 0x13e   : > { %v816_v21 = vpop.permute.xlu1 %815  ;;  %v820_v22 = vpop.permute.xlu0 %819 }
 0x140   : > { %1107 = vrot.lane.b32.xlu1 %v738_v23, %s5261_s24  ;;  %1105 = vrot.lane.b32.xlu0 %v737_v24, %s5261_s24 }
 0x142   : > { %v826_v26 = vpop.permute.xlu1 %825  ;;  %v822_v27 = vpop.permute.xlu0 %821 }
 0x144   : > { %1111 = vrot.lane.b32.xlu1 %v740_v30, %s5261_s24  ;;  %1103 = vrot.lane.b32.xlu0 %v736_v47, %s5261_s24 }
 0x146   : > { %v828_v46 = vpop.permute.xlu1 %827  ;;  %v832_v31 = vpop.permute.xlu0 %831 }
 0x148   : > { %1109 = vrot.lane.b32.xlu1 %v739_v33, %s5261_s24  ;;  %1113 = vrot.lane.b32.xlu0 %v741_v34, %s5261_s24 }
 0x14a   : > { %v867_v48 = vpop.permute.xlu1 %866  ;;  %v863_v44 = vpop.permute.xlu0 %862 }
 0x14c   : > { %1119 = vrot.lane.b32.xlu1 %v744_v35, %s5261_s24  ;;  %1117 = vrot.lane.b32.xlu0 %v743_v36, %s5261_s24 }
 0x14e   : > { %v869_v51 = vpop.permute.xlu1 %868  ;;  %v873_v56 = vpop.permute.xlu0 %872 }
 0x150   : > { %1123 = vrot.lane.b32.xlu1 %v746_v37, %s5261_s24  ;;  %1115 = vrot.lane.b32.xlu0 %v742_v38, %s5261_s24 }
 0x152   : > { %v879_v62 = vpop.permute.xlu1 %878  ;;  %v875_v53 = vpop.permute.xlu0 %874 }
 0x154   : > { %1121 = vrot.lane.b32.xlu1 %v745_v41, %s5261_s24  ;;  %1125 = vrot.lane.b32.xlu0 %v747_v42, %s5261_s24 }
 0x156   : > { %v881_v43 = vpop.permute.xlu1 %880  ;;  %v885_v50 = vpop.permute.xlu0 %884 }
 0x158   : > { %1148 = vperm.xlu0 %3328, %v1144_v54   ;;  %1153 = vperm.xlu1 %3329, %v1145_v60  }
 0x15a   : > { %v818_v61 = vpop.permute.xlu1 %817  ;;  %v812_v59 = vpop.permute.xlu0 %811 }
 0x15b   : > { %v835_v0 = vsel %vm5243_vm15, %v812_v59, %v814_v18  ;;  %v834_v4 = vsel %vm5243_vm15, %v810_v19, %v812_v59  ;;  %v837_v23 = vsel %vm5243_vm15, %v818_v61, %v820_v22  ;;  %v836_v47 = vsel %vm5243_vm15, %v816_v21, %v818_v61 }
 0x15c   : > { %1201 = vmatprep.subr.bf16.mxu0 %v835_v0 }
 0x15d   : > { %1202 = vmatpush1.bf16.msra.mxu0 %v834_v4 }
 0x15e   : > { %v830_v24 = vpop.permute.xlu1 %829  ;;  %1203 = vmatprep.subr.bf16.mxu0 %v837_v23  ;;  %v824_v30 = vpop.permute.xlu0 %823 }
 0x15f   : > { %v839_v33 = vsel %vm5243_vm15, %v824_v30, %v826_v26  ;;  %v838_v36 = vsel %vm5243_vm15, %v822_v27, %v824_v30  ;;  %v841_v18 = vsel %vm5243_vm15, %v830_v24, %v832_v31  ;;  %v840_v22 = vsel %vm5243_vm15, %v828_v46, %v830_v24 }
 0x160   : > { %vm5245_vm15 = vcmask 908288  }
 0x161   : > { %1204 = vmatpush1.bf16.msra.mxu0 %v836_v47  ;;  %v931_v23 = vsel %vm5245_vm15, %v4059_v5, %v4069_v8  ;;  %v930_v30 = vsel %vm5245_vm15, %v4067_v7, %v4059_v5  ;;  %v933_v47 = vsel %vm5245_vm15, %v4077_v12, %v4075_v9  ;;  %v932_v8 = vsel %vm5245_vm15, %v4085_v14, %v4077_v12 }
 0x162   : > { %v871_v34 = vpop.permute.xlu1 %870  ;;  %1205 = vmatprep.subr.bf16.mxu0 %v839_v33  ;;  %v865_v35 = vpop.permute.xlu0 %864  ;;  %v935_v33 = vsel %vm5245_vm15, %v4083_v13, %v4093_v16  ;;  %v934_v7 = vsel %vm5245_vm15, %v4091_v15, %v4083_v13 }
 0x163   : > { %v888_v21 = vsel %vm5244_vm13, %v865_v35, %v867_v48  ;;  %v887_v41 = vsel %vm5244_vm13, %v863_v44, %v865_v35  ;;  %v890_v27 = vsel %vm5244_vm13, %v871_v34, %v873_v56  ;;  %v889_v54 = vsel %vm5244_vm13, %v869_v51, %v871_v34  ;;  %v3330_v51 = vld [vmem:[%s5280_s2] ss:$20 sps:$4 sm:$0xff]  }
 0x165   : > { %1206 = vmatpush1.bf16.msra.mxu0 %v838_v36 }
 0x166   : > { %v883_v19 = vpop.permute.xlu1 %882  ;;  %1207 = vmatprep.subr.bf16.mxu0 %v841_v18  ;;  %v877_v37 = vpop.permute.xlu0 %876 }
 0x167   : > { %v892_v60 = vsel %vm5244_vm13, %v877_v37, %v879_v62  ;;  %v891_v48 = vsel %vm5244_vm13, %v875_v53, %v877_v37  ;;  %v894_v59 = vsel %vm5244_vm13, %v883_v19, %v885_v50  ;;  %v893_v0 = vsel %vm5244_vm13, %v881_v43, %v883_v19  ;;  %v3335_v53 = vld [vmem:[%s5280_s2 + $0xc] ss:$20 sps:$4 sm:$0xff]  }
 0x168   : > { %v929_v62 = vsel %vm5245_vm15, %v4049_v58, %v4047_v52  ;;  %v928_v43 = vsel %vm5245_vm15, %v4061_v6, %v4049_v58  ;;  %vm5246_vm13 = vcmask 900096   ;;  %vm5247_vm15 = vcmask 785408  }
 0x169   : > { %1208 = vmatpush1.bf16.msra.mxu0 %v840_v22 }
 0x16a   : > { %v961_v38 = vpop.permute.xlu1 %960  ;;  %1209 = vmatprep.subr.bf16.mxu0 %v888_v21  ;;  %v959_v26 = vpop.permute.xlu0 %958 }
 0x16b   : > { %v982_v9 = vsel %vm5246_vm13, %v959_v26, %v961_v38 }
 0x16d   : > { %1210 = vmatpush1.bf16.msra.mxu0 %v887_v41 }
 0x16e   : > { %v965_v42 = vpop.permute.xlu1 %964  ;;  %1211 = vmatprep.subr.bf16.mxu0 %v890_v27  ;;  %v957_v31 = vpop.permute.xlu0 %956 }
 0x16f   : > { %v981_v12 = vsel %vm5246_vm13, %v957_v31, %v959_v26 }
 0x171   : > { %1212 = vmatpush1.bf16.msra.mxu0 %v889_v54 }
 0x172   : > { %v963_v46 = vpop.permute.xlu1 %962  ;;  %1213 = vmatprep.subr.bf16.mxu0 %v892_v60  ;;  %v967_v61 = vpop.permute.xlu0 %966 }
 0x173   : > { %v984_v14 = vsel %vm5246_vm13, %v965_v42, %v967_v61  ;;  %v983_v19 = vsel %vm5246_vm13, %v963_v46, %v965_v42 }
 0x175   : > { %1214 = vmatpush1.bf16.msra.mxu0 %v891_v48 }
 0x176   : > { %v973_v44 = vpop.permute.xlu1 %972  ;;  %1215 = vmatprep.subr.bf16.mxu0 %v894_v59  ;;  %v971_v56 = vpop.permute.xlu0 %970 }
 0x177   : > { %v986_v37 = vsel %vm5246_vm13, %v971_v56, %v973_v44 }
 0x179   : > { %1216 = vmatpush1.bf16.msra.mxu0 %v893_v0 }
 0x17a   : > { %v977_v50 = vpop.permute.xlu1 %976  ;;  %1228 = vmatprep.subr.bf16.mxu0 %v929_v62  ;;  %v969_v4 = vpop.permute.xlu0 %968 }
 0x17b   : > { %v985_v22 = vsel %vm5246_vm13, %v969_v4, %v971_v56 }
 0x17c   : > { %1218 = vmatmul.mubr.bf16.vlgmr.msra.gmra.mrb[0].mxu0 %v3330_v51 }
 0x17d   : > { %1229 = vmatpush1.bf16.msra.mxu0 %v928_v43  ;;  %1260 = vmatprep.mubr.bf16.mxu0 %v3335_v53 }
 0x17e   : > { %v975_v24 = vpop.permute.xlu1 %974  ;;  %1230 = vmatprep.subr.bf16.mxu0 %v931_v23  ;;  %v979_v52 = vpop.permute.xlu0 %978 }
 0x17f   : > { %v988_v21 = vsel %vm5246_vm13, %v977_v50, %v979_v52  ;;  %v987_v41 = vsel %vm5246_vm13, %v975_v24, %v977_v50  ;;  %vm5248_vm13 = vcmask 777216  }
 0x181   : > { %1231 = vmatpush1.bf16.msra.mxu0 %v930_v30 }
 0x182   : > { %v1014_v58 = vpop.permute.xlu1 %1013  ;;  %1232 = vmatprep.subr.bf16.mxu0 %v933_v47  ;;  %v1012_v6 = vpop.permute.xlu0 %1011 }
 0x183   : > { %v1035_v27 = vsel %vm5247_vm15, %v1012_v6, %v1014_v58 }
 0x185   : > { %1233 = vmatpush1.bf16.msra.mxu0 %v932_v8 }
 0x186   : > { %v1018_v34 = vpop.permute.xlu1 %1017  ;;  %1234 = vmatprep.subr.bf16.mxu0 %v935_v33  ;;  %v1010_v5 = vpop.permute.xlu0 %1009 }
 0x187   : > { %v1034_v54 = vsel %vm5247_vm15, %v1010_v5, %v1012_v6 }
 0x189   : > { %1235 = vmatpush1.bf16.msra.mxu0 %v934_v7 }
 0x18a   : > { %v1016_v35 = vpop.permute.xlu1 %1015  ;;  %1236 = vmatprep.subr.bf16.mxu0 %v982_v9  ;;  %v1020_v36 = vpop.permute.xlu0 %1019 }
 0x18b   : > { %v1037_v60 = vsel %vm5247_vm15, %v1018_v34, %v1020_v36  ;;  %v1036_v48 = vsel %vm5247_vm15, %v1016_v35, %v1018_v34  ;;  %v3333_v36 = vld [vmem:[%s5280_s2 + $0x8] ss:$20 sps:$4 sm:$0xff]  }
 0x18d   : > { %1237 = vmatpush1.bf16.msra.mxu0 %v981_v12 }
 0x18e   : > { %v1026_v16 = vpop.permute.xlu1 %1025  ;;  %1238 = vmatprep.subr.bf16.mxu0 %v984_v14  ;;  %v1024_v18 = vpop.permute.xlu0 %1023 }
 0x18f   : > { %v1039_v59 = vsel %vm5247_vm15, %v1024_v18, %v1026_v16 }
 0x191   : > { %1239 = vmatpush1.bf16.msra.mxu0 %v983_v19 }
 0x192   : > { %v1030_v13 = vpop.permute.xlu1 %1029  ;;  %1240 = vmatprep.subr.bf16.mxu0 %v986_v37  ;;  %v1022_v15 = vpop.permute.xlu0 %1021 }
 0x193   : > { %v1038_v0 = vsel %vm5247_vm15, %v1022_v15, %v1024_v18 }
 0x195   : > { %1241 = vmatpush1.bf16.msra.mxu0 %v985_v22 }
 0x196   : > { %v1028_v38 = vpop.permute.xlu1 %1027  ;;  %1242 = vmatprep.subr.bf16.mxu0 %v988_v21  ;;  %v1032_v26 = vpop.permute.xlu0 %1031 }
 0x197   : > { %v1041_v51 = vsel %vm5247_vm15, %v1030_v13, %v1032_v26  ;;  %v1040_v50 = vsel %vm5247_vm15, %v1028_v38, %v1030_v13  ;;  %vm5249_vm15 = vcmask 769024  }
 0x199   : > { %1243 = vmatpush1.bf16.msra.mxu0 %v987_v41 }
 0x19a   : > { %v1055_v42 = vpop.permute.xlu1 %1054  ;;  %1244 = vmatprep.subr.bf16.mxu0 %v1035_v27  ;;  %v1053_v31 = vpop.permute.xlu0 %1052 }
 0x19b   : > { %v1076_v4 = vsel %vm5248_vm13, %v1053_v31, %v1055_v42 }
 0x19d   : > { %1245 = vmatpush1.bf16.msra.mxu0 %v1034_v54  ;;  %v3336_v54 = vld [vmem:[%s5280_s2 + $0x10] ss:$20 sps:$4 sm:$0xff]  }
 0x19e   : > { %v1059_v46 = vpop.permute.xlu1 %1058  ;;  %1246 = vmatprep.subr.bf16.mxu0 %v1037_v60  ;;  %v1051_v61 = vpop.permute.xlu0 %1050 }
 0x19f   : > { %v1075_v24 = vsel %vm5248_vm13, %v1051_v61, %v1053_v31 }
 0x1a1   : > { %1247 = vmatpush1.bf16.msra.mxu0 %v1036_v48 }
 0x1a2   : > { %v1057_v44 = vpop.permute.xlu1 %1056  ;;  %1248 = vmatprep.subr.bf16.mxu0 %v1039_v59  ;;  %v1061_v56 = vpop.permute.xlu0 %1060 }
 0x1a3   : > { %v1078_v52 = vsel %vm5248_vm13, %v1059_v46, %v1061_v56  ;;  %v1077_v58 = vsel %vm5248_vm13, %v1057_v44, %v1059_v46 }
 0x1a5   : > { %1249 = vmatpush1.bf16.msra.mxu0 %v1038_v0 }
 0x1a6   : > { %v1067_v62 = vpop.permute.xlu1 %1066  ;;  %1250 = vmatprep.subr.bf16.mxu0 %v1041_v51  ;;  %v1065_v53 = vpop.permute.xlu0 %1064 }
 0x1a7   : > { %v1080_v6 = vsel %vm5248_vm13, %v1065_v53, %v1067_v62 }
 0x1a9   : > { %1251 = vmatpush1.bf16.msra.mxu0 %v1040_v50 }
 0x1aa   : > { %v1071_v43 = vpop.permute.xlu1 %1070  ;;  %1252 = vmatprep.subr.bf16.mxu0 %v1076_v4  ;;  %v1063_v23 = vpop.permute.xlu0 %1062 }
 0x1ab   : > { %v1079_v34 = vsel %vm5248_vm13, %v1063_v23, %v1065_v53 }
 0x1ad   : > { %1253 = vmatpush1.bf16.msra.mxu0 %v1075_v24 }
 0x1ae   : > { %v1069_v30 = vpop.permute.xlu1 %1068  ;;  %1254 = vmatprep.subr.bf16.mxu0 %v1078_v52  ;;  %v1073_v47 = vpop.permute.xlu0 %1072 }
 0x1af   : > { %v1082_v5 = vsel %vm5248_vm13, %v1071_v43, %v1073_v47  ;;  %v1081_v35 = vsel %vm5248_vm13, %v1069_v30, %v1071_v43  ;;  %vm5259_vm13 = vcmask 523264  }
 0x1b1   : > { %1255 = vmatpush1.bf16.msra.mxu0 %v1077_v58 }
 0x1b2   : > { %v1108_v8 = vpop.permute.xlu1 %1107  ;;  %1256 = vmatprep.subr.bf16.mxu0 %v1080_v6  ;;  %v1106_v33 = vpop.permute.xlu0 %1105 }
 0x1b3   : > { %v1129_v12 = vsel %vm5249_vm15, %v1106_v33, %v1108_v8 }
 0x1b5   : > { %1257 = vmatpush1.bf16.msra.mxu0 %v1079_v34 }
 0x1b6   : > { %v1112_v7 = vpop.permute.xlu1 %1111  ;;  %1258 = vmatprep.subr.bf16.mxu0 %v1082_v5  ;;  %v1104_v9 = vpop.permute.xlu0 %1103 }
 0x1b7   : > { %v1128_v18 = vsel %vm5249_vm15, %v1104_v9, %v1106_v33 }
 0x1b9   : > { %1259 = vmatpush1.bf16.msra.mxu0 %v1081_v35 }
 0x1ba   : > { %v1110_v14 = vpop.permute.xlu1 %1109  ;;  %1271 = vmatprep.subr.bf16.mxu0 %v1129_v12  ;;  %v1114_v16 = vpop.permute.xlu0 %1113 }
 0x1bb   : > { %v1131_v19 = vsel %vm5249_vm15, %v1112_v7, %v1114_v16  ;;  %v1130_v15 = vsel %vm5249_vm15, %v1110_v14, %v1112_v7 }
 0x1bc   : > { %1261 = vmatmul.mubr.bf16.vlgmr.msra.gmra.mrb[0].mxu0 %v3333_v36 }
 0x1bd   : > { %1272 = vmatpush1.bf16.msra.mxu0 %v1128_v18  ;;  %1303 = vmatprep.mubr.bf16.mxu0 %v3510_v1 }
 0x1be   : > { %v1120_v37 = vpop.permute.xlu1 %1119  ;;  %1273 = vmatprep.subr.bf16.mxu0 %v1131_v19  ;;  %v1118_v13 = vpop.permute.xlu0 %1117 }
 0x1bf   : > { %v1133_v22 = vsel %vm5249_vm15, %v1118_v13, %v1120_v37 }
 0x1c1   : > { %1274 = vmatpush1.bf16.msra.mxu0 %v1130_v15 }
 0x1c2   : > { %v1124_v21 = vpop.permute.xlu1 %1123  ;;  %1275 = vmatprep.subr.bf16.mxu0 %v1133_v22  ;;  %v1116_v38 = vpop.permute.xlu0 %1115  ;;  %v3339_v22 = vld [vmem:[%s5215_s4 + $0x4] ss:$8 sps:$4 sm:$0xff]  }
 0x1c3   : > { %v1132_v26 = vsel %vm5249_vm15, %v1116_v38, %v1118_v13 }
 0x1c5   : > { %1276 = vmatpush1.bf16.msra.mxu0 %v1132_v26 }
 0x1c6   : > { %v1122_v41 = vpop.permute.xlu1 %1121  ;;  %v1126_v27 = vpop.permute.xlu0 %1125 }
 0x1c7   : > { %v1134_v42 = vsel %vm5249_vm15, %v1122_v41, %v1124_v21  ;;  %v1135_v31 = vsel %vm5249_vm15, %v1124_v21, %v1126_v27  ;;  %v1458_v27 = vld [vmem:[%s5216_s5] sm:$0xff] }
 0x1c8   : > { %1277 = vmatprep.subr.bf16.mxu0 %v1135_v31  ;;  %v1548_v31 = vld [vmem:[%s5218_s7] sm:$0xff] }
 0x1c9   : > { %1278 = vmatpush1.bf16.msra.mxu0 %v1134_v42  ;;  %v1459_v42 = vld [vmem:[%s5216_s5 + $0x8] sm:$0xff] }
 0x1cc   : > { %3126 = vmatmul.mubr.msk.bf16.vlgmr.msra.gmra.mrb[0].mxu0 %vm5259_vm13, %v3336_v54  ;;  %vm5294_vm13 = vcmp.ne.s16.totalorder %v3971_v55, 0  ;;  %v1549_v54 = vld [vmem:[%s5218_s7 + $0x8] sm:$0xff] }
 0x1cd   : > { %2563 = vmatprep.mubr.bf16.mxu0 %v3510_v1 }
 0x1d7   : > { %v1149_v60 = vpop.permute.xlu0 %1148  ;;  %v1154_v61 = vpop.permute.xlu1 %1153 }
 0x29f   : > { %v1305_v46 = vpop.f32.mrb[0].mxu0 }
 0x2a0   : > { %v3250_v48 = vadd.f32 %v1305_v46, %v1149_v60  ;;  %v1307_v59 = vpop.f32.mrb[1].mxu0  ;;  %v1551_v46 = vld [vmem:[%s5218_s7 + $0x18] sm:$0xff] }
 0x2a1   : > { %v3251_v44 = vadd.f32 %v1307_v59, %v1149_v60  ;;  %v1309_v56 = vpop.f32.mrb[2].mxu0  ;;  %v1550_v60 = vld [vmem:[%s5218_s7 + $0x10] sm:$0xff] }
 0x2a2   : > { %v1318_v0 = vmul.f32 0.01, %v3250_v48  ;;  %v3252_v51 = vadd.f32 %v1309_v56, %v1154_v61  ;;  %v1311_v62 = vpop.f32.mrb[3].mxu0  ;;  %vm1314_vm15 = vcmp.gt.f32.partialorder %v3250_v48, 0.0  ;;  %v1554_v59 = vld [vmem:[%s5218_s7 + $0x30] sm:$0xff] }
 0x2a3   : > { %v1319_v53 = vmul.f32 0.01, %v3251_v44  ;;  %v3253_v50 = vadd.f32 %v1311_v62, %v1154_v61  ;;  %vm1315_vm1 = vcmp.gt.f32.partialorder %v3251_v44, 0.0  ;;  %v1552_v61 = vld [vmem:[%s5218_s7 + $0x20] sm:$0xff] }
 0x2a4   : > { %vm1316_vm2 = vcmp.gt.f32.partialorder %v3252_v51, 0.0  ;;  %v1320_v4 = vmul.f32 0.01, %v3252_v51  ;;  %v1322_v23 = vsel %vm1314_vm15, %v3250_v48, %v1318_v0  ;;  %vm5286_vm15 = vcmp.ne.s16.totalorder %v3907_v29, 0  ;;  %v1553_v48 = vld [vmem:[%s5218_s7 + $0x28] sm:$0xff] }
 0x2a5   : > { %vm1317_vm3 = vcmp.gt.f32.partialorder %v3253_v50, 0.0  ;;  %v1321_v43 = vmul.f32 0.01, %v3253_v50  ;;  %v1323_v52 = vsel %vm1315_vm1, %v3251_v44, %v1319_v53  ;;  %vm5290_vm1 = vcmp.ne.s16.totalorder %v3959_v49, 0  ;;  %v1555_v44 = vld [vmem:[%s5218_s7 + $0x38] sm:$0xff] }
 0x2a6   : > { %v1324_v24 = vsel %vm1316_vm2, %v3252_v51, %v1320_v4  ;;  %vm5288_vm2 = vcmp.ne.s16.totalorder %v3919_v32, 0 }
 0x2a7   : > { %v1328_v30 = vpack.c.bf16 %v1324_v24, %v1322_v23  ;;  %v1325_v47 = vsel %vm1317_vm3, %v3253_v50, %v1321_v43  ;;  %vm5289_vm3 = vcmp.ne.s16.totalorder %v3986_v63, 0 }
 0x2a8   : > { %v1329_v58 = vpack.c.bf16 %v1325_v47, %v1323_v52 }
 0x2a9   : > { %1332 = vrot.lane.b32.xlu1 %v1328_v30, %s5257_s18 }
 0x2aa   : > { %1334 = vrot.lane.b32.xlu0 %v1329_v58, %s5257_s18  ;;  %s5315_s18 = smov 17  }
 0x31b   : > { %v1333_v6 = vpop.permute.xlu1 %1332 }
 0x31c   : > { %v1339_v8 = vsel %vm570_vm6, 0, %v1333_v6  ;;  %v1335_v33 = vpop.permute.xlu0 %1334 }
 0x31d   : > { %v1336_v34 = vsel %vm570_vm6, %v1333_v6, %v1335_v33  ;;  %1399 = vrot.lane.b32.xlu0 %v1339_v8, %s5253_s28  ;;  %1363 = vrot.lane.b32.xlu1 %v1339_v8, %s5255_s27  ;;  %v1344_v5 = vsel %vm619_vm8, %v1339_v8, 0  ;;  %v1342_v7 = vsel %vm570_vm6, %v1335_v33, 0  ;;  %v1346_v9 = vsel %vm649_vm10, %v1339_v8, 0 }
 0x31e   : > { %3129 = vmatprep.subr.msk.bf16.mxu1 %vm620_vm7, %v1336_v34  ;;  %v1349_v35 = vsel %vm670_vm12, %v1339_v8, 0  ;;  %v1352_v36 = vsel %vm691_vm4, %v1339_v8, 0  ;;  %v1347_v12 = vsel %vm650_vm14, %v1336_v34, 0  ;;  %v1348_v14 = vsel %vm651_vm9, %v1342_v7, 0 }
 0x31f   : > { %1484 = vmatpush1.bf16.msra.mxu1 %v1344_v5  ;;  %v1351_v16 = vsel %vm672_vm11, %v1342_v7, 0  ;;  %v1350_v18 = vsel %vm671_vm0, %v1336_v34, 0  ;;  %v1355_v19 = vsel %vm5265_vm5, %v1339_v8, 0  ;;  %v1354_v37 = vsel %vm5286_vm15, %v1342_v7, 0 }
 0x320   : > { %v1353_v13 = vsel %vm5288_vm2, %v1336_v34, 0  ;;  %v1356_v15 = vsel %vm5289_vm3, %v1336_v34, 0  ;;  %v1357_v21 = vsel %vm5290_vm1, %v1342_v7, 0  ;;  %vm5291_vm15 = vcmask 130048  }
 0x321   : > { %1367 = vrot.lane.b32.xlu0 %v1342_v7, %s5255_s27  ;;  %1365 = vrot.lane.b32.xlu1 %v1336_v34, %s5255_s27  ;;  %vm5292_vm2 = vcmp.ne.s16.totalorder %v4101_v17, 0  ;;  %vm5293_vm3 = vcmp.ne.s16.totalorder %v3973_v57, 0  ;;  %v1358_v41 = vsel %vm5294_vm13, %v1339_v8, 0  ;;  %vm5295_vm13 = vcmask 1039360   ;;  %s5316_s27 = smov 127  }
 0x322   : > { %3130 = vmatprep.mubr.msk.bf16.mxu1 %vm5291_vm15, %v3339_v22  ;;  %v1359_v38 = vsel %vm5292_vm2, %v1336_v34, 0  ;;  %v1360_v26 = vsel %vm5293_vm3, %v1342_v7, 0  ;;  %vm5296_vm1 = vmmov %vm5295_vm13  ;;  %vm5297_vm15 = vcmask 1031168   ;;  %vm5299_vm3 = vcmask 916480  }
 0x323   : > { %vm5298_vm2 = vmmov %vm5297_vm15 }
 0x325   : > { %1376 = vrot.lane.b32.xlu0 %v1346_v9, %s5282_s19  ;;  %1389 = vrot.lane.b32.xlu1 %v1349_v35, %s5283_s22 }
 0x329   : > { %1401 = vrot.lane.b32.xlu0 %v1336_v34, %s5253_s28  ;;  %1403 = vrot.lane.b32.xlu1 %v1342_v7, %s5253_s28  ;;  %s5287_s28 = smov 95  }
 0x32d   : > { %1412 = vrot.lane.b32.xlu1 %v1352_v36, %s5284_s23  ;;  %1378 = vrot.lane.b32.xlu0 %v1347_v12, %s5282_s19 }
 0x331   : > { %1380 = vrot.lane.b32.xlu1 %v1348_v14, %s5282_s19  ;;  %1393 = vrot.lane.b32.xlu0 %v1351_v16, %s5283_s22 }
 0x335   : > { %1391 = vrot.lane.b32.xlu1 %v1350_v18, %s5283_s22  ;;  %1425 = vrot.lane.b32.xlu0 %v1355_v19, %s5285_s25 }
 0x339   : > { %1437 = vrot.lane.b32.xlu1 %v1336_v34, %s5287_s28  ;;  %1416 = vrot.lane.b32.xlu0 %v1354_v37, %s5284_s23 }
 0x33d   : > { %1414 = vrot.lane.b32.xlu1 %v1353_v13, %s5284_s23  ;;  %1427 = vrot.lane.b32.xlu0 %v1356_v15, %s5285_s25 }
 0x341   : > { %1429 = vrot.lane.b32.xlu1 %v1357_v21, %s5285_s25  ;;  %1439 = vrot.lane.b32.xlu0 %v1342_v7, %s5287_s28 }
 0x345   : > { %1435 = vrot.lane.b32.xlu1 %v1339_v8, %s5287_s28  ;;  %1450 = vrot.lane.b32.xlu0 %v1359_v38, %s5261_s24 }
 0x349   : > { %1452 = vrot.lane.b32.xlu1 %v1360_v26, %s5261_s24  ;;  %1448 = vrot.lane.b32.xlu0 %v1358_v41, %s5261_s24 }
 0x34d   : > { %1462 = vperm.xlu1 %3329, %v1458_v27   ;;  %1467 = vperm.xlu0 %3328, %v1459_v42  }
 0x351   : > { %1558 = vperm.xlu1 %3329, %v1548_v31   ;;  %1563 = vperm.xlu0 %3328, %v1549_v54  }
 0x355   : > { %1568 = vperm.xlu1 %3329, %v1550_v60   ;;  %1573 = vperm.xlu0 %3328, %v1551_v46   ;;  %v3337_v60 = vld [vmem:[%s5215_s4] ss:$8 sps:$4 sm:$0xff]  }
 0x359   : > { %1578 = vperm.xlu1 %3329, %v1552_v61   ;;  %1583 = vperm.xlu0 %3328, %v1553_v48  }
 0x35d   : > { %1588 = vperm.xlu1 %3329, %v1554_v59   ;;  %1593 = vperm.xlu0 %3328, %v1555_v44  }
 0x38f   : > { %v1400_v56 = vpop.permute.xlu0 %1399  ;;  %v1364_v0 = vpop.permute.xlu1 %1363 }
 0x393   : > { %v1368_v51 = vpop.permute.xlu0 %1367  ;;  %v1366_v62 = vpop.permute.xlu1 %1365 }
 0x394   : > { %v1370_v53 = vsel %vm5295_vm13, %v1366_v62, %v1368_v51  ;;  %v1369_v50 = vsel %vm5296_vm1, %v1364_v0, %v1366_v62  ;;  %vm5300_vm13 = vmmov %vm5299_vm3  ;;  %vm5301_vm1 = vcmask 908288  }
 0x395   : > { %1485 = vmatprep.subr.bf16.mxu1 %v1370_v53  ;;  %vm5302_vm5 = vmmov %vm5301_vm1 }
 0x396   : > { %1486 = vmatpush1.bf16.msra.mxu1 %v1369_v50 }
 0x397   : > { %v1377_v4 = vpop.permute.xlu0 %1376  ;;  %v1390_v43 = vpop.permute.xlu1 %1389 }
 0x39b   : > { %v1402_v23 = vpop.permute.xlu0 %1401  ;;  %v1404_v24 = vpop.permute.xlu1 %1403 }
 0x39c   : > { %v1406_v9 = vsel %vm5301_vm1, %v1402_v23, %v1404_v24  ;;  %v1405_v12 = vsel %vm5302_vm5, %v1400_v56, %v1402_v23  ;;  %vm5307_vm1 = vcmask 777216  }
 0x39d   : > { %vm5308_vm5 = vmmov %vm5307_vm1 }
 0x39f   : > { %v1413_v52 = vpop.permute.xlu1 %1412  ;;  %v1379_v30 = vpop.permute.xlu0 %1378 }
 0x3a0   : > { %v1382_v8 = vsel %vm5298_vm2, %v1377_v4, %v1379_v30 }
 0x3a3   : > { %v1381_v47 = vpop.permute.xlu1 %1380  ;;  %v1394_v58 = vpop.permute.xlu0 %1393 }
 0x3a4   : > { %v1383_v6 = vsel %vm5297_vm15, %v1379_v30, %v1381_v47  ;;  %vm5303_vm15 = vcmask 900096  }
 0x3a5   : > { %1487 = vmatprep.subr.bf16.mxu1 %v1383_v6  ;;  %vm5304_vm2 = vmmov %vm5303_vm15 }
 0x3a6   : > { %1488 = vmatpush1.bf16.msra.mxu1 %v1382_v8  ;;  %v3340_v8 = vld [vmem:[%s5217_s6] sm:$0xff]  }
 0x3a7   : > { %v1392_v33 = vpop.permute.xlu1 %1391  ;;  %v1426_v34 = vpop.permute.xlu0 %1425 }
 0x3a8   : > { %v1396_v5 = vsel %vm5299_vm3, %v1392_v33, %v1394_v58  ;;  %v1395_v7 = vsel %vm5300_vm13, %v1390_v43, %v1392_v33  ;;  %vm5305_vm3 = vcmask 785408   ;;  %v3341_v33 = vld [vmem:[%s5217_s6 + $0x8] sm:$0xff]  }
 0x3a9   : > { %1489 = vmatprep.subr.bf16.mxu1 %v1396_v5  ;;  %vm5306_vm13 = vmmov %vm5305_vm3  ;;  %v3343_v5 = vld [vmem:[%s5217_s6 + $0x18] sm:$0xff]  }
 0x3aa   : > { %1490 = vmatpush1.bf16.msra.mxu1 %v1395_v7 }
 0x3ab   : > { %v1438_v35 = vpop.permute.xlu1 %1437  ;;  %1491 = vmatprep.subr.bf16.mxu1 %v1406_v9  ;;  %v1417_v36 = vpop.permute.xlu0 %1416 }
 0x3ae   : > { %1492 = vmatpush1.bf16.msra.mxu1 %v1405_v12 }
 0x3af   : > { %v1415_v14 = vpop.permute.xlu1 %1414  ;;  %v1428_v16 = vpop.permute.xlu0 %1427 }
 0x3b0   : > { %v1419_v18 = vsel %vm5303_vm15, %v1415_v14, %v1417_v36  ;;  %v1418_v19 = vsel %vm5304_vm2, %v1413_v52, %v1415_v14  ;;  %v1431_v22 = vsel %vm5306_vm13, %v1426_v34, %v1428_v16  ;;  %vm5309_vm15 = vcmask 769024   ;;  %v3342_v34 = vld [vmem:[%s5217_s6 + $0x10] sm:$0xff]  }
 0x3b1   : > { %1493 = vmatprep.subr.bf16.mxu1 %v1419_v18  ;;  %vm5310_vm2 = vmmov %vm5309_vm15 }
 0x3b2   : > { %1494 = vmatpush1.bf16.msra.mxu1 %v1418_v19 }
 0x3b3   : > { %v1430_v37 = vpop.permute.xlu1 %1429  ;;  %v1440_v13 = vpop.permute.xlu0 %1439 }
 0x3b4   : > { %v1432_v15 = vsel %vm5305_vm3, %v1428_v16, %v1430_v37  ;;  %v1442_v21 = vsel %vm5307_vm1, %v1438_v35, %v1440_v13 }
 0x3b5   : > { %1495 = vmatprep.subr.bf16.mxu1 %v1432_v15 }
 0x3b6   : > { %1496 = vmatpush1.bf16.msra.mxu1 %v1431_v22 }
 0x3b7   : > { %v1436_v38 = vpop.permute.xlu1 %1435  ;;  %1497 = vmatprep.subr.bf16.mxu1 %v1442_v21  ;;  %v1451_v26 = vpop.permute.xlu0 %1450 }
 0x3b8   : > { %v1441_v41 = vsel %vm5308_vm5, %v1436_v38, %v1438_v35 }
 0x3ba   : > { %1498 = vmatpush1.bf16.msra.mxu1 %v1441_v41 }
 0x3bb   : > { %v1453_v27 = vpop.permute.xlu1 %1452  ;;  %v1449_v42 = vpop.permute.xlu0 %1448 }
 0x3bc   : > { %v1455_v31 = vsel %vm5309_vm15, %v1451_v26, %v1453_v27  ;;  %v1454_v54 = vsel %vm5310_vm2, %v1449_v42, %v1451_v26  ;;  %vm5311_vm15 = vcmask 130048  }
 0x3bd   : > { %1499 = vmatprep.subr.bf16.mxu1 %v1455_v31  ;;  %vm5312_vm2 = vmmov %vm5311_vm15 }
 0x3be   : > { %1500 = vmatpush1.bf16.msra.mxu1 %v1454_v54 }
 0x3c1   : > { %1516 = vmatmul.mubr.bf16.vlgmr.msra.gmra.mrb[0].mxu1 %v3337_v60 }
 0x3c2   : > { %1660 = vmatprep.mubr.bf16.mxu1 %v3510_v1 }
 0x3cc   : > { %v1463_v46 = vpop.permute.xlu1 %1462  ;;  %v1468_v44 = vpop.permute.xlu0 %1467 }
 0x3d0   : > { %v1559_v7 = vpop.permute.xlu1 %1558  ;;  %v1564_v12 = vpop.permute.xlu0 %1563 }
 0x3d4   : > { %v1569_v38 = vpop.permute.xlu1 %1568  ;;  %v1574_v42 = vpop.permute.xlu0 %1573 }
 0x494   : > { %v1517_v61 = vpop.f32.mrb[0].mxu1 }
 0x495   : > { %v1518_v48 = vadd.f32 %v1517_v61, %v1463_v46  ;;  %v1519_v59 = vpop.f32.mrb[1].mxu1 }
 0x496   : > { %v1520_v56 = vadd.f32 %v1519_v59, %v1463_v46  ;;  %v1521_v0 = vpop.f32.mrb[2].mxu1 }
 0x497   : > { %v1530_v51 = vmul.f32 0.01, %v1518_v48  ;;  %v1522_v62 = vadd.f32 %v1521_v0, %v1468_v44  ;;  %v1523_v53 = vpop.f32.mrb[3].mxu1  ;;  %vm1526_vm3 = vcmp.gt.f32.partialorder %v1518_v48, 0.0 }
 0x498   : > { %v1531_v50 = vmul.f32 0.01, %v1520_v56  ;;  %v1524_v4 = vadd.f32 %v1523_v53, %v1468_v44  ;;  %vm1527_vm13 = vcmp.gt.f32.partialorder %v1520_v56, 0.0 }
 0x499   : > { %vm1528_vm1 = vcmp.gt.f32.partialorder %v1522_v62, 0.0  ;;  %v1532_v43 = vmul.f32 0.01, %v1522_v62  ;;  %v1534_v24 = vsel %vm1526_vm3, %v1518_v48, %v1530_v51  ;;  %vm5313_vm3 = vmmov %vm5312_vm2 }
 0x49a   : > { %vm1529_vm5 = vcmp.gt.f32.partialorder %v1524_v4, 0.0  ;;  %v1533_v23 = vmul.f32 0.01, %v1524_v4  ;;  %v1535_v47 = vsel %vm1527_vm13, %v1520_v56, %v1531_v50  ;;  %vm5314_vm13 = vmmov %vm5312_vm2 }
 0x49b   : > { %v1536_v52 = vsel %vm1528_vm1, %v1522_v62, %v1532_v43  ;;  %v1579_v62 = vpop.permute.xlu1 %1578  ;;  %vm5318_vm1 = vcmp.ne.s16.totalorder %v3907_v29, 0 }
 0x49c   : > { %v1546_v30 = vpack.c.bf16 %v1536_v52, %v1534_v24  ;;  %v1537_v58 = vsel %vm1529_vm5, %v1524_v4, %v1533_v23  ;;  %vm5321_vm5 = vmmov %vm5318_vm1 }
 0x49d   : > { %v1547_v6 = vpack.c.bf16 %v1537_v58, %v1535_v47 }
 0x49f   : > { %1628 = vmatprep.subr.bf16.mxu1 %v1547_v6 }
 0x4a0   : > { %1629 = vmatpush1.bf16.msra.mxu1 %v1546_v30  ;;  %v1584_v30 = vpop.permute.xlu0 %1583 }
 0x4a3   : > { %3135 = vmatmul.mubr.msk.bf16.vlgmr.msra.gmra.mrb[4].mxu1 %vm5311_vm15, %v3340_v8  ;;  %vm5322_vm15 = vmmov %vm5318_vm1 }
 0x4a4   : > { %1670 = vmatprep.mubr.bf16.mxu1 %v3510_v1 }
 0x4ab   : > { %3136 = vmatmul.mubr.msk.bf16.gmra.mrb[8].mxu1 %vm5312_vm2, %v3341_v33  ;;  %vm5329_vm2 = vcmask 1039360  }
 0x4ac   : > { %1680 = vmatprep.mubr.bf16.mxu1 %v3510_v1 }
 0x4b3   : > { %3137 = vmatmul.mubr.msk.bf16.gmra.mrb[12].mxu1 %vm5313_vm3, %v3342_v34  ;;  %vm5330_vm3 = vmmov %vm5329_vm2 }
 0x4b4   : > { %1690 = vmatprep.mubr.bf16.mxu1 %v3510_v1 }
 0x4bb   : > { %3138 = vmatmul.mubr.msk.bf16.gmra.mrb[16].mxu1 %vm5314_vm13, %v3343_v5 }
 0x576   : > { %v1662_v9 = vpop.f32.mrb[4].mxu1 }
 0x577   : > { %v1663_v35 = vadd.f32 %v1662_v9, %v1559_v7  ;;  %v1664_v36 = vpop.f32.mrb[5].mxu1 }
 0x578   : > { %v1665_v14 = vadd.f32 %v1664_v36, %v1559_v7  ;;  %v1666_v16 = vpop.f32.mrb[6].mxu1 }
 0x579   : > { %v3139_v18 = vmul.f32 -1.442695, %v1663_v35  ;;  %v1667_v19 = vadd.f32 %v1666_v16, %v1564_v12  ;;  %v1668_v37 = vpop.f32.mrb[7].mxu1  ;;  %v1589_v16 = vpop.permute.xlu1 %1588 }
 0x57a   : > { %v3140_v13 = vmul.f32 -1.442695, %v1665_v14  ;;  %v1669_v15 = vadd.f32 %v1668_v37, %v1564_v12 }
 0x57b   : > { %3358 = vpow2.f32 %v3139_v18  ;;  %v3141_v22 = vmul.f32 -1.442695, %v1667_v19 }
 0x57c   : > { %3360 = vpow2.f32 %v3140_v13  ;;  %v3142_v21 = vmul.f32 -1.442695, %v1669_v15 }
 0x57d   : > { %3362 = vpow2.f32 %v3141_v22 }
 0x57e   : > { %3364 = vpow2.f32 %v3142_v21  ;;  %v1672_v26 = vpop.f32.mrb[8].mxu1 }
 0x57f   : > { %v1673_v41 = vadd.f32 %v1672_v26, %v1569_v38  ;;  %v1674_v27 = vpop.f32.mrb[9].mxu1 }
 0x580   : > { %v1675_v31 = vadd.f32 %v1674_v27, %v1569_v38  ;;  %v1676_v54 = vpop.f32.mrb[10].mxu1  ;;  %v1594_v38 = vpop.permute.xlu0 %1593 }
 0x581   : > { %v3143_v60 = vmul.f32 -1.442695, %v1673_v41  ;;  %v1677_v46 = vadd.f32 %v1676_v54, %v1574_v42  ;;  %v1678_v61 = vpop.f32.mrb[11].mxu1 }
 0x582   : > { %v3144_v48 = vmul.f32 -1.442695, %v1675_v31  ;;  %v1679_v59 = vadd.f32 %v1678_v61, %v1574_v42 }
 0x583   : > { %3366 = vpow2.f32 %v3143_v60  ;;  %v3145_v44 = vmul.f32 -1.442695, %v1677_v46 }
 0x584   : > { %3368 = vpow2.f32 %v3144_v48  ;;  %v3146_v56 = vmul.f32 -1.442695, %v1679_v59 }
 0x585   : > { %v3359_v0 = vpop.eup %3358  ;;  %3370 = vpow2.f32 %v3145_v44 }
 0x586   : > { %v3361_v51 = vpop.eup %3360  ;;  %v1749_v53 = vadd.f32 1.0, %v3359_v0  ;;  %3372 = vpow2.f32 %v3146_v56  ;;  %v1682_v50 = vpop.f32.mrb[12].mxu1 }
 0x587   : > { %v3363_v4 = vpop.eup %3362  ;;  %v1750_v43 = vadd.f32 1.0, %v3361_v51  ;;  %v1683_v23 = vadd.f32 %v1682_v50, %v1579_v62  ;;  %v1684_v24 = vpop.f32.mrb[13].mxu1  ;;  %v3455_v50 = vld [vmem:[%s3639_s26 + $0x10] sm:$0xff] }
 0x588   : > { %v3365_v52 = vpop.eup %3364  ;;  %3374 = vrcp.f32 %v1749_v53  ;;  %v1751_v47 = vadd.f32 1.0, %v3363_v4  ;;  %v1685_v58 = vadd.f32 %v1684_v24, %v1579_v62  ;;  %v1686_v6 = vpop.f32.mrb[14].mxu1  ;;  %v3454_v62 = vld [vmem:[%s3639_s26] sm:$0xff] }
 0x589   : > { %3376 = vrcp.f32 %v1750_v43  ;;  %v1752_v8 = vadd.f32 1.0, %v3365_v52  ;;  %v3147_v33 = vmul.f32 -1.442695, %v1683_v23  ;;  %v1687_v34 = vadd.f32 %v1686_v6, %v1584_v30  ;;  %v1688_v5 = vpop.f32.mrb[15].mxu1  ;;  %v3456_v23 = vld [vmem:[%s3639_s26 + $0x8] sm:$0xff]  ;;  %v3457_v52 = vld [vmem:[%s3639_s26 + $0x18] sm:$0xff] }
 0x58a   : > { %3378 = vrcp.f32 %v1751_v47  ;;  %v3148_v7 = vmul.f32 -1.442695, %v1685_v58  ;;  %v1689_v9 = vadd.f32 %v1688_v5, %v1584_v30 }
 0x58b   : > { %3380 = vrcp.f32 %v1752_v8  ;;  %v3149_v35 = vmul.f32 -1.442695, %v1687_v34 }
 0x58c   : > { %3382 = vpow2.f32 %v3147_v33  ;;  %v3150_v36 = vmul.f32 -1.442695, %v1689_v9 }
 0x58d   : > { %v3367_v12 = vpop.eup %3366  ;;  %3384 = vpow2.f32 %v3148_v7 }
 0x58e   : > { %v3369_v14 = vpop.eup %3368  ;;  %v1753_v18 = vadd.f32 1.0, %v3367_v12  ;;  %3386 = vpow2.f32 %v3149_v35  ;;  %v1692_v19 = vpop.f32.mrb[16].mxu1 }
 0x58f   : > { %v3371_v37 = vpop.eup %3370  ;;  %v1754_v13 = vadd.f32 1.0, %v3369_v14  ;;  %3388 = vpow2.f32 %v3150_v36  ;;  %v1693_v15 = vadd.f32 %v1692_v19, %v1589_v16  ;;  %v1694_v22 = vpop.f32.mrb[17].mxu1  ;;  %v3459_v19 = vld [vmem:[%s3639_s26 + $0x30] sm:$0xff] }
 0x590   : > { %v3373_v21 = vpop.eup %3372  ;;  %3390 = vrcp.f32 %v1753_v18  ;;  %v1755_v26 = vadd.f32 1.0, %v3371_v37  ;;  %v1695_v41 = vadd.f32 %v1694_v22, %v1589_v16  ;;  %v1696_v27 = vpop.f32.mrb[18].mxu1  ;;  %v3458_v16 = vld [vmem:[%s3639_s26 + $0x20] sm:$0xff] }
 0x591   : > { %3392 = vrcp.f32 %v1754_v13  ;;  %v1756_v42 = vadd.f32 1.0, %v3373_v21  ;;  %v3151_v31 = vmul.f32 -1.442695, %v1693_v15  ;;  %v1697_v54 = vadd.f32 %v1696_v27, %v1594_v38  ;;  %v1698_v60 = vpop.f32.mrb[19].mxu1  ;;  %v3460_v15 = vld [vmem:[%s3639_s26 + $0x28] sm:$0xff]  ;;  %v3461_v21 = vld [vmem:[%s3639_s26 + $0x38] sm:$0xff] }
 0x592   : > { %v3375_v46 = vpop.eup %3374  ;;  %3394 = vrcp.f32 %v1755_v26  ;;  %v3152_v61 = vmul.f32 -1.442695, %v1695_v41  ;;  %v1699_v48 = vadd.f32 %v1698_v60, %v1594_v38 }
 0x593   : > { %v3377_v59 = vpop.eup %3376  ;;  %3396 = vrcp.f32 %v1756_v42  ;;  %v3153_v44 = vmul.f32 -1.442695, %v1697_v54  ;;  %v1797_v53 = vmul.f32 %v3454_v62, %v3375_v46  ;;  %v3463_v62 = vld [vmem:[%s3647_s15 + $0x10] sm:$0xff] }
 0x594   : > { %v3379_v56 = vpop.eup %3378  ;;  %3398 = vpow2.f32 %v3151_v31  ;;  %v3154_v0 = vmul.f32 -1.442695, %v1699_v48  ;;  %v1798_v24 = vmul.f32 %v3456_v23, %v3377_v59 }
 0x595   : > { %v3381_v51 = vpop.eup %3380  ;;  %3400 = vpow2.f32 %v3152_v61  ;;  %v1799_v4 = vmul.f32 %v3455_v50, %v3379_v56  ;;  %v3464_v50 = vld [vmem:[%s3647_s15 + $0x8] sm:$0xff] }
 0x596   : > { %v3383_v43 = vpop.eup %3382  ;;  %3402 = vpow2.f32 %v3153_v44  ;;  %v1800_v30 = vmul.f32 %v3457_v52, %v3381_v51 }
 0x597   : > { %v3385_v47 = vpop.eup %3384  ;;  %v1757_v58 = vadd.f32 1.0, %v3383_v43  ;;  %3404 = vpow2.f32 %v3154_v0  ;;  %v1825_v6 = vpack.c.bf16 %v1799_v4, %v1797_v53  ;;  %v3462_v0 = vld [vmem:[%s3647_s15] sm:$0xff]  ;;  %v3465_v43 = vld [vmem:[%s3647_s15 + $0x18] sm:$0xff] }
 0x598   : > { %v3387_v8 = vpop.eup %3386  ;;  %v1758_v33 = vadd.f32 1.0, %v3385_v47  ;;  %v1826_v34 = vpack.c.bf16 %v1800_v30, %v1798_v24 }
 0x599   : > { %v3389_v5 = vpop.eup %3388  ;;  %3406 = vrcp.f32 %v1757_v58  ;;  %v1759_v7 = vadd.f32 1.0, %v3387_v8  ;;  %1841 = vrot.lane.b32.xlu1 %v1825_v6, %s5315_s18  ;;  %v3466_v8 = vld [vmem:[%s3647_s15 + $0x20] sm:$0xff] }
 0x59a   : > { %v3391_v9 = vpop.eup %3390  ;;  %3408 = vrcp.f32 %v1758_v33  ;;  %v1760_v35 = vadd.f32 1.0, %v3389_v5  ;;  %1843 = vrot.lane.b32.xlu0 %v1826_v34, %s5315_s18  ;;  %v3467_v34 = vld [vmem:[%s3647_s15 + $0x30] sm:$0xff] }
 0x59b   : > { %v3393_v36 = vpop.eup %3392  ;;  %3410 = vrcp.f32 %v1759_v7  ;;  %v1801_v18 = vmul.f32 %v3458_v16, %v3391_v9  ;;  %v3468_v7 = vld [vmem:[%s3647_s15 + $0x28] sm:$0xff] }
 0x59c   : > { %v3395_v12 = vpop.eup %3394  ;;  %3412 = vrcp.f32 %v1760_v35  ;;  %v1802_v22 = vmul.f32 %v3460_v15, %v3393_v36  ;;  %v3469_v35 = vld [vmem:[%s3647_s15 + $0x38] sm:$0xff] }
 0x59d   : > { %v3397_v14 = vpop.eup %3396  ;;  %v1803_v37 = vmul.f32 %v3459_v19, %v3395_v12 }
 0x59e   : > { %v3399_v13 = vpop.eup %3398  ;;  %v1804_v38 = vmul.f32 %v3461_v21, %v3397_v14 }
 0x59f   : > { %v3401_v26 = vpop.eup %3400  ;;  %v1761_v41 = vadd.f32 1.0, %v3399_v13  ;;  %v1827_v27 = vpack.c.bf16 %v1803_v37, %v1801_v18 }
 0x5a0   : > { %v3403_v42 = vpop.eup %3402  ;;  %v1762_v31 = vadd.f32 1.0, %v3401_v26  ;;  %v1828_v54 = vpack.c.bf16 %v1804_v38, %v1802_v22 }
 0x5a1   : > { %v3405_v60 = vpop.eup %3404  ;;  %3414 = vrcp.f32 %v1761_v41  ;;  %v1763_v46 = vadd.f32 1.0, %v3403_v42  ;;  %1845 = vrot.lane.b32.xlu1 %v1827_v27, %s5315_s18 }
 0x5a2   : > { %3416 = vrcp.f32 %v1762_v31  ;;  %v1764_v61 = vadd.f32 1.0, %v3405_v60  ;;  %1847 = vrot.lane.b32.xlu0 %v1828_v54, %s5315_s18 }
 0x5a3   : > { %v3407_v48 = vpop.eup %3406  ;;  %3418 = vrcp.f32 %v1763_v46 }
 0x5a4   : > { %v3409_v59 = vpop.eup %3408  ;;  %3420 = vrcp.f32 %v1764_v61  ;;  %v1805_v51 = vmul.f32 %v3462_v0, %v3407_v48 }
 0x5a5   : > { %v3411_v44 = vpop.eup %3410  ;;  %v1806_v4 = vmul.f32 %v3464_v50, %v3409_v59 }
 0x5a6   : > { %v3413_v56 = vpop.eup %3412  ;;  %v1807_v53 = vmul.f32 %v3463_v62, %v3411_v44 }
 0x5a7   : > { %v1808_v23 = vmul.f32 %v3465_v43, %v3413_v56 }
 0x5a8   : > { %v1829_v24 = vpack.c.bf16 %v1807_v53, %v1805_v51 }
 0x5a9   : > { %v1830_v52 = vpack.c.bf16 %v1808_v23, %v1806_v4 }
 0x5aa   : > { %1849 = vrot.lane.b32.xlu1 %v1829_v24, %s5315_s18 }
 0x5ab   : > { %v3415_v30 = vpop.eup %3414  ;;  %1851 = vrot.lane.b32.xlu0 %v1830_v52, %s5315_s18 }
 0x5ac   : > { %v3417_v47 = vpop.eup %3416  ;;  %v1809_v33 = vmul.f32 %v3466_v8, %v3415_v30 }
 0x5ad   : > { %v3419_v58 = vpop.eup %3418  ;;  %v1810_v9 = vmul.f32 %v3468_v7, %v3417_v47 }
 0x5ae   : > { %v3421_v6 = vpop.eup %3420  ;;  %v1811_v5 = vmul.f32 %v3467_v34, %v3419_v58 }
 0x5af   : > { %v1812_v36 = vmul.f32 %v3469_v35, %v3421_v6 }
 0x5b0   : > { %v1831_v12 = vpack.c.bf16 %v1811_v5, %v1809_v33 }
 0x5b1   : > { %v1832_v14 = vpack.c.bf16 %v1812_v36, %v1810_v9 }
 0x5b2   : > { %1853 = vrot.lane.b32.xlu1 %v1831_v12, %s5315_s18 }
 0x5b3   : > { %1855 = vrot.lane.b32.xlu0 %v1832_v14, %s5315_s18 }
 0x60b   : > { %v1842_v16 = vpop.permute.xlu1 %1841 }
 0x60c   : > { %v4412_v18 = vsel %vm570_vm6, 0, %v1842_v16  ;;  %v1844_v19 = vpop.permute.xlu0 %1843 }
 0x60d   : > { %v4415_v37 = vsel %vm570_vm6, %v1842_v16, %v1844_v19  ;;  %v4418_v13 = vsel %vm570_vm6, %v1844_v19, 0  ;;  %1965 = vrot.lane.b32.xlu1 %v4412_v18, %s5316_s27  ;;  %v1889_v15 = vsel %vm619_vm8, %v4412_v18, 0  ;;  %v1897_v42 = vsel %vm649_vm10, %v4412_v18, 0 }
 0x60e   : > { %1969 = vrot.lane.b32.xlu0 %v4418_v13, %s5316_s27  ;;  %3165 = vmatprep.subr.msk.bf16.mxu1 %vm620_vm7, %v4415_v37  ;;  %v1899_v41 = vsel %vm651_vm9, %v4418_v13, 0  ;;  %v1911_v31 = vsel %vm672_vm11, %v4418_v13, 0  ;;  %v1909_v60 = vsel %vm670_vm12, %v4412_v18, 0  ;;  %v1923_v48 = vsel %vm5318_vm1, %v4418_v13, 0 }
 0x60f   : > { %2426 = vmatpush1.bf16.msra.mxu1 %v1889_v15  ;;  %v1921_v0 = vsel %vm691_vm4, %v4412_v18, 0  ;;  %v1898_v4 = vsel %vm650_vm14, %v4415_v37, 0  ;;  %v1910_v43 = vsel %vm671_vm0, %v4415_v37, 0 }
 0x611   : > { %2109 = vrot.lane.b32.xlu1 %v4412_v18, %s5317_s0 }
 0x612   : > { %2113 = vrot.lane.b32.xlu0 %v4418_v13, %s5317_s0 }
 0x613   : > { %v1846_v22 = vpop.permute.xlu1 %1845 }
 0x614   : > { %v4435_v21 = vsel %vm570_vm6, 0, %v1846_v22  ;;  %v1848_v38 = vpop.permute.xlu0 %1847 }
 0x615   : > { %v4438_v26 = vsel %vm570_vm6, %v1846_v22, %v1848_v38  ;;  %1967 = vrot.lane.b32.xlu1 %v4415_v37, %s5316_s27  ;;  %v1891_v27 = vsel %vm619_vm8, %v4435_v21, 0  ;;  %v1900_v39 = vsel %vm649_vm10, %v4435_v21, 0  ;;  %v1912_v23 = vsel %vm670_vm12, %v4435_v21, 0 }
 0x616   : > { %2021 = vrot.lane.b32.xlu0 %v1899_v41, %s5282_s19  ;;  %3166 = vmatprep.subr.msk.bf16.mxu1 %vm620_vm7, %v4438_v26  ;;  %v4525_v24 = vsel %vm570_vm6, %v1848_v38, 0  ;;  %v1901_v52 = vsel %vm650_vm14, %v4438_v26, 0  ;;  %v1913_v47 = vsel %vm671_vm0, %v4438_v26, 0  ;;  %v1924_v36 = vsel %vm691_vm4, %v4435_v21, 0 }
 0x617   : > { %2428 = vmatpush1.bf16.msra.mxu1 %v1891_v27  ;;  %v1902_v30 = vsel %vm651_vm9, %v4525_v24, 0  ;;  %v1914_v58 = vsel %vm672_vm11, %v4525_v24, 0  ;;  %v1926_v16 = vsel %vm5322_vm15, %v4525_v24, 0  ;;  %v3346_v27 = vld [vmem:[%s5219_s8 + $0x4] ss:$20 sps:$4 sm:$0xff]   ;;  %vm5339_vm15 = vcmp.ne.s16.totalorder %v3971_v55, 0 }
 0x618   : > { %2457 = vmatprep.mubr.bf16.mxu1 %v3346_v27  ;;  %v2347_v55 = vld [vmem:[%s5220_s9 + $0x10] sm:$0xff] }
 0x619   : > { %2017 = vrot.lane.b32.xlu1 %v1897_v42, %s5282_s19 }
 0x61a   : > { %2073 = vrot.lane.b32.xlu0 %v1911_v31, %s5283_s22 }
 0x61c   : > { %v1850_v54 = vpop.permute.xlu1 %1849 }
 0x61d   : > { %v4464_v46 = vsel %vm570_vm6, 0, %v1850_v54  ;;  %v1852_v61 = vpop.permute.xlu0 %1851  ;;  %2069 = vrot.lane.b32.xlu1 %v1909_v60, %s5283_s22 }
 0x61e   : > { %v4471_v59 = vsel %vm570_vm6, %v1850_v54, %v1852_v61  ;;  %2165 = vrot.lane.b32.xlu0 %v1923_v48, %s5284_s23  ;;  %v1893_v44 = vsel %vm619_vm8, %v4464_v46, 0  ;;  %v4554_v8 = vsel %vm570_vm6, %v1852_v61, 0  ;;  %v1903_v34 = vsel %vm649_vm10, %v4464_v46, 0 }
 0x61f   : > { %3167 = vmatprep.subr.msk.bf16.mxu1 %vm620_vm7, %v4471_v59  ;;  %v1905_v33 = vsel %vm651_vm9, %v4554_v8, 0  ;;  %v1917_v5 = vsel %vm672_vm11, %v4554_v8, 0  ;;  %v1915_v7 = vsel %vm670_vm12, %v4464_v46, 0  ;;  %v1904_v9 = vsel %vm650_vm14, %v4471_v59, 0 }
 0x620   : > { %2430 = vmatpush1.bf16.msra.mxu1 %v1893_v44  ;;  %v1916_v35 = vsel %vm671_vm0, %v4471_v59, 0  ;;  %v1929_v14 = vsel %vm5321_vm5, %v4554_v8, 0  ;;  %v1927_v11 = vsel %vm691_vm4, %v4464_v46, 0  ;;  %vm5338_vm5 = vcmp.ne.s16.totalorder %v3973_v57, 0 }
 0x621   : > { %2111 = vrot.lane.b32.xlu1 %v4415_v37, %s5317_s0 }
 0x622   : > { %1971 = vrot.lane.b32.xlu0 %v4435_v21, %s5316_s27 }
 0x624   : > { %v1854_v56 = vpop.permute.xlu1 %1853 }
 0x625   : > { %v4488_v51 = vsel %vm570_vm6, 0, %v1854_v56  ;;  %v1856_v62 = vpop.permute.xlu0 %1855  ;;  %2161 = vrot.lane.b32.xlu1 %v1921_v0, %s5284_s23 }
 0x626   : > { %v4492_v53 = vsel %vm570_vm6, %v1854_v56, %v1856_v62  ;;  %2115 = vrot.lane.b32.xlu0 %v4435_v21, %s5317_s0  ;;  %v1895_v50 = vsel %vm619_vm8, %v4488_v51, 0  ;;  %v4603_v12 = vsel %vm570_vm6, %v1856_v62, 0  ;;  %v1906_v19 = vsel %vm649_vm10, %v4488_v51, 0 }
 0x627   : > { %3168 = vmatprep.subr.msk.bf16.mxu1 %vm620_vm7, %v4492_v53  ;;  %vm5319_vm7 = vcmp.ne.s16.totalorder %v3919_v32, 0  ;;  %v1918_v22 = vsel %vm670_vm12, %v4488_v51, 0  ;;  %v1908_v3 = vsel %vm651_vm9, %v4603_v12, 0  ;;  %v1907_v38 = vsel %vm650_vm14, %v4492_v53, 0 }
 0x628   : > { %2432 = vmatpush1.bf16.msra.mxu1 %v1895_v50  ;;  %v1922_v40 = vsel %vm5319_vm7, %v4415_v37, 0  ;;  %vm5320_vm8 = vmmov %vm5319_vm7  ;;  %v1930_v41 = vsel %vm691_vm4, %v4488_v51, 0  ;;  %vm5324_vm9 = vcmp.ne.s16.totalorder %v3986_v63, 0  ;;  %vm5325_vm10 = vcmp.ne.s16.totalorder %v3959_v49, 0 }
 0x629   : > { %2019 = vrot.lane.b32.xlu1 %v1898_v4, %s5282_s19  ;;  %v1925_v6 = vsel %vm5320_vm8, %v4438_v26, 0  ;;  %vm5323_vm6 = vmmov %vm5319_vm7  ;;  %v1934_v2 = vsel %vm5324_vm9, %v4415_v37, 0  ;;  %v1935_v20 = vsel %vm5325_vm10, %v4418_v13, 0  ;;  %vm5326_vm12 = vcmp.ne.s16.totalorder %v3957_v45, 0 }
 0x62a   : > { %1973 = vrot.lane.b32.xlu0 %v4438_v26, %s5316_s27  ;;  %v1928_v15 = vsel %vm5323_vm6, %v4471_v59, 0  ;;  %v1933_v31 = vsel %vm5326_vm12, %v4412_v18, 0  ;;  %vm5327_vm14 = vmmov %vm5324_vm9  ;;  %v1920_v48 = vsel %vm672_vm11, %v4603_v12, 0  ;;  %v1919_v44 = vsel %vm671_vm0, %v4492_v53, 0 }
 0x62b   : > { %v1937_v54 = vsel %vm5327_vm14, %v4438_v26, 0  ;;  %vm5328_vm4 = vmmov %vm5325_vm10  ;;  %vm5336_vm8 = vcmp.ne.s16.totalorder %v4101_v17, 0  ;;  %vm5340_vm6 = vcmp.ne.s16.totalorder %v3907_v29, 0  ;;  %v2345_v17 = vld [vmem:[%s5220_s9] sm:$0xff] }
 0x62c   : > { %v1938_v62 = vsel %vm5328_vm4, %v4525_v24, 0  ;;  %vm5331_vm11 = vmmov %vm5326_vm12  ;;  %v1946_v45 = vsel %vm5336_vm8, %v4415_v37, 0 }
 0x62d   : > { %2071 = vrot.lane.b32.xlu1 %v1910_v43, %s5283_s22  ;;  %v1936_v25 = vsel %vm5331_vm11, %v4435_v21, 0  ;;  %vm5332_vm0 = vmmov %vm5324_vm9  ;;  %vm5341_vm9 = vcmp.ne.s16.totalorder %v3919_v32, 0 }
 0x62e   : > { %2023 = vrot.lane.b32.xlu0 %v1900_v39, %s5282_s19  ;;  %v1940_v39 = vsel %vm5332_vm0, %v4471_v59, 0  ;;  %vm5333_vm13 = vmmov %vm5328_vm4 }
 0x62f   : > { %vm5334_vm1 = vmmov %vm5331_vm11  ;;  %vm5348_vm11 = vcmask 916480  }
 0x630   : > { %vm5335_vm7 = vmmov %vm5334_vm1 }
 0x631   : > { %2163 = vrot.lane.b32.xlu1 %v1922_v40, %s5284_s23  ;;  %v1941_v40 = vsel %vm5333_vm13, %v4554_v8, 0  ;;  %vm5342_vm10 = vmmov %vm5329_vm2 }
 0x632   : > { %2075 = vrot.lane.b32.xlu0 %v1912_v23, %s5283_s22  ;;  %vm5343_vm12 = vmmov %vm5329_vm2 }
 0x633   : > { %vm5344_vm14 = vmmov %vm5336_vm8 }
 0x634   : > { %v1949_v29 = vsel %vm5344_vm14, %v4438_v26, 0  ;;  %vm5345_vm4 = vmmov %vm5338_vm5 }
 0x635   : > { %1975 = vrot.lane.b32.xlu1 %v4525_v24, %s5316_s27  ;;  %vm5349_vm0 = vmmov %vm5333_vm13  ;;  %vm5350_vm13 = vcmp.ne.s16.totalorder %v3986_v63, 0 }
 0x636   : > { %2117 = vrot.lane.b32.xlu0 %v4438_v26, %s5317_s0 }
 0x639   : > { %2119 = vrot.lane.b32.xlu1 %v4525_v24, %s5317_s0 }
 0x63a   : > { %2025 = vrot.lane.b32.xlu0 %v1901_v52, %s5282_s19 }
 0x63d   : > { %2027 = vrot.lane.b32.xlu1 %v1902_v30, %s5282_s19  ;;  %v1939_v30 = vsel %vm5334_vm1, %v4464_v46, 0  ;;  %vm5351_vm1 = vmmov %vm5336_vm8 }
 0x63e   : > { %2077 = vrot.lane.b32.xlu0 %v1913_v47, %s5283_s22  ;;  %v1942_v47 = vsel %vm5335_vm7, %v4488_v51, 0  ;;  %vm5352_vm7 = vmmov %vm5345_vm4 }
 0x63f   : > { %v1953_v63 = vsel %vm5352_vm7, %v4554_v8, 0 }
 0x641   : > { %2079 = vrot.lane.b32.xlu1 %v1914_v58, %s5283_s22 }
 0x642   : > { %2169 = vrot.lane.b32.xlu0 %v1925_v6, %s5284_s23 }
 0x645   : > { %1977 = vrot.lane.b32.xlu1 %v4464_v46, %s5316_s27 }
 0x646   : > { %1981 = vrot.lane.b32.xlu0 %v4554_v8, %s5316_s27 }
 0x649   : > { %2121 = vrot.lane.b32.xlu1 %v4464_v46, %s5317_s0 }
 0x64a   : > { %2125 = vrot.lane.b32.xlu0 %v4554_v8, %s5317_s0 }
 0x64d   : > { %1979 = vrot.lane.b32.xlu1 %v4471_v59, %s5316_s27 }
 0x64e   : > { %2033 = vrot.lane.b32.xlu0 %v1905_v33, %s5282_s19 }
 0x651   : > { %2029 = vrot.lane.b32.xlu1 %v1903_v34, %s5282_s19 }
 0x652   : > { %2085 = vrot.lane.b32.xlu0 %v1917_v5, %s5283_s22 }
 0x655   : > { %2081 = vrot.lane.b32.xlu1 %v1915_v7, %s5283_s22 }
 0x656   : > { %1983 = vrot.lane.b32.xlu0 %v4488_v51, %s5316_s27 }
 0x659   : > { %2123 = vrot.lane.b32.xlu1 %v4471_v59, %s5317_s0 }
 0x65a   : > { %2127 = vrot.lane.b32.xlu0 %v4488_v51, %s5317_s0 }
 0x65d   : > { %2031 = vrot.lane.b32.xlu1 %v1904_v9, %s5282_s19  ;;  %v1947_v9 = vsel %vm5338_vm5, %v4418_v13, 0  ;;  %vm5354_vm5 = vmmov %vm5342_vm10 }
 0x65e   : > { %1985 = vrot.lane.b32.xlu0 %v4492_v53, %s5316_s27  ;;  %vm5360_vm14 = vmmov %vm5354_vm5 }
 0x661   : > { %2083 = vrot.lane.b32.xlu1 %v1916_v35, %s5283_s22  ;;  %v1945_v35 = vsel %vm5339_vm15, %v4412_v18, 0 }
 0x662   : > { %2167 = vrot.lane.b32.xlu0 %v1924_v36, %s5284_s23 }
 0x665   : > { %1987 = vrot.lane.b32.xlu1 %v4603_v12, %s5316_s27 }
 0x666   : > { %2177 = vrot.lane.b32.xlu0 %v1929_v14, %s5284_s23 }
 0x669   : > { %2171 = vrot.lane.b32.xlu1 %v1926_v16, %s5284_s23  ;;  %v1932_v16 = vsel %vm5340_vm6, %v4603_v12, 0  ;;  %vm5356_vm6 = vmmov %vm5351_vm1 }
 0x66a   : > { %2035 = vrot.lane.b32.xlu0 %v1906_v19, %s5282_s19 }
 0x66d   : > { %2175 = vrot.lane.b32.xlu1 %v1928_v15, %s5284_s23 }
 0x66e   : > { %2087 = vrot.lane.b32.xlu0 %v1918_v22, %s5283_s22 }
 0x671   : > { %2131 = vrot.lane.b32.xlu1 %v4603_v12, %s5317_s0 }
 0x672   : > { %2129 = vrot.lane.b32.xlu0 %v4492_v53, %s5317_s0 }
 0x675   : > { %2039 = vrot.lane.b32.xlu1 %v1908_v3, %s5282_s19 }
 0x676   : > { %2037 = vrot.lane.b32.xlu0 %v1907_v38, %s5282_s19 }
 0x679   : > { %2173 = vrot.lane.b32.xlu1 %v1927_v11, %s5284_s23  ;;  %v1950_v11 = vsel %vm5345_vm4, %v4525_v24, 0 }
 0x67a   : > { %2179 = vrot.lane.b32.xlu0 %v1930_v41, %s5284_s23 }
 0x67d   : > { %2215 = vrot.lane.b32.xlu1 %v1934_v2, %s5285_s25 }
 0x67e   : > { %2217 = vrot.lane.b32.xlu0 %v1935_v20, %s5285_s25 }
 0x67f   : > { %v1966_v28 = vpop.permute.xlu1 %1965 }
 0x680   : > { %v1970_v42 = vpop.permute.xlu0 %1969 }
 0x681   : > { %2213 = vrot.lane.b32.xlu1 %v1933_v31, %s5285_s25 }
 0x682   : > { %2221 = vrot.lane.b32.xlu0 %v1937_v54, %s5285_s25 }
 0x683   : > { %v4666_v60 = vpop.permute.xlu1 %2109 }
 0x684   : > { %v4668_v61 = vpop.permute.xlu0 %2113 }
 0x685   : > { %2091 = vrot.lane.b32.xlu1 %v1920_v48, %s5283_s22  ;;  %v1952_v48 = vsel %vm5351_vm1, %v4471_v59, 0 }
 0x686   : > { %2089 = vrot.lane.b32.xlu0 %v1919_v44, %s5283_s22  ;;  %s5337_s22 = smov 94  }
 0x687   : > { %v1968_v56 = vpop.permute.xlu1 %1967 }
 0x688   : > { %v4678_v0 = vpop.permute.xlu0 %2021  ;;  %v1990_v50 = vsel %vm5329_vm2, %v1968_v56, %v1970_v42  ;;  %v1989_v10 = vsel %vm5330_vm3, %v1966_v28, %v1968_v56  ;;  %vm5346_vm2 = vcmask 908288   ;;  %vm5347_vm3 = vmmov %vm5339_vm15  ;;  %v1943_v42 = vsel %vm5350_vm13, %v4492_v53, 0 }
 0x689   : > { %2223 = vrot.lane.b32.xlu1 %v1938_v62, %s5285_s25  ;;  %2433 = vmatprep.subr.bf16.mxu1 %v1990_v50  ;;  %vm5353_vm8 = vmmov %vm5347_vm3 }
 0x68a   : > { %2219 = vrot.lane.b32.xlu0 %v1936_v25, %s5285_s25  ;;  %2434 = vmatpush1.bf16.msra.mxu1 %v1989_v10  ;;  %v1951_v56 = vsel %vm5353_vm8, %v4464_v46, 0  ;;  %vm5355_vm15 = vmmov %vm5354_vm5  ;;  %vm5369_vm8 = vcmask 916480  }
 0x68b   : > { %v4690_v4 = vpop.permute.xlu1 %2017 }
 0x68c   : > { %v4692_v43 = vpop.permute.xlu0 %2073 }
 0x68d   : > { %2227 = vrot.lane.b32.xlu1 %v1940_v39, %s5285_s25 }
 0x68e   : > { %2229 = vrot.lane.b32.xlu0 %v1941_v40, %s5285_s25 }
 0x68f   : > { %v4702_v23 = vpop.permute.xlu1 %2069 }
 0x690   : > { %v4704_v52 = vpop.permute.xlu0 %2165 }
 0x691   : > { %2225 = vrot.lane.b32.xlu1 %v1939_v30, %s5285_s25 }
 0x692   : > { %2231 = vrot.lane.b32.xlu0 %v1942_v47, %s5285_s25 }
 0x693   : > { %v4714_v58 = vpop.permute.xlu1 %2111 }
 0x694   : > { %v1972_v6 = vpop.permute.xlu0 %1971 }
 0x695   : > { %2255 = vrot.lane.b32.xlu1 %v4415_v37, %s5287_s28 }
 0x696   : > { %2257 = vrot.lane.b32.xlu0 %v4418_v13, %s5287_s28 }
 0x697   : > { %v4720_v33 = vpop.permute.xlu1 %2161 }
 0x698   : > { %v4722_v34 = vpop.permute.xlu0 %2115 }
 0x699   : > { %2253 = vrot.lane.b32.xlu1 %v4412_v18, %s5287_s28  ;;  %v1931_v18 = vsel %vm5341_vm9, %v4492_v53, 0  ;;  %vm5357_vm9 = vmmov %vm5345_vm4  ;;  %vm5361_vm4 = vcmask 1031168  }
 0x69a   : > { %2307 = vrot.lane.b32.xlu0 %v1946_v45, %s5337_s22  ;;  %v1956_v30 = vsel %vm5357_vm9, %v4603_v12, 0 }
 0x69b   : > { %v4730_v5 = vpop.permute.xlu1 %2019 }
 0x69c   : > { %v1974_v7 = vpop.permute.xlu0 %1973 }
 0x69d   : > { %2309 = vrot.lane.b32.xlu1 %v1947_v9, %s5337_s22  ;;  %v1991_v3 = vsel %vm5343_vm12, %v1972_v6, %v1974_v7  ;;  %v2346_v6 = vld [vmem:[%s5220_s9 + $0x8] sm:$0xff]  ;;  %vm5359_vm12 = vmmov %vm5354_vm5 }
 0x69e   : > { %2305 = vrot.lane.b32.xlu0 %v1945_v35, %s5337_s22 }
 0x69f   : > { %v4740_v36 = vpop.permute.xlu1 %2071 }
 0x6a0   : > { %v4742_v37 = vpop.permute.xlu0 %2023 }
 0x6a1   : > { %2261 = vrot.lane.b32.xlu1 %v4438_v26, %s5287_s28  ;;  %v1948_v26 = vsel %vm5347_vm3, %v4435_v21, 0 }
 0x6a2   : > { %2263 = vrot.lane.b32.xlu0 %v4525_v24, %s5287_s28 }
 0x6a3   : > { %v4748_v14 = vpop.permute.xlu1 %2163 }
 0x6a4   : > { %v2076_v13 = vpop.permute.xlu0 %2075 }
 0x6a5   : > { %2183 = vrot.lane.b32.xlu1 %v1932_v16, %s5284_s23 }
 0x6a6   : > { %2181 = vrot.lane.b32.xlu0 %v1931_v18, %s5284_s23 }
 0x6a7   : > { %v1976_v19 = vpop.permute.xlu1 %1975 }
 0x6a8   : > { %v4758_v15 = vpop.permute.xlu0 %2117  ;;  %v1992_v22 = vsel %vm5342_vm10, %v1974_v7, %v1976_v19  ;;  %vm5358_vm10 = vmmov %vm5347_vm3  ;;  %v2042_v19 = vsel %vm5361_vm4, %v4730_v5, %v4678_v0 }
 0x6a9   : > { %2259 = vrot.lane.b32.xlu1 %v4435_v21, %s5287_s28  ;;  %2435 = vmatprep.subr.bf16.mxu1 %v1992_v22  ;;  %v1944_v21 = vsel %vm5349_vm0, %v4603_v12, 0  ;;  %v1954_v47 = vsel %vm5358_vm10, %v4488_v51, 0 }
 0x6aa   : > { %2313 = vrot.lane.b32.xlu0 %v1949_v29, %s5337_s22  ;;  %2436 = vmatpush1.bf16.msra.mxu1 %v1991_v3 }
 0x6ab   : > { %v2120_v32 = vpop.permute.xlu1 %2119 }
 0x6ac   : > { %v4768_v38 = vpop.permute.xlu0 %2025  ;;  %v4775_v41 = vsel %vm5346_vm2, %v4758_v15, %v2120_v32  ;;  %vm5362_vm2 = vmmov %vm5361_vm4 }
 0x6ad   : > { %2315 = vrot.lane.b32.xlu1 %v1950_v11, %s5337_s22  ;;  %v2041_v29 = vsel %vm5362_vm2, %v4690_v4, %v4730_v5  ;;  %vm5363_vm3 = vmmov %vm5362_vm2 }
 0x6ae   : > { %2311 = vrot.lane.b32.xlu0 %v1948_v26, %s5337_s22  ;;  %vm5365_vm0 = vmmov %vm5362_vm2 }
 0x6af   : > { %v4782_v2 = vpop.permute.xlu1 %2027  ;;  %vm5366_vm13 = vmmov %vm5365_vm0 }
 0x6b0   : > { %v4784_v20 = vpop.permute.xlu0 %2077  ;;  %v2044_v32 = vsel %vm5363_vm3, %v4768_v38, %v4782_v2  ;;  %vm5367_vm1 = vmmov %vm5365_vm0 }
 0x6b1   : > { %v4788_v27 = vsel %vm5348_vm11, %v2076_v13, %v4784_v20  ;;  %2267 = vrot.lane.b32.xlu1 %v4471_v59, %s5287_s28  ;;  %vm5364_vm11 = vmmov %vm5362_vm2 }
 0x6b2   : > { %2269 = vrot.lane.b32.xlu0 %v4554_v8, %s5287_s28  ;;  %v2043_v0 = vsel %vm5364_vm11, %v4742_v37, %v4768_v38  ;;  %vm5368_vm7 = vmmov %vm5365_vm0  ;;  %v2094_v37 = vsel %vm5369_vm8, %v4740_v36, %v4692_v43 }
 0x6b3   : > { %v4794_v24 = vpop.permute.xlu1 %2079 }
 0x6b4   : > { %v4796_v28 = vpop.permute.xlu0 %2169 }
 0x6b5   : > { %2235 = vrot.lane.b32.xlu1 %v1944_v21, %s5285_s25 }
 0x6b6   : > { %2233 = vrot.lane.b32.xlu0 %v1943_v42, %s5285_s25  ;;  %s469_s25 = sand.u32 1, %s3500_s29  }
 0x6b7   : > { %v1978_v31 = vpop.permute.xlu1 %1977  ;;  %s3112_s2 = sshll.u32 %s469_s25, 7 }
 0x6b8   : > { %v1982_v54 = vpop.permute.xlu0 %1981  ;;  %s5137_s29 = scalar_lea.vmem [#allocation2], %s3112_s2 }
 0x6b9   : > { %2265 = vrot.lane.b32.xlu1 %v4464_v46, %s5287_s28  ;;  %v1955_v46 = vsel %vm5356_vm6, %v4492_v53, 0 }
 0x6ba   : > { %2319 = vrot.lane.b32.xlu0 %v1952_v48, %s5337_s22 }
 0x6bb   : > { %v4812_v49 = vpop.permute.xlu1 %2121 }
 0x6bc   : > { %v4814_v44 = vpop.permute.xlu0 %2125 }
 0x6bd   : > { %2321 = vrot.lane.b32.xlu1 %v1953_v63, %s5337_s22 }
 0x6be   : > { %2317 = vrot.lane.b32.xlu0 %v1951_v56, %s5337_s22 }
 0x6bf   : > { %v1980_v62 = vpop.permute.xlu1 %1979 }
 0x6c0   : > { %v1993_v59 = vsel %vm5354_vm5, %v1978_v31, %v1980_v62  ;;  %v2034_v50 = vpop.permute.xlu0 %2033  ;;  %v1994_v10 = vsel %vm5355_vm15, %v1980_v62, %v1982_v54  ;;  %vm5370_vm5 = vmmov %vm5369_vm8 }
 0x6c1   : > { %2273 = vrot.lane.b32.xlu1 %v4492_v53, %s5287_s28  ;;  %2437 = vmatprep.subr.bf16.mxu1 %v1994_v10  ;;  %v2093_v56 = vsel %vm5370_vm5, %v4702_v23, %v4740_v36  ;;  %vm5371_vm15 = vmmov %vm5370_vm5 }
 0x6c2   : > { %2275 = vrot.lane.b32.xlu0 %v4603_v12, %s5287_s28  ;;  %2438 = vmatpush1.bf16.msra.mxu1 %v1993_v59  ;;  %v2348_v12 = vld [vmem:[%s5220_s9 + $0x18] sm:$0xff]  ;;  %v2096_v59 = vsel %vm5371_vm15, %v4784_v20, %v4794_v24  ;;  %vm5372_vm6 = vmmov %vm5370_vm5 }
 0x6c3   : > { %v2030_v8 = vpop.permute.xlu1 %2029  ;;  %vm5373_vm9 = vmmov %vm5370_vm5 }
 0x6c4   : > { %v4830_v25 = vpop.permute.xlu0 %2085  ;;  %vm5374_vm10 = vmmov %vm5370_vm5 }
 0x6c5   : > { %2271 = vrot.lane.b32.xlu1 %v4488_v51, %s5287_s28 }
 0x6c6   : > { %2325 = vrot.lane.b32.xlu0 %v1955_v46, %s5337_s22 }
 0x6c7   : > { %v4838_v39 = vpop.permute.xlu1 %2081 }
 0x6c8   : > { %v1984_v40 = vpop.permute.xlu0 %1983 }
 0x6c9   : > { %2327 = vrot.lane.b32.xlu1 %v1956_v30, %s5337_s22 }
 0x6ca   : > { %2323 = vrot.lane.b32.xlu0 %v1954_v47, %s5337_s22 }
 0x6cb   : > { %v4851_v53 = vpop.permute.xlu1 %2123 }
 0x6cc   : > { %v4856_v57 = vpop.permute.xlu0 %2127 }
 0x6cd   : > { %2351 = vperm.xlu1 %3329, %v2345_v17  }
 0x6ce   : > { %2356 = vperm.xlu0 %3328, %v2346_v6  }
 0x6cf   : > { %v2032_v51 = vpop.permute.xlu1 %2031 }
 0x6d0   : > { %v1986_v45 = vpop.permute.xlu0 %1985  ;;  %v2046_v21 = vsel %vm5365_vm0, %v2032_v51, %v2034_v50  ;;  %v2045_v4 = vsel %vm5366_vm13, %v2030_v8, %v2032_v51 }
 0x6d1   : > { %2361 = vperm.xlu1 %3329, %v2347_v55   ;;  %v1995_v18 = vsel %vm5360_vm14, %v1984_v40, %v1986_v45  ;;  %vm5376_vm14 = vcmask 908288   ;;  %v3349_v55 = vld [vmem:[%s5219_s8 + $0x28] ss:$20 sps:$4 sm:$0xff]  }
 0x6d2   : > { %2366 = vperm.xlu0 %3328, %v2348_v12   ;;  %vm5377_vm4 = vmmov %vm5376_vm14 }
 0x6d3   : > { %v2084_v7 = vpop.permute.xlu1 %2083  ;;  %v2133_v47 = vsel %vm5377_vm4, %v4666_v60, %v4714_v58  ;;  %vm5378_vm2 = vmmov %vm5377_vm4  ;;  %vm5393_vm4 = vcmask 785408  }
 0x6d4   : > { %v4864_v9 = vpop.permute.xlu0 %2167  ;;  %v2098_v43 = vsel %vm5372_vm6, %v2084_v7, %v4830_v25  ;;  %v2097_v23 = vsel %vm5373_vm9, %v4838_v39, %v2084_v7  ;;  %v2134_v25 = vsel %vm5376_vm14, %v4714_v58, %v4668_v61  ;;  %v3347_v39 = vld [vmem:[%s5219_s8 + $0x2c] ss:$20 sps:$4 sm:$0xff]   ;;  %v2135_v61 = vsel %vm5378_vm2, %v4722_v34, %v4758_v15  ;;  %vm5379_vm3 = vmmov %vm5378_vm2 }
 0x6d5   : > { %v2138_v60 = vsel %vm5379_vm3, %v4851_v53, %v4814_v44  ;;  %v3352_v58 = vld [vmem:[%s5219_s8 + $0xc] ss:$20 sps:$4 sm:$0xff]   ;;  %vm5380_vm11 = vmmov %vm5378_vm2 }
 0x6d6   : > { %v2137_v34 = vsel %vm5380_vm11, %v4812_v49, %v4851_v53  ;;  %vm5381_vm0 = vmmov %vm5378_vm2 }
 0x6d7   : > { %v1988_v35 = vpop.permute.xlu1 %1987  ;;  %vm5382_vm13 = vmmov %vm5381_vm0 }
 0x6d8   : > { %v4866_v13 = vpop.permute.xlu0 %2177  ;;  %v1996_v16 = vsel %vm5359_vm12, %v1986_v45, %v1988_v35  ;;  %vm5375_vm12 = vmmov %vm5370_vm5  ;;  %vm5386_vm5 = vcmask 769024  }
 0x6d9   : > { %2439 = vmatprep.subr.bf16.mxu1 %v1996_v16  ;;  %vm5387_vm15 = vmmov %vm5386_vm5 }
 0x6da   : > { %2440 = vmatpush1.bf16.msra.mxu1 %v1995_v18  ;;  %vm5394_vm2 = vmmov %vm5393_vm4 }
 0x6db   : > { %v4873_v22 = vpop.permute.xlu1 %2171  ;;  %2441 = vmatprep.subr.bf16.mxu1 %v2042_v19  ;;  %vm5395_vm3 = vmmov %vm5394_vm2 }
 0x6dc   : > { %v2036_v3 = vpop.permute.xlu0 %2035  ;;  %vm5396_vm11 = vmmov %vm5386_vm5 }
 0x6de   : > { %2442 = vmatpush1.bf16.msra.mxu1 %v2041_v29 }
 0x6df   : > { %v4881_v11 = vpop.permute.xlu1 %2175  ;;  %2443 = vmatprep.subr.bf16.mxu1 %v2044_v32 }
 0x6e0   : > { %v2088_v26 = vpop.permute.xlu0 %2087 }
 0x6e2   : > { %2444 = vmatpush1.bf16.msra.mxu1 %v2043_v0 }
 0x6e3   : > { %v2132_v42 = vpop.permute.xlu1 %2131  ;;  %2445 = vmatprep.subr.bf16.mxu1 %v2046_v21 }
 0x6e4   : > { %v2130_v31 = vpop.permute.xlu0 %2129 }
 0x6e5   : > { %v2140_v12 = vsel %vm5381_vm0, %v2130_v31, %v2132_v42  ;;  %v2139_v45 = vsel %vm5382_vm13, %v4856_v57, %v2130_v31  ;;  %vm5397_vm0 = vmmov %vm5386_vm5 }
 0x6e6   : > { %2446 = vmatpush1.bf16.msra.mxu1 %v2045_v4  ;;  %vm5398_vm13 = vmmov %vm5394_vm2 }
 0x6e7   : > { %v2040_v5 = vpop.permute.xlu1 %2039 }
 0x6e8   : > { %v2038_v54 = vpop.permute.xlu0 %2037 }
 0x6e9   : > { %v2047_v2 = vsel %vm5367_vm1, %v2036_v3, %v2038_v54  ;;  %v2048_v48 = vsel %vm5368_vm7, %v2038_v54, %v2040_v5  ;;  %vm5383_vm1 = vcmask 900096  }
 0x6ea   : > { %2447 = vmatprep.subr.bf16.mxu1 %v2048_v48  ;;  %v2186_v35 = vsel %vm5383_vm1, %v4748_v14, %v4704_v52  ;;  %vm5384_vm7 = vmmov %vm5383_vm1 }
 0x6eb   : > { %v4890_v63 = vpop.permute.xlu1 %2173  ;;  %2448 = vmatpush1.bf16.msra.mxu1 %v2047_v2  ;;  %v2185_v53 = vsel %vm5384_vm7, %v4720_v33, %v4748_v14  ;;  %vm5385_vm8 = vmmov %vm5383_vm1 }
 0x6ec   : > { %2449 = vmatprep.subr.bf16.mxu1 %v2094_v37  ;;  %v4895_v38 = vpop.permute.xlu0 %2179  ;;  %v2188_v18 = vsel %vm5385_vm8, %v4796_v28, %v4873_v22  ;;  %vm5388_vm6 = vmmov %vm5383_vm1 }
 0x6ed   : > { %v2187_v52 = vsel %vm5388_vm6, %v4864_v9, %v4796_v28  ;;  %vm5389_vm9 = vmmov %vm5383_vm1 }
 0x6ee   : > { %v2190_v33 = vsel %vm5389_vm9, %v4881_v11, %v4866_v13  ;;  %vm5392_vm14 = vmmov %vm5383_vm1 }
 0x6ef   : > { %v4900_v62 = vpop.permute.xlu1 %2215  ;;  %2450 = vmatpush1.bf16.msra.mxu1 %v2093_v56 }
 0x6f0   : > { %2451 = vmatprep.subr.bf16.mxu1 %v2096_v59  ;;  %v4905_v50 = vpop.permute.xlu0 %2217 }
 0x6f1   : > { %v2238_v13 = vsel %vm5393_vm4, %v4900_v62, %v4905_v50 }
 0x6f3   : > { %v4907_v10 = vpop.permute.xlu1 %2213  ;;  %2452 = vmatpush1.bf16.msra.mxu1 %v4788_v27  ;;  %v3344_v27 = vld [vmem:[%s5219_s8] ss:$20 sps:$4 sm:$0xff]  }
 0x6f4   : > { %2453 = vmatprep.subr.bf16.mxu1 %v2098_v43  ;;  %v4912_v8 = vpop.permute.xlu0 %2221 }
 0x6f7   : > { %v2092_v36 = vpop.permute.xlu1 %2091  ;;  %2454 = vmatpush1.bf16.msra.mxu1 %v2097_v23 }
 0x6f8   : > { %v2090_v46 = vpop.permute.xlu0 %2089 }
 0x6f9   : > { %v2099_v20 = vsel %vm5374_vm10, %v2088_v26, %v2090_v46  ;;  %v2100_v24 = vsel %vm5375_vm12, %v2090_v46, %v2092_v36  ;;  %vm5390_vm10 = vmmov %vm5383_vm1 }
 0x6fa   : > { %2455 = vmatprep.subr.bf16.mxu1 %v2100_v24  ;;  %v2189_v22 = vsel %vm5390_vm10, %v4890_v63, %v4881_v11  ;;  %vm5391_vm12 = vmmov %vm5383_vm1  ;;  %v2237_v11 = vsel %vm5394_vm2, %v4907_v10, %v4900_v62 }
 0x6fb   : > { %v4921_v40 = vpop.permute.xlu1 %2223  ;;  %2456 = vmatpush1.bf16.msra.mxu1 %v2099_v20  ;;  %vm5399_vm1 = vmmov %vm5394_vm2 }
 0x6fc   : > { %2478 = vmatprep.subr.bf16.mxu1 %v2134_v25  ;;  %v4929_v30 = vpop.permute.xlu0 %2219  ;;  %v2240_v31 = vsel %vm5395_vm3, %v4912_v8, %v4921_v40  ;;  %vm5400_vm7 = vmmov %vm5399_vm1 }
 0x6fd   : > { %v2239_v2 = vsel %vm5398_vm13, %v4929_v30, %v4912_v8  ;;  %vm5401_vm8 = vmmov %vm5399_vm1 }
 0x6fe   : > { %2458 = vmatmul.mubr.bf16.vlgmr.msra.gmra.mrb[20].mxu1 %v3344_v27  ;;  %vm5406_vm10 = vmmov %vm5397_vm0 }
 0x6ff   : > { %v4934_v17 = vpop.permute.xlu1 %2227  ;;  %2479 = vmatpush1.bf16.msra.mxu1 %v2133_v47  ;;  %2467 = vmatprep.mubr.bf16.mxu1 %v3347_v39  ;;  %vm5413_vm13 = vmmov %vm5397_vm0 }
 0x700   : > { %2480 = vmatprep.subr.bf16.mxu1 %v4775_v41  ;;  %v4937_v6 = vpop.permute.xlu0 %2229 }
 0x701   : > { %v2242_v63 = vsel %vm5399_vm1, %v4934_v17, %v4937_v6 }
 0x703   : > { %v4945_v51 = vpop.permute.xlu1 %2225  ;;  %2481 = vmatpush1.bf16.msra.mxu1 %v2135_v61 }
 0x704   : > { %2482 = vmatprep.subr.bf16.mxu1 %v2138_v60  ;;  %v4953_v41 = vpop.permute.xlu0 %2231 }
 0x706   : > { %2468 = vmatmul.mubr.bf16.gmra.mrb[24].mxu1 %v3349_v55 }
 0x707   : > { %v4958_v15 = vpop.permute.xlu1 %2255  ;;  %2483 = vmatpush1.bf16.msra.mxu1 %v2137_v34  ;;  %2510 = vmatprep.mubr.bf16.mxu1 %v3352_v58  ;;  %v3354_v58 = vld [vmem:[%s5219_s8 + $0x34] ss:$20 sps:$4 sm:$0xff]  }
 0x708   : > { %2484 = vmatprep.subr.bf16.mxu1 %v2140_v12  ;;  %v2258_v44 = vpop.permute.xlu0 %2257  ;;  %v3353_v12 = vld [vmem:[%s5219_s8 + $0x10] ss:$20 sps:$4 sm:$0xff]  }
 0x70b   : > { %v2254_v7 = vpop.permute.xlu1 %2253  ;;  %2485 = vmatpush1.bf16.msra.mxu1 %v2139_v45  ;;  %v3357_v45 = vld [vmem:[%s5219_s8 + $0x38] ss:$20 sps:$4 sm:$0xff]  }
 0x70c   : > { %2486 = vmatprep.subr.bf16.mxu1 %v2186_v35  ;;  %v2308_v49 = vpop.permute.xlu0 %2307 }
 0x70f   : > { %v2310_v16 = vpop.permute.xlu1 %2309  ;;  %2487 = vmatpush1.bf16.msra.mxu1 %v2185_v53 }
 0x710   : > { %2488 = vmatprep.subr.bf16.mxu1 %v2188_v18  ;;  %v2306_v57 = vpop.permute.xlu0 %2305  ;;  %v2330_v19 = vsel %vm5386_vm5, %v2308_v49, %v2310_v16  ;;  %vm5402_vm5 = vmmov %vm5399_vm1  ;;  %vm5414_vm1 = vcmask 523264  }
 0x711   : > { %v2329_v3 = vsel %vm5387_vm15, %v2306_v57, %v2308_v49  ;;  %2531 = vmatprep.subr.bf16.mxu0 %v2330_v19  ;;  %vm5403_vm15 = vcmask 777216  }
 0x712   : > { %2532 = vmatpush1.bf16.msra.mxu0 %v2329_v3  ;;  %v2278_v43 = vsel %vm5403_vm15, %v4958_v15, %v2258_v44  ;;  %vm5404_vm6 = vmmov %vm5403_vm15  ;;  %v3356_v44 = vld [vmem:[%s5219_s8 + $0x30] ss:$20 sps:$4 sm:$0xff]  }
 0x713   : > { %v2262_v29 = vpop.permute.xlu1 %2261  ;;  %2489 = vmatpush1.bf16.msra.mxu1 %v2187_v52  ;;  %v2277_v23 = vsel %vm5404_vm6, %v2254_v7, %v4958_v15  ;;  %vm5405_vm9 = vmmov %vm5404_vm6 }
 0x714   : > { %2490 = vmatprep.subr.bf16.mxu1 %v2190_v33  ;;  %v2264_v14 = vpop.permute.xlu0 %2263  ;;  %vm5409_vm4 = vmmov %vm5404_vm6 }
 0x715   : > { %v2280_v46 = vsel %vm5405_vm9, %v2262_v29, %v2264_v14  ;;  %vm5410_vm2 = vmmov %vm5409_vm4 }
 0x716   : > { %vm5411_vm3 = vmmov %vm5410_vm2 }
 0x717   : > { %v2184_v32 = vpop.permute.xlu1 %2183  ;;  %2491 = vmatpush1.bf16.msra.mxu1 %v2189_v22 }
 0x718   : > { %v2182_v26 = vpop.permute.xlu0 %2181 }
 0x719   : > { %v2191_v0 = vsel %vm5391_vm12, %v4895_v38, %v2182_v26  ;;  %v2192_v28 = vsel %vm5392_vm14, %v2182_v26, %v2184_v32  ;;  %v2241_v38 = vsel %vm5400_vm7, %v4945_v51, %v4934_v17  ;;  %vm5407_vm12 = vmmov %vm5397_vm0  ;;  %v3350_v51 = vld [vmem:[%s5219_s8 + $0x8] ss:$20 sps:$4 sm:$0xff]  }
 0x71a   : > { %2492 = vmatprep.subr.bf16.mxu1 %v2192_v28  ;;  %vm5408_vm14 = vmmov %vm5404_vm6 }
 0x71b   : > { %v2260_v9 = vpop.permute.xlu1 %2259  ;;  %2493 = vmatpush1.bf16.msra.mxu1 %v2191_v0  ;;  %vm5415_vm7 = vmmov %vm5414_vm1 }
 0x71c   : > { %2494 = vmatprep.subr.bf16.mxu1 %v2238_v13  ;;  %v2314_v21 = vpop.permute.xlu0 %2313  ;;  %v2279_v40 = vsel %vm5408_vm14, %v2260_v9, %v2262_v29 }
 0x71f   : > { %v2316_v42 = vpop.permute.xlu1 %2315  ;;  %2495 = vmatpush1.bf16.msra.mxu1 %v2237_v11 }
 0x720   : > { %2496 = vmatprep.subr.bf16.mxu1 %v2240_v31  ;;  %v2312_v4 = vpop.permute.xlu0 %2311  ;;  %v2332_v5 = vsel %vm5396_vm11, %v2314_v21, %v2316_v42  ;;  %vm5412_vm11 = vmmov %vm5410_vm2 }
 0x721   : > { %v2331_v54 = vsel %vm5397_vm0, %v2312_v4, %v2314_v21  ;;  %2533 = vmatprep.subr.bf16.mxu0 %v2332_v5 }
 0x722   : > { %2534 = vmatpush1.bf16.msra.mxu0 %v2331_v54 }
 0x723   : > { %v2268_v48 = vpop.permute.xlu1 %2267  ;;  %2497 = vmatpush1.bf16.msra.mxu1 %v2239_v2 }
 0x724   : > { %2498 = vmatprep.subr.bf16.mxu1 %v2242_v63  ;;  %v2270_v37 = vpop.permute.xlu0 %2269 }
 0x725   : > { %v2282_v39 = vsel %vm5409_vm4, %v2268_v48, %v2270_v37  ;;  %vm3526_vm4 = vmmov 0  }
 0x727   : > { %v2236_v56 = vpop.permute.xlu1 %2235  ;;  %2499 = vmatpush1.bf16.msra.mxu1 %v2241_v38 }
 0x728   : > { %v2234_v62 = vpop.permute.xlu0 %2233 }
 0x729   : > { %v2243_v59 = vsel %vm5401_vm8, %v4953_v41, %v2234_v62  ;;  %v2244_v50 = vsel %vm5402_vm5, %v2234_v62, %v2236_v56 }
 0x72a   : > { %2500 = vmatprep.subr.bf16.mxu1 %v2244_v50 }
 0x72b   : > { %v2266_v10 = vpop.permute.xlu1 %2265  ;;  %2501 = vmatpush1.bf16.msra.mxu1 %v2243_v59 }
 0x72c   : > { %2502 = vmatprep.subr.bf16.mxu1 %v2278_v43  ;;  %v2320_v8 = vpop.permute.xlu0 %2319  ;;  %v2281_v47 = vsel %vm5410_vm2, %v2266_v10, %v2268_v48  ;;  %vm5416_vm2 = vcmask 261120  }
 0x72f   : > { %v2322_v36 = vpop.permute.xlu1 %2321  ;;  %2503 = vmatpush1.bf16.msra.mxu1 %v2277_v23 }
 0x730   : > { %2504 = vmatprep.subr.bf16.mxu1 %v2280_v46  ;;  %v2318_v20 = vpop.permute.xlu0 %2317  ;;  %v2334_v24 = vsel %vm5406_vm10, %v2320_v8, %v2322_v36 }
 0x731   : > { %v2333_v27 = vsel %vm5407_vm12, %v2318_v20, %v2320_v8  ;;  %2535 = vmatprep.subr.bf16.mxu0 %v2334_v24 }
 0x732   : > { %2536 = vmatpush1.bf16.msra.mxu0 %v2333_v27 }
 0x733   : > { %v2274_v25 = vpop.permute.xlu1 %2273  ;;  %2505 = vmatpush1.bf16.msra.mxu1 %v2279_v40 }
 0x734   : > { %2506 = vmatprep.subr.bf16.mxu1 %v2282_v39  ;;  %v2276_v30 = vpop.permute.xlu0 %2275 }
 0x735   : > { %v2284_v6 = vsel %vm5411_vm3, %v2274_v25, %v2276_v30  ;;  %vm2717_vm3 = vcmask 31744  }
 0x737   : > { %v2272_v17 = vpop.permute.xlu1 %2271  ;;  %2507 = vmatpush1.bf16.msra.mxu1 %v2281_v47 }
 0x738   : > { %2508 = vmatprep.subr.bf16.mxu1 %v2284_v6  ;;  %v2326_v61 = vpop.permute.xlu0 %2325  ;;  %v2283_v55 = vsel %vm5412_vm11, %v2272_v17, %v2274_v25  ;;  %vm2742_vm11 = vcmask 1043456  }
 0x73b   : > { %v2328_v60 = vpop.permute.xlu1 %2327  ;;  %2509 = vmatpush1.bf16.msra.mxu1 %v2283_v55 }
 0x73c   : > { %v2324_v41 = vpop.permute.xlu0 %2323  ;;  %v2336_v34 = vsel %vm5397_vm0, %v2326_v61, %v2328_v60  ;;  %v3525_v60 = vmov 0.0|0.0  }
 0x73d   : > { %v2335_v15 = vsel %vm5413_vm13, %v2324_v41, %v2326_v61  ;;  %2537 = vmatprep.subr.bf16.mxu0 %v2336_v34  ;;  %3244 = vmatprep.subr.bf16.mxu1 %v3525_v60 }
 0x73e   : > { %2511 = vmatmul.mubr.bf16.vlgmr.msra.gmra.mrb[20].mxu1 %v3350_v51  ;;  %2538 = vmatpush1.bf16.msra.mxu0 %v2335_v15 }
 0x73f   : > { %2520 = vmatprep.mubr.bf16.mxu1 %v3354_v58  ;;  %v3527_v58 = vmov 0.0  }
 0x741   : > { %3169 = vmatmul.mubr.msk.bf16.vlgmr.msra.gmra.mrb[4].mxu0 %vm5414_vm1, %v3353_v12 }
 0x742   : > { %2573 = vmatprep.mubr.bf16.mxu0 %v3510_v1 }
 0x746   : > { %2521 = vmatmul.mubr.bf16.gmra.mrb[24].mxu1 %v3356_v44 }
 0x747   : > { %3227 = vmatprep.mubr.msk.f32.mxu1 %vm3526_vm4, %v3527_v58 }
 0x749   : > { %3170 = vmatmul.mubr.msk.bf16.gmra.mrb[8].mxu0 %vm5415_vm7, %v3357_v45 }
 0x74c   : > { %v2352_v7 = vpop.permute.xlu1 %2351 }
 0x74d   : > { %v2357_v16 = vpop.permute.xlu0 %2356 }
 0x750   : > { %v2362_v13 = vpop.permute.xlu1 %2361 }
 0x751   : > { %v2367_v2 = vpop.permute.xlu0 %2366 }
 0x811   : > { %v2512_v35 = vpop.f32.mrb[20].mxu1 }
 0x812   : > { %v3254_v49 = vadd.f32 %v2512_v35, %v2352_v7  ;;  %v2514_v53 = vpop.f32.mrb[21].mxu1 }
 0x813   : > { %v3256_v18 = vadd.f32 %v2514_v53, %v2352_v7  ;;  %v2516_v57 = vpop.f32.mrb[22].mxu1 }
 0x814   : > { %v3258_v19 = vadd.f32 %v2516_v57, %v2357_v16  ;;  %v2518_v3 = vpop.f32.mrb[23].mxu1  ;;  %v2565_v52 = vpop.f32.mrb[4].mxu0  ;;  %v2625_v57 = vld [vmem:[%s5222_s11] sm:$0xf] }
 0x815   : > { %v3260_v29 = vadd.f32 %v2518_v3, %v2357_v16  ;;  %v3255_v33 = vadd.f32 %v3254_v49, %v2565_v52  ;;  %v2567_v1 = vpop.f32.mrb[5].mxu0  ;;  %v2624_v16 = vld [vmem:[%s5221_s10] sm:$0xf] }
 0x816   : > { %v3257_v14 = vadd.f32 %v3256_v18, %v2567_v1  ;;  %v2569_v22 = vpop.f32.mrb[6].mxu0  ;;  %v2701_v18 = vld [vmem:[%s5223_s12] sm:$0xff]  ;;  %v2703_v1 = vld [vmem:[%s5223_s12 + $0x10] sm:$0xff] }
 0x817   : > { %vm2584_vm8 = vcmp.gt.f32.partialorder %v3255_v33, 0.0  ;;  %v2592_v32 = vmul.f32 0.01, %v3255_v33  ;;  %v3259_v26 = vadd.f32 %v3258_v19, %v2569_v22  ;;  %v2571_v0 = vpop.f32.mrb[7].mxu0  ;;  %3232 = vmatprep.mubr.msk.f32.mxu0 %vm2717_vm3, %v2701_v18  ;;  %v2705_v22 = vld [vmem:[%s5223_s12 + $0x20] sm:$0xff] }
 0x818   : > { %vm2585_vm5 = vcmp.gt.f32.partialorder %v3257_v14, 0.0  ;;  %v2593_v28 = vmul.f32 0.01, %v3257_v14  ;;  %v3261_v9 = vadd.f32 %v3260_v29, %v2571_v0  ;;  %v2708_v0 = vld [vmem:[%s5223_s12 + $0x38] sm:$0xff] }
 0x819   : > { %v5041_v21 = vsel %vm2584_vm8, %v3255_v33, %v2592_v32  ;;  %vm2586_vm15 = vcmp.gt.f32.partialorder %v3259_v26, 0.0  ;;  %v2594_v11 = vmul.f32 0.01, %v3259_v26  ;;  %v2522_v42 = vpop.f32.mrb[24].mxu1  ;;  %v2702_v33 = vld [vmem:[%s5223_s12 + $0x8] sm:$0xff] }
 0x81a   : > { %v5043_v31 = vsel %vm2585_vm5, %v3257_v14, %v2593_v28  ;;  %vm2587_vm6 = vcmp.gt.f32.partialorder %v3261_v9, 0.0  ;;  %v2595_v4 = vmul.f32 0.01, %v3261_v9  ;;  %v3262_v5 = vadd.f32 %v2522_v42, %v2362_v13  ;;  %v2524_v54 = vpop.f32.mrb[25].mxu1  ;;  %v2704_v14 = vld [vmem:[%s5223_s12 + $0x18] sm:$0xff]  ;;  %v2706_v32 = vld [vmem:[%s5223_s12 + $0x28] sm:$0xff] }
 0x81b   : > { %v5045_v48 = vsel %vm2586_vm15, %v3259_v26, %v2594_v11  ;;  %v3264_v63 = vadd.f32 %v2524_v54, %v2362_v13  ;;  %v2526_v37 = vpop.f32.mrb[26].mxu1  ;;  %v2608_v38 = vadd.f32 %v5043_v31, %v5041_v21  ;;  %v2707_v26 = vld [vmem:[%s5223_s12 + $0x30] sm:$0xff]  ;;  %v2710_v28 = vld [vmem:[%s5224_s13 + $0x8] sm:$0xff] }
 0x81c   : > { %v5049_v56 = vsel %vm2587_vm6, %v3261_v9, %v2595_v4  ;;  %v3266_v62 = vadd.f32 %v2526_v37, %v2367_v2  ;;  %v2528_v59 = vpop.f32.mrb[27].mxu1  ;;  %v2575_v50 = vpop.f32.mrb[8].mxu0  ;;  %v2709_v9 = vld [vmem:[%s5224_s13] sm:$0xff] }
 0x81d   : > { %v3268_v10 = vadd.f32 %v2528_v59, %v2367_v2  ;;  %v3263_v43 = vadd.f32 %v3262_v5, %v2575_v50  ;;  %v2577_v8 = vpop.f32.mrb[9].mxu0  ;;  %2609 = vadd.xlane.f32.xlu1 %v2608_v38  ;;  %v2611_v23 = vadd.f32 %v5049_v56, %v5045_v48  ;;  %v2712_v5 = vld [vmem:[%s5224_s13 + $0x18] sm:$0xff]  ;;  %v2711_v2 = vld [vmem:[%s5224_s13 + $0x10] sm:$0xff]  ;;  %v2714_v50 = vld [vmem:[%s5224_s13 + $0x28] sm:$0xff] }
 0x81e   : > { %v3265_v36 = vadd.f32 %v3264_v63, %v2577_v8  ;;  %v2579_v46 = vpop.f32.mrb[10].mxu0 }
 0x81f   : > { %vm2588_vm9 = vcmp.gt.f32.partialorder %v3263_v43, 0.0  ;;  %v2596_v20 = vmul.f32 0.01, %v3263_v43  ;;  %v3267_v24 = vadd.f32 %v3266_v62, %v2579_v46  ;;  %v2581_v27 = vpop.f32.mrb[11].mxu0  ;;  %2612 = vadd.xlane.f32.xlu0 %v2611_v23 }
 0x820   : > { %vm2589_vm10 = vcmp.gt.f32.partialorder %v3265_v36, 0.0  ;;  %v2597_v40 = vmul.f32 0.01, %v3265_v36  ;;  %v3269_v25 = vadd.f32 %v3268_v10, %v2581_v27 }
 0x821   : > { %v5053_v39 = vsel %vm2588_vm9, %v3263_v43, %v2596_v20  ;;  %vm2590_vm12 = vcmp.gt.f32.partialorder %v3267_v24, 0.0  ;;  %v2598_v30 = vmul.f32 0.01, %v3267_v24  ;;  %v2713_v43 = vld [vmem:[%s5224_s13 + $0x20] sm:$0xff] }
 0x822   : > { %v5055_v47 = vsel %vm2589_vm10, %v3265_v36, %v2597_v40  ;;  %vm2591_vm14 = vcmp.gt.f32.partialorder %v3269_v25, 0.0  ;;  %v2599_v17 = vmul.f32 0.01, %v3269_v25  ;;  %v2715_v40 = vld [vmem:[%s5224_s13 + $0x30] sm:$0xff] }
 0x823   : > { %v5057_v6 = vsel %vm2590_vm12, %v3267_v24, %v2598_v30  ;;  %v2614_v61 = vadd.f32 %v5055_v47, %v5053_v39  ;;  %v2716_v24 = vld [vmem:[%s5224_s13 + $0x38] sm:$0xff] }
 0x824   : > { %v5061_v55 = vsel %vm2591_vm14, %v3269_v25, %v2599_v17 }
 0x825   : > { %2615 = vadd.xlane.f32.xlu0 %v2614_v61  ;;  %v2617_v51 = vadd.f32 %v5061_v55, %v5057_v6 }
 0x827   : > { %2618 = vadd.xlane.f32.xlu1 %v2617_v51 }
 0x8aa   : > { %v2610_v41 = vpop.xlane.xlu1 %2609 }
 0x8ab   : > { %v2620_v15 = vmul.f32 0.00390625, %v2610_v41 }
 0x8ac   : > { %v2613_v34 = vpop.xlane.xlu0 %2612 }
 0x8ad   : > { %v2621_v12 = vmul.f32 0.00390625, %v2613_v34 }
 0x8af   : > { %v3245_v44 = vpack.c.bf16 %v2621_v12, %v2620_v15 }
 0x8b1   : > { %3246 = vmatpush3.bf16.msra.mxu1 %v3245_v44 }
 0x8b2   : > { %v2616_v45 = vpop.xlane.xlu0 %2615  ;;  %3247 = vmatprep.subr.bf16.mxu1 %v3525_v60 }
 0x8b3   : > { %v2622_v35 = vmul.f32 0.00390625, %v2616_v45 }
 0x8b4   : > { %v2619_v7 = vpop.xlane.xlu1 %2618 }
 0x8b5   : > { %v2623_v49 = vmul.f32 0.00390625, %v2619_v7 }
 0x8b7   : > { %v3248_v53 = vpack.c.bf16 %v2623_v49, %v2622_v35 }
 0x8b9   : > { %3249 = vmatpush3.bf16.msra.mxu1 %v3248_v53 }
 0x8bc   : > { %3228 = vmatmul.mubr.msk.f32.vlgmr.msra.gmra.mrb[28].mxu1 %vm5416_vm2, %v2624_v16 }
 0x98f   : > { %v2696_v19 = vpop.f32.mrb[28].mxu1 }
 0x990   : > { %v2697_v3 = vadd.f32 %v2696_v19, %v2625_v57  ;;  %v3229_v52 = vpop.f32.mrb[29].mxu1 }
 0x992   : > { %v2700_v29 = vmax.f32 %v2697_v3, 0.0 }
 0x994   : > { %3230 = vmatprep.subr.msk.mxu0 %vm2742_vm11, %v2700_v29 }
 0x995   : > { %3231 = vmatpush3.msk.msra.mxu0 %vm2742_vm11, %v2700_v29 }
 0x996   : > { %3233 = vmatmul.mubr.msk.f32.vlgmr.msra.gmra.mrb[12].mxu0 %vm2717_vm3, %v2702_v33 }
 0x997   : > { %3235 = vmatprep.mubr.msk.f32.mxu0 %vm2717_vm3, %v2703_v1 }
 0x99a   : > { %3236 = vmatmul.mubr.msk.f32.gmra.mrb[14].mxu0 %vm2717_vm3, %v2704_v14 }
 0x99b   : > { %3238 = vmatprep.mubr.msk.f32.mxu0 %vm2717_vm3, %v2705_v22 }
 0x99e   : > { %3239 = vmatmul.mubr.msk.f32.gmra.mrb[16].mxu0 %vm2717_vm3, %v2706_v32 }
 0x99f   : > { %3241 = vmatprep.mubr.msk.f32.mxu0 %vm2717_vm3, %v2707_v26 }
 0x9a2   : > { %3242 = vmatmul.mubr.msk.f32.gmra.mrb[18].mxu0 %vm2717_vm3, %v2708_v0 }
 0xa69   : > { %v3234_v13 = vpop.f32.mrb[12].mxu0 }
 0xa6a   : > { %v2818_v11 = vadd.f32 %v3234_v13, %v2710_v28  ;;  %v2812_v42 = vpop.f32.mrb[13].mxu0 }
 0xa6b   : > { %v2813_v4 = vadd.f32 %v2812_v42, %v2709_v9 }
 0xa6c   : > { %v3182_v54 = vmul.f32 -1.442695, %v2818_v11 }
 0xa6d   : > { %v3181_v63 = vmul.f32 -1.442695, %v2813_v4  ;;  %v3237_v37 = vpop.f32.mrb[14].mxu0 }
 0xa6e   : > { %3422 = vpow2.f32 %v3182_v54  ;;  %v2828_v38 = vadd.f32 %v3237_v37, %v2712_v5  ;;  %v2822_v62 = vpop.f32.mrb[15].mxu0  ;;  %v3470_v5 = vld [vmem:[%s3639_s26 + $0x10] sm:$0xff]  ;;  %v3472_v37 = vld [vmem:[%s3639_s26] sm:$0xff] }
 0xa6f   : > { %3424 = vpow2.f32 %v3181_v63  ;;  %v2823_v59 = vadd.f32 %v2822_v62, %v2711_v2  ;;  %v3471_v2 = vld [vmem:[%s3639_s26 + $0x18] sm:$0xff]  ;;  %v3473_v62 = vld [vmem:[%s3639_s26 + $0x8] sm:$0xff] }
 0xa70   : > { %v3184_v10 = vmul.f32 -1.442695, %v2828_v38 }
 0xa71   : > { %v3183_v8 = vmul.f32 -1.442695, %v2823_v59  ;;  %v3240_v23 = vpop.f32.mrb[16].mxu0 }
 0xa72   : > { %3426 = vpow2.f32 %v3184_v10  ;;  %v2838_v36 = vadd.f32 %v3240_v23, %v2714_v50  ;;  %v2832_v46 = vpop.f32.mrb[17].mxu0 }
 0xa73   : > { %3428 = vpow2.f32 %v3183_v8  ;;  %v2833_v20 = vadd.f32 %v2832_v46, %v2713_v43  ;;  %v3474_v46 = vld [vmem:[%s3639_s26 + $0x20] sm:$0xff] }
 0xa74   : > { %v3186_v27 = vmul.f32 -1.442695, %v2838_v36 }
 0xa75   : > { %v3185_v25 = vmul.f32 -1.442695, %v2833_v20  ;;  %v3243_v30 = vpop.f32.mrb[18].mxu0 }
 0xa76   : > { %3430 = vpow2.f32 %v3186_v27  ;;  %v2848_v17 = vadd.f32 %v3243_v30, %v2716_v24  ;;  %v2842_v61 = vpop.f32.mrb[19].mxu0  ;;  %v3475_v24 = vld [vmem:[%s3639_s26 + $0x28] sm:$0xff]  ;;  %v3477_v30 = vld [vmem:[%s3639_s26 + $0x38] sm:$0xff] }
 0xa77   : > { %3432 = vpow2.f32 %v3185_v25  ;;  %v2843_v51 = vadd.f32 %v2842_v61, %v2715_v40  ;;  %v3476_v40 = vld [vmem:[%s3639_s26 + $0x30] sm:$0xff]  ;;  %s3204_s26 = sshll.u32 (%p3628_p4), %s3616_s16, 6 }
 0xa78   : > { %v3423_v60 = vpop.eup %3422  ;;  %v3188_v58 = vmul.f32 -1.442695, %v2848_v17  ;;  %s2997_s30 = scalar_lea.vmem (%p3628_p4), %s5225_s14, %s3204_s26 }
 0xa79   : > { %v3425_v41 = vpop.eup %3424  ;;  %v2876_v34 = vadd.f32 1.0, %v3423_v60  ;;  %v3187_v15 = vmul.f32 -1.442695, %v2843_v51 }
 0xa7a   : > { %v2875_v12 = vadd.f32 1.0, %v3425_v41  ;;  %3434 = vpow2.f32 %v3188_v58 }
 0xa7b   : > { %3436 = vrcp.f32 %v2876_v34 }
 0xa7c   : > { %v3427_v44 = vpop.eup %3426  ;;  %3438 = vrcp.f32 %v2875_v12 }
 0xa7d   : > { %v3429_v45 = vpop.eup %3428  ;;  %v2878_v7 = vadd.f32 1.0, %v3427_v44  ;;  %3440 = vpow2.f32 %v3187_v15  ;;  %v3478_v15 = vld [vmem:[%s3647_s15] sm:$0xff]  ;;  %v3479_v44 = vld [vmem:[%s3647_s15 + $0x8] sm:$0xff] }
 0xa7e   : > { %v2877_v35 = vadd.f32 1.0, %v3429_v45 }
 0xa7f   : > { %3442 = vrcp.f32 %v2878_v7  ;;  %v3480_v7 = vld [vmem:[%s3647_s15 + $0x10] sm:$0xff] }
 0xa80   : > { %v3431_v49 = vpop.eup %3430  ;;  %3444 = vrcp.f32 %v2877_v35 }
 0xa81   : > { %v3433_v53 = vpop.eup %3432  ;;  %v2880_v16 = vadd.f32 1.0, %v3431_v49  ;;  %v3481_v49 = vld [vmem:[%s3647_s15 + $0x18] sm:$0xff] }
 0xa82   : > { %v2879_v18 = vadd.f32 1.0, %v3433_v53 }
 0xa83   : > { %3446 = vrcp.f32 %v2880_v16 }
 0xa84   : > { %v3435_v57 = vpop.eup %3434  ;;  %3448 = vrcp.f32 %v2879_v18 }
 0xa85   : > { %v3437_v19 = vpop.eup %3436  ;;  %v2882_v3 = vadd.f32 1.0, %v3435_v57  ;;  %v3482_v57 = vld [vmem:[%s3647_s15 + $0x30] sm:$0xff] }
 0xa86   : > { %v3439_v52 = vpop.eup %3438  ;;  %2906 = vperm.xlu1 %3329, %v3437_v19  }
 0xa87   : > { %v3441_v29 = vpop.eup %3440  ;;  %3450 = vrcp.f32 %v2882_v3  ;;  %2901 = vperm.xlu0 %3328, %v3439_v52   ;;  %v3483_v3 = vld [vmem:[%s3647_s15 + $0x38] sm:$0xff] }
 0xa88   : > { %v2881_v33 = vadd.f32 1.0, %v3441_v29  ;;  %v3484_v29 = vld [vmem:[%s3647_s15 + $0x20] sm:$0xff] }
 0xa89   : > { %v3443_v1 = vpop.eup %3442 }
 0xa8a   : > { %v3445_v14 = vpop.eup %3444  ;;  %3452 = vrcp.f32 %v2881_v33 }
 0xa8b   : > { %2911 = vperm.xlu1 %3329, %v3445_v14   ;;  %2916 = vperm.xlu0 %3328, %v3443_v1   ;;  %v3485_v1 = vld [vmem:[%s3647_s15 + $0x28] sm:$0xff] }
 0xa8d   : > { %v3447_v22 = vpop.eup %3446 }
 0xa8e   : > { %v3449_v32 = vpop.eup %3448 }
 0xa8f   : > { %2945 = vperm.xlu1 %3329, %v3449_v32   ;;  %2950 = vperm.xlu0 %3328, %v3447_v22  }
 0xa91   : > { %v3451_v26 = vpop.eup %3450 }
 0xa93   : > { %2960 = vperm.xlu0 %3328, %v3451_v26  }
 0xa94   : > { %v3453_v0 = vpop.eup %3452 }
 0xa95   : > { %2955 = vperm.xlu1 %3329, %v3453_v0  }
 0xb05   : > { %v2907_v28 = vpop.permute.xlu1 %2906 }
 0xb06   : > { %v2921_v9 = vmul.f32 %v2907_v28, %v5045_v48  ;;  %v2922_v13 = vmul.f32 %v2907_v28, %v5049_v56  ;;  %v2902_v11 = vpop.permute.xlu0 %2901 }
 0xb07   : > { %v2919_v42 = vmul.f32 %v2902_v11, %v5041_v21  ;;  %v2920_v4 = vmul.f32 %v2902_v11, %v5043_v31 }
 0xb08   : > { %v2929_v54 = vadd.f32 %v3470_v5, %v2921_v9  ;;  %v2930_v63 = vadd.f32 %v3471_v2, %v2922_v13 }
 0xb09   : > { %v2927_v38 = vadd.f32 %v3472_v37, %v2919_v42  ;;  %v2928_v59 = vadd.f32 %v3473_v62, %v2920_v4 }
 0xb0a   : > { %2937 = vst [vmem:[%s5137_s29 + $0x10] sm:$0xff] %v2929_v54  ;;  %2938 = vst [vmem:[%s5137_s29 + $0x18] sm:$0xff] %v2930_v63  ;;  %v2912_v50 = vpop.permute.xlu1 %2911  ;;  %v2917_v10 = vpop.permute.xlu0 %2916 }
 0xb0b   : > { %2935 = vst [vmem:[%s5137_s29] sm:$0xff] %v2927_v38  ;;  %2936 = vst [vmem:[%s5137_s29 + $0x8] sm:$0xff] %v2928_v59  ;;  %v2923_v43 = vmul.f32 %v2912_v50, %v5053_v39  ;;  %v2924_v8 = vmul.f32 %v2912_v50, %v5055_v47  ;;  %v2925_v23 = vmul.f32 %v2917_v10, %v5057_v6 }
 0xb0c   : > { %v2926_v36 = vmul.f32 %v2917_v10, %v5061_v55 }
 0xb0d   : > { %v2931_v20 = vadd.f32 %v3474_v46, %v2923_v43  ;;  %v2932_v27 = vadd.f32 %v3475_v24, %v2924_v8  ;;  %v2933_v25 = vadd.f32 %v3476_v40, %v2925_v23 }
 0xb0e   : > { %v2934_v17 = vadd.f32 %v3477_v30, %v2926_v36  ;;  %v2946_v61 = vpop.permute.xlu1 %2945  ;;  %v2951_v51 = vpop.permute.xlu0 %2950 }
 0xb0f   : > { %2939 = vst [vmem:[%s5137_s29 + $0x20] sm:$0xff] %v2931_v20  ;;  %2940 = vst [vmem:[%s5137_s29 + $0x28] sm:$0xff] %v2932_v27  ;;  %v2963_v60 = vmul.f32 %v2946_v61, %v5041_v21  ;;  %v2964_v58 = vmul.f32 %v2946_v61, %v5043_v31  ;;  %v2965_v41 = vmul.f32 %v2951_v51, %v5045_v48 }
 0xb10   : > { %2941 = vst [vmem:[%s5137_s29 + $0x30] sm:$0xff] %v2933_v25  ;;  %2942 = vst [vmem:[%s5137_s29 + $0x38] sm:$0xff] %v2934_v17  ;;  %v2966_v34 = vmul.f32 %v2951_v51, %v5049_v56 }
 0xb11   : > { %v2971_v12 = vadd.f32 %v3478_v15, %v2963_v60  ;;  %v2972_v45 = vadd.f32 %v3479_v44, %v2964_v58  ;;  %v2973_v35 = vadd.f32 %v3480_v7, %v2965_v41 }
 0xb12   : > { %v2974_v53 = vadd.f32 %v3481_v49, %v2966_v34  ;;  %v2961_v16 = vpop.permute.xlu0 %2960 }
 0xb13   : > { %3189 = vst [vmem:[%s5137_s29 + $0x40] sm:$0xff] %v2971_v12  ;;  %3190 = vst [vmem:[%s5137_s29 + $0x48] sm:$0xff] %v2972_v45  ;;  %v2969_v21 = vmul.f32 %v2961_v16, %v5057_v6  ;;  %v2970_v31 = vmul.f32 %v2961_v16, %v5061_v55  ;;  %2994 = sbr.rel (!%p3628_p4) target bundleno = 2850 (0xb22), region = 80  ;;  %v3014_v6 = vld [vmem:[%s5137_s29 + $0x10] sm:$0xff] (%p3628_p4)  ;;  %v3016_v55 = vld [vmem:[%s5137_s29 + $0x18] sm:$0xff] (%p3628_p4) }
 0xb14   : > { %3191 = vst [vmem:[%s5137_s29 + $0x50] sm:$0xff] %v2973_v35  ;;  %3192 = vst [vmem:[%s5137_s29 + $0x58] sm:$0xff] %v2974_v53  ;;  %v2956_v48 = vpop.permute.xlu1 %2955 }
 0xb15   : > { %v2967_v56 = vmul.f32 %v2956_v48, %v5053_v39  ;;  %v2968_v18 = vmul.f32 %v2956_v48, %v5055_v47  ;;  %v2977_v19 = vadd.f32 %v3482_v57, %v2969_v21  ;;  %v2978_v52 = vadd.f32 %v3483_v3, %v2970_v31  ;;  %v3010_v39 = vld [vmem:[%s5137_s29] sm:$0xff] (%p3628_p4)  ;;  %v3012_v47 = vld [vmem:[%s5137_s29 + $0x8] sm:$0xff] (%p3628_p4)  ;;  %3015 = vst [vmem:[%s2997_s30 + $0x10] sm:$0xff] (%p3628_p4), %v3014_v6 }
 0xb16   : > { %v3018_v22 = vld [vmem:[%s5137_s29 + $0x20] sm:$0xff] (%p3628_p4)  ;;  %v3020_v32 = vld [vmem:[%s5137_s29 + $0x28] sm:$0xff] (%p3628_p4)  ;;  %3011 = vst [vmem:[%s2997_s30] sm:$0xff] (%p3628_p4), %v3010_v39  ;;  %3013 = vst [vmem:[%s2997_s30 + $0x8] sm:$0xff] (%p3628_p4), %v3012_v47 }
 0xb17   : > { %v2975_v33 = vadd.f32 %v3484_v29, %v2967_v56  ;;  %v2976_v14 = vadd.f32 %v3485_v1, %v2968_v18  ;;  %3195 = vst [vmem:[%s5137_s29 + $0x70] sm:$0xff] %v2977_v19  ;;  %3196 = vst [vmem:[%s5137_s29 + $0x78] sm:$0xff] %v2978_v52  ;;  %v3022_v26 = vld [vmem:[%s5137_s29 + $0x30] sm:$0xff] (%p3628_p4)  ;;  %v3024_v0 = vld [vmem:[%s5137_s29 + $0x38] sm:$0xff] (%p3628_p4) }
 0xb18   : > { %3017 = vst [vmem:[%s2997_s30 + $0x18] sm:$0xff] (%p3628_p4), %v3016_v55  ;;  %3019 = vst [vmem:[%s2997_s30 + $0x20] sm:$0xff] (%p3628_p4), %v3018_v22 }
 0xb19   : > { %3193 = vst [vmem:[%s5137_s29 + $0x60] sm:$0xff] %v2975_v33  ;;  %3194 = vst [vmem:[%s5137_s29 + $0x68] sm:$0xff] %v2976_v14 }
 0xb1a   : > { %3021 = vst [vmem:[%s2997_s30 + $0x28] sm:$0xff] %v3020_v32  ;;  %v3026_v28 = vld [vmem:[%s5137_s29 + $0x40] sm:$0xff]  ;;  %3023 = vst [vmem:[%s2997_s30 + $0x30] sm:$0xff] %v3022_v26  ;;  %v3028_v9 = vld [vmem:[%s5137_s29 + $0x48] sm:$0xff] }
 0xb1b   : > { %3025 = vst [vmem:[%s2997_s30 + $0x38] sm:$0xff] %v3024_v0  ;;  %3027 = vst [vmem:[%s2997_s30 + $0x80] sm:$0xff] %v3026_v28  ;;  %v3030_v13 = vld [vmem:[%s5137_s29 + $0x50] sm:$0xff]  ;;  %v3032_v11 = vld [vmem:[%s5137_s29 + $0x58] sm:$0xff] }
 0xb1c   : > { %3029 = vst [vmem:[%s2997_s30 + $0x88] sm:$0xff] %v3028_v9  ;;  %3031 = vst [vmem:[%s2997_s30 + $0x90] sm:$0xff] %v3030_v13 }
 0xb1d   : > { %3033 = vst [vmem:[%s2997_s30 + $0x98] sm:$0xff] %v3032_v11 }
 0xb1e   : > { %v3038_v5 = vld [vmem:[%s5137_s29 + $0x70] sm:$0xff]  ;;  %v3040_v54 = vld [vmem:[%s5137_s29 + $0x78] sm:$0xff] }
 0xb1f   : > { %3039 = vst [vmem:[%s2997_s30 + $0xb0] sm:$0xff] %v3038_v5  ;;  %3041 = vst [vmem:[%s2997_s30 + $0xb8] sm:$0xff] %v3040_v54 }
 0xb20   : > { %v3034_v42 = vld [vmem:[%s5137_s29 + $0x60] sm:$0xff]  ;;  %v3036_v4 = vld [vmem:[%s5137_s29 + $0x68] sm:$0xff] }
 0xb21   : > { %3035 = vst [vmem:[%s2997_s30 + $0xa0] sm:$0xff] %v3034_v42  ;;  %3037 = vst [vmem:[%s2997_s30 + $0xa8] sm:$0xff] %v3036_v4 }
 0xb22 PF: > { %s5417_s15 = sld [smem:[#allocation4_spill]]  ;;  %s5418_s29 = sld [smem:[#allocation3_spill]] }
 0xb23   : > { %s5419_s30 = sld [smem:[#allocation5_spill]] }
 0xb28   : > { %p21_p8 = scmp.ge.s32.totalorder %s5417_s15, 4  }
 0xb2a   :  { %23 = sbr.rel (!%p21_p8) target bundleno = 7 (0x7), region = 133 }

</bundles_post_ra>
